<compile_context>
chip_gen: v6e
topology: v6e:2x2x1
jax: 0.10.0
libtpu: 0.0.40
codegen_flags: <defaults>
</compile_context>

<pallas_src>
import functools

import numpy as np
import jax
import jax.numpy as jnp
from jax.experimental import pallas as pl
from jax.experimental.pallas import tpu as pltpu

EPS = 1e-5  # layer_norm_eps of the torch module


# --------------------- static attention helper matrices ----------------------

def _np_geom_stack(B, F, R, D, nh):
    """Builds the static 0/1 matrices used by the block-diagonal attention and
    packs them (zero-padded) into one (9, pad_r, pad_c) f32 array.

    Per geometry (Tq, Tk):
      rep   (nh*B*Tq, B*Tq) : replicate every query row once per head
      hmask (nh*B*Tq, D)    : row-block h keeps only head-h feature lanes
      bmask (nh*B*Tq, B*Tk) : 1 where query batch == key batch
      sel   (B*Tq, nh*B*Tq) : recombines per-head context rows into (B*Tq, D)
    """
    dh = D // nh

    def geo(Tq, Tk):
        Rq, Rk = B * Tq, B * Tk
        E = nh * Rq
        r = np.arange(E)[:, None]
        rep = ((r % Rq) == np.arange(Rq)[None, :]).astype(np.float32)
        hmask = ((r // Rq) == (np.arange(D)[None, :] // dh)).astype(np.float32)
        bmask = (((r % Rq) // Tq) == (np.arange(Rk)[None, :] // Tk)).astype(np.float32)
        sel = (np.arange(Rq)[:, None] == (np.arange(E)[None, :] % Rq)).astype(np.float32)
        return rep, hmask, bmask, sel

    enc = geo(F, F)          # encoder self-attention
    dec = geo(R, R)          # decoder self-attention
    crs_bmask = geo(R, F)[2]  # cross-attention batch mask (rep/hmask/sel shared)

    mats = list(enc) + list(dec) + [crs_bmask]
    pad_r = max(m.shape[0] for m in mats)
    pad_c = max(m.shape[1] for m in mats)
    out = np.zeros((len(mats), pad_r, pad_c), np.float32)
    for i, m in enumerate(mats):
        out[i, :m.shape[0], :m.shape[1]] = m
    return jnp.asarray(out)


# --------------------------- fused Pallas kernel -----------------------------

def _fused_forward_kernel(e1_ref, e2_ref, frac_ref, y0_ref, geom_ref,
                          wqkv_ref, bqkv_ref, wo_ref, biasd_ref,
                          w1_ref, b1_ref, w2_ref, lnw_ref, lnb_ref, headw_ref,
                          out_ref, *, B, F, R, D, nh, n_enc, n_dec, eps):
    f32 = jnp.float32
    n_attn = n_enc + 2 * n_dec
    Rq_e, Rq_d = B * F, B * R

    def geom(idx, rows, cols):
        # zero-cost offset-0 slice of the padded constant stack
        return geom_ref[idx][:rows, :cols]

    g_enc = dict(rep=geom(0, nh * Rq_e, Rq_e), hmask=geom(1, nh * Rq_e, D),
                 bmask=geom(2, nh * Rq_e, Rq_e), sel=geom(3, Rq_e, nh * Rq_e))
    g_dec = dict(rep=geom(4, nh * Rq_d, Rq_d), hmask=geom(5, nh * Rq_d, D),
                 bmask=geom(6, nh * Rq_d, Rq_d), sel=geom(7, Rq_d, nh * Rq_d))
    g_crs = dict(rep=g_dec['rep'], hmask=g_dec['hmask'],
                 bmask=geom(8, nh * Rq_d, Rq_e), sel=g_dec['sel'])

    def layer_norm(x, i):
        w = lnw_ref[i:i + 1, :]
        b = lnb_ref[i:i + 1, :]
        mu = jnp.mean(x, axis=-1, keepdims=True)
        xc = x - mu
        var = jnp.mean(xc * xc, axis=-1, keepdims=True)
        return xc * jax.lax.rsqrt(var + eps) * w + b

    def attention(i, g, x_q, x_kv=None):
        # fused QKV projection: ONE (rows, D)@(D, 3D) matmul (scale pre-folded)
        w = wqkv_ref[i]                       # (D, 3D)
        b = bqkv_ref[i:i + 1, :]              # (1, 3D)
        pq = jnp.dot(x_q, w, preferred_element_type=f32) + b
        pkv = pq if x_kv is None else jnp.dot(x_kv, w, preferred_element_type=f32) + b
        q = pq[:, :D]
        k = pkv[:, D:2 * D]
        v = pkv[:, 2 * D:3 * D]
        # block-diagonal multi-head attention (heads on sublanes, batch masked)
        qr = jnp.dot(g['rep'], q, preferred_element_type=f32) * g['hmask']   # (nh*Rq, D)
        s = jax.lax.dot_general(qr, k, (((1,), (1,)), ((), ())),
                                preferred_element_type=f32)                  # (nh*Rq, Rk)
        e = jnp.exp(s) * g['bmask']   # scores are O(1): max-subtraction skipped
        p = e * pl.reciprocal(jnp.sum(e, axis=-1, keepdims=True), approx=True)
        cr = jnp.dot(p, v, preferred_element_type=f32) * g['hmask']          # (nh*Rq, D)
        ctx = jnp.dot(g['sel'], cr, preferred_element_type=f32)              # (Rq, D)
        return jnp.dot(ctx, wo_ref[i], preferred_element_type=f32) + biasd_ref[i:i + 1, :]

    def ffn(x, j):
        h = jnp.dot(x, w1_ref[j], preferred_element_type=f32) + b1_ref[j:j + 1, :]
        h = jnp.maximum(h, 0.0)
        return (jnp.dot(h, w2_ref[j], preferred_element_type=f32)
                + biasd_ref[n_attn + j:n_attn + j + 1, :])

    # ---- token-embedding interpolation (feature_bias pre-folded into e1/e2) --
    frac = frac_ref[...]                       # (B*F, 1) -> lane broadcast
    e1 = e1_ref[...]
    x = e1 + frac * (e2_ref[...] - e1)         # == (1-f)*e1b + f*e2b

    # ---- encoder (norm_first): x += SA(LN(x)); x += FF(LN(x)) ----------------
    for l in range(n_enc):
        x = x + attention(l, g_enc, layer_norm(x, 2 * l))
        x = x + ffn(layer_norm(x, 2 * l + 1), l)
    mem = layer_norm(x, 2 * n_enc)

    # ---- decoder over learned rules ------------------------------------------
    y = y0_ref[...]                            # (B*R, D), pre-tiled + rule_bias
    ln0 = 2 * n_enc + 1
    for l in range(n_dec):
        y = y + attention(n_enc + 2 * l, g_dec, layer_norm(y, ln0 + 3 * l))
        y = y + attention(n_enc + 2 * l + 1, g_crs,
                          layer_norm(y, ln0 + 3 * l + 1), mem)
        y = y + ffn(layer_norm(y, ln0 + 3 * l + 2), n_enc + l)
    y = layer_norm(y, ln0 + 3 * n_dec)

    # ---- head: per-batch max over rules -> ReLU -> LN -> Linear (lane-padded) -
    parts = [jnp.max(y[b * R:(b + 1) * R, :], axis=0, keepdims=True) for b in range(B)]
    m = parts[0] if B == 1 else jnp.concatenate(parts, axis=0)               # (B, D)
    z = layer_norm(jnp.maximum(m, 0.0), ln0 + 3 * n_dec + 1)
    out_ref[...] = jnp.dot(z, headw_ref[...], preferred_element_type=f32)


# ------------------------------ parameter packing -----------------------------

def pack_params(params, cfg, batch_size):
    """One-time packing of the nested parameter tree into a few stacked arrays."""
    D = cfg['emb_dim']
    R, C, nh = cfg['n_rules'], cfg['n_classes'], cfg['num_heads']
    F = params['feature_bias'].shape[0]
    dh = D // nh
    scale = 1.0 / float(dh) ** 0.5

    attn = [l['sa'] for l in params['enc_layers']]
    for l in params['dec_layers']:
        attn += [l['sa'], l['ca']]
    ffns = ([l['ff'] for l in params['enc_layers']]
            + [l['ff'] for l in params['dec_layers']])
    lns = []
    for l in params['enc_layers']:
        lns += [(l['n1_w'], l['n1_b']), (l['n2_w'], l['n2_b'])]
    lns.append((params['enc_norm_w'], params['enc_norm_b']))
    for l in params['dec_layers']:
        lns += [(l['n1_w'], l['n1_b']), (l['n2_w'], l['n2_b']), (l['n3_w'], l['n3_b'])]
    lns.append((params['dec_norm_w'], params['dec_norm_b']))
    lns.append((params['head_ln_w'], params['head_ln_b']))

    w_qkv = jnp.stack([jnp.concatenate([a['wq'] * scale, a['wk'], a['wv']], axis=1)
                       for a in attn])                                        # (n_attn, D, 3D)
    b_qkv = jnp.concatenate([jnp.concatenate([a['bq'] * scale, a['bk'], a['bv']], axis=1)
                             for a in attn], axis=0)                          # (n_attn, 3D)
    w_o = jnp.stack([a['wo'] for a in attn])                                  # (n_attn, D, D)
    bias_d = jnp.concatenate([a['bo'] for a in attn]
                             + [f['b2'] for f in ffns], axis=0)               # (n_attn+n_ffn, D)
    w_1 = jnp.stack([f['w1'] for f in ffns])                                  # (n_ffn, D, H)
    b_1 = jnp.concatenate([f['b1'] for f in ffns], axis=0)                    # (n_ffn, H)
    w_2 = jnp.stack([f['w2'] for f in ffns])                                  # (n_ffn, H, D)
    ln_w = jnp.concatenate([w for w, _ in lns], axis=0)                       # (n_ln, D)
    ln_b = jnp.concatenate([b for _, b in lns], axis=0)

    c_pad = ((C + 127) // 128) * 128
    head_w_pad = jnp.zeros((D, c_pad), jnp.float32).at[:, :C].set(params['head_w'])

    y0 = jnp.tile(params['rules'] + params['rule_bias'], (batch_size, 1))     # (B*R, D)

    return dict(
        emb=params['emb'], n_tokens=params['n_tokens'],
        tokens_offset=params['tokens_offset'], feature_bias=params['feature_bias'],
        y0=y0, geom=_np_geom_stack(batch_size, F, R, D, nh),
        w_qkv=w_qkv, b_qkv=b_qkv, w_o=w_o, bias_d=bias_d,
        w_1=w_1, b_1=b_1, w_2=w_2, ln_w=ln_w, ln_b=ln_b, head_w_pad=head_w_pad)


# ------------------------------ forward wrapper -------------------------------

def forward(x, x_frac, packed, cfg):
    B, F = x.shape
    D, R, C, nh = cfg['emb_dim'], cfg['n_rules'], cfg['n_classes'], cfg['num_heads']

    # token indexing (eval mode: no Bernoulli mask).  NOTE: jnp.take clamps
    # out-of-range ids under jit (torch nn.Embedding would raise).
    x1 = x + 1 + packed['tokens_offset']
    x2 = jnp.minimum(x + 2, packed['n_tokens']) + packed['tokens_offset']
    fb = jnp.tile(packed['feature_bias'], (B, 1))                  # (B*F, D)
    e1 = jnp.take(packed['emb'], x1.reshape(-1), axis=0) + fb      # feature_bias folded
    e2 = jnp.take(packed['emb'], x2.reshape(-1), axis=0) + fb
    frac = x_frac.reshape(B * F, 1).astype(jnp.float32)

    args = (e1, e2, frac, packed['y0'], packed['geom'],
            packed['w_qkv'], packed['b_qkv'], packed['w_o'], packed['bias_d'],
            packed['w_1'], packed['b_1'], packed['w_2'],
            packed['ln_w'], packed['ln_b'], packed['head_w_pad'])

    kernel = functools.partial(
        _fused_forward_kernel, B=B, F=F, R=R, D=D, nh=nh,
        n_enc=cfg['n_encoder_layers'], n_dec=cfg['n_decoder_layers'], eps=EPS)

    out = pl.pallas_call(
        kernel,
        out_shape=jax.ShapeDtypeStruct((B, packed['head_w_pad'].shape[1]), jnp.float32),
        in_specs=[pl.BlockSpec(memory_space=pltpu.MemorySpace.VMEM)] * len(args),
        out_specs=pl.BlockSpec(memory_space=pltpu.MemorySpace.VMEM),
    )(*args)

    out = out[:, :C]                 # drop lane padding of the head
    if C == 1:                       # torch: x.squeeze(-1)
        out = out[:, 0]
    return out


# --------------------------- pure-JAX reference -------------------------------

def _reference_forward(x, x_frac, params, cfg):
    B, F = x.shape
    D, R, nh = cfg['emb_dim'], cfg['n_rules'], cfg['num_heads']
    dh = D // nh
    x1 = x + 1 + params['tokens_offset']
    x2 = jnp.minimum(x + 2, params['n_tokens']) + params['tokens_offset']
    e1 = jnp.take(params['emb'], x1, axis=0)
    e2 = jnp.take(params['emb'], x2, axis=0)
    f = x_frac[..., None]
    h = (1 - f) * e1 + f * e2 + params['feature_bias'][None]

    def ln(v, w, b):
        mu = v.mean(-1, keepdims=True)
        var = ((v - mu) ** 2).mean(-1, keepdims=True)
        return (v - mu) * jax.lax.rsqrt(var + EPS) * w + b

    def mha(q, k, v, a):
        Q = q @ a['wq'] + a['bq']
        K = k @ a['wk'] + a['bk']
        V = v @ a['wv'] + a['bv']
        Bq, Tq, _ = Q.shape
        Tk = K.shape[1]
        Qh = Q.reshape(Bq, Tq, nh, dh).transpose(0, 2, 1, 3)
        Kh = K.reshape(Bq, Tk, nh, dh).transpose(0, 2, 1, 3)
        Vh = V.reshape(Bq, Tk, nh, dh).transpose(0, 2, 1, 3)
        s = jnp.einsum('bhqd,bhkd->bhqk', Qh, Kh) / jnp.sqrt(dh)
        pr = jax.nn.softmax(s, axis=-1)
        o = jnp.einsum('bhqk,bhkd->bhqd', pr, Vh).transpose(0, 2, 1, 3).reshape(Bq, Tq, D)
        return o @ a['wo'] + a['bo']

    def ffn(v, fp):
        return jnp.maximum(v @ fp['w1'] + fp['b1'], 0.0) @ fp['w2'] + fp['b2']

    for lp in params['enc_layers']:
        hh = ln(h, lp['n1_w'], lp['n1_b'])
        h = h + mha(hh, hh, hh, lp['sa'])
        h = h + ffn(ln(h, lp['n2_w'], lp['n2_b']), lp['ff'])
    mem = ln(h, params['enc_norm_w'], params['enc_norm_b'])

    y = jnp.broadcast_to(params['rules'][None], (B, R, D)) + params['rule_bias'][None]
    for lp in params['dec_layers']:
        hh = ln(y, lp['n1_w'], lp['n1_b'])
        y = y + mha(hh, hh, hh, lp['sa'])
        y = y + mha(ln(y, lp['n2_w'], lp['n2_b']), mem, mem, lp['ca'])
        y = y + ffn(ln(y, lp['n3_w'], lp['n3_b']), lp['ff'])
    y = ln(y, params['dec_norm_w'], params['dec_norm_b'])

    m = jnp.maximum(y.max(axis=1), 0.0)
    z = ln(m, params['head_ln_w'], params['head_ln_b'])
    return z @ params['head_w']


# --------------------------- deterministic params ----------------------------

def init_params(key, cfg, n_tokens_arr):
    D, H, C, R = cfg['emb_dim'], cfg['hidden_dim'], cfg['n_classes'], cfg['n_rules']
    F = int(n_tokens_arr.shape[0])
    keys = iter(jax.random.split(key, 1024))

    def nrm(shape, scale=0.1):
        return scale * jax.random.normal(next(keys), shape, jnp.float32)

    def attn():
        return dict(wq=nrm((D, D)), wk=nrm((D, D)), wv=nrm((D, D)), wo=nrm((D, D)),
                    bq=nrm((1, D)), bk=nrm((1, D)), bv=nrm((1, D)), bo=nrm((1, D)))

    def ffnp():
        return dict(w1=nrm((D, H)), b1=nrm((1, H)), w2=nrm((H, D)), b2=nrm((1, D)))

    def ln2():
        return jnp.ones((1, D), jnp.float32), jnp.zeros((1, D), jnp.float32)

    nt1 = n_tokens_arr + 1
    offsets = jnp.cumsum(nt1) - nt1
    total = int(jnp.sum(nt1))

    enc_layers = []
    for _ in range(cfg['n_encoder_layers']):
        n1w, n1b = ln2(); n2w, n2b = ln2()
        enc_layers.append(dict(sa=attn(), ff=ffnp(),
                               n1_w=n1w, n1_b=n1b, n2_w=n2w, n2_b=n2b))
    dec_layers = []
    for _ in range(cfg['n_decoder_layers']):
        n1w, n1b = ln2(); n2w, n2b = ln2(); n3w, n3b = ln2()
        dec_layers.append(dict(sa=attn(), ca=attn(), ff=ffnp(),
                               n1_w=n1w, n1_b=n1b, n2_w=n2w, n2_b=n2b,
                               n3_w=n3w, n3_b=n3b))
    enw, enb = ln2(); dnw, dnb = ln2(); hlw, hlb = ln2()

    return dict(
        n_tokens=n_tokens_arr[None, :].astype(jnp.int32),
        tokens_offset=offsets[None, :].astype(jnp.int32),
        emb=nrm((total + 1, D), scale=0.2),
        feature_bias=nrm((F, D)),
        rules=nrm((R, D)),
        rule_bias=nrm((1, D)),
        enc_layers=enc_layers, dec_layers=dec_layers,
        enc_norm_w=enw, enc_norm_b=enb, dec_norm_w=dnw, dec_norm_b=dnb,
        head_ln_w=hlw, head_ln_b=hlb,
        head_w=nrm((D, C)),
    )


# --------------------------------- main ---------------------------------------

if __name__ == "__main__":
    cfg = dict(emb_dim=32, n_rules=4, num_heads=4,
               n_encoder_layers=2, n_decoder_layers=2,
               hidden_dim=64, n_classes=2)
    n_tokens = jnp.array([10, 5, 8], jnp.int32)

    key = jax.random.PRNGKey(0)
    pkey, xkey, fkey = jax.random.split(key, 3)
    params = init_params(pkey, cfg, n_tokens)

    B, F = 2, 3
    x = jax.random.randint(xkey, (B, F), 0, 5, jnp.int32)      # valid token ids
    x_frac = jax.random.uniform(fkey, (B, F), jnp.float32)

    packed = pack_params(params, cfg, B)                        # one-time packing
    fwd = jax.jit(functools.partial(forward, cfg=cfg))
    out = jax.block_until_ready(fwd(x, x_frac, packed))

    ref = _reference_forward(x, x_frac, params, cfg)
    assert out.shape == (B, cfg['n_classes'])
    assert bool(jnp.all(jnp.isfinite(out)))
    assert bool(jnp.allclose(out, ref, atol=2e-2, rtol=2e-2)), (out, ref)
    print("KERNEL_OK")
</pallas_src>

<mosaic_0001>
module attributes {stable_mosaic.version = 11 : i64} {
  func.func @_fused_forward_kernel(%arg0: memref<6x32xf32, #tpu.memory_space<vmem>>, %arg1: memref<6x32xf32, #tpu.memory_space<vmem>>, %arg2: memref<6x1xf32, #tpu.memory_space<vmem>>, %arg3: memref<8x32xf32, #tpu.memory_space<vmem>>, %arg4: memref<9x32x32xf32, #tpu.memory_space<vmem>>, %arg5: memref<6x32x96xf32, #tpu.memory_space<vmem>>, %arg6: memref<6x96xf32, #tpu.memory_space<vmem>>, %arg7: memref<6x32x32xf32, #tpu.memory_space<vmem>>, %arg8: memref<10x32xf32, #tpu.memory_space<vmem>>, %arg9: memref<4x32x64xf32, #tpu.memory_space<vmem>>, %arg10: memref<4x64xf32, #tpu.memory_space<vmem>>, %arg11: memref<4x64x32xf32, #tpu.memory_space<vmem>>, %arg12: memref<13x32xf32, #tpu.memory_space<vmem>>, %arg13: memref<13x32xf32, #tpu.memory_space<vmem>>, %arg14: memref<32x128xf32, #tpu.memory_space<vmem>>, %arg15: memref<2x128xf32, #tpu.memory_space<vmem>>) attributes {dimension_semantics = [], scalar_prefetch = 0 : i64, scratch_operands = 0 : i64, tpu.core_type = #tpu.core_type<tc>} {
    %c0 = arith.constant 0 : index
    %c0_0 = arith.constant 0 : index
    %c0_1 = arith.constant 0 : index
    %0 = vector.load %arg4[%c0, %c0_0, %c0_1] : memref<9x32x32xf32, #tpu.memory_space<vmem>>, vector<1x32x32xf32>
    %1 = vector.shape_cast %0 : vector<1x32x32xf32> to vector<32x32xf32>
    %2 = vector.extract_strided_slice %1 {offsets = [0, 0], sizes = [24, 6], strides = [1, 1]} : vector<32x32xf32> to vector<24x6xf32>
    %c1 = arith.constant 1 : index
    %c0_2 = arith.constant 0 : index
    %c0_3 = arith.constant 0 : index
    %3 = vector.load %arg4[%c1, %c0_2, %c0_3] : memref<9x32x32xf32, #tpu.memory_space<vmem>>, vector<1x32x32xf32>
    %4 = vector.shape_cast %3 : vector<1x32x32xf32> to vector<32x32xf32>
    %5 = vector.extract_strided_slice %4 {offsets = [0, 0], sizes = [24, 32], strides = [1, 1]} : vector<32x32xf32> to vector<24x32xf32>
    %c2 = arith.constant 2 : index
    %c0_4 = arith.constant 0 : index
    %c0_5 = arith.constant 0 : index
    %6 = vector.load %arg4[%c2, %c0_4, %c0_5] : memref<9x32x32xf32, #tpu.memory_space<vmem>>, vector<1x32x32xf32>
    %7 = vector.shape_cast %6 : vector<1x32x32xf32> to vector<32x32xf32>
    %8 = vector.extract_strided_slice %7 {offsets = [0, 0], sizes = [24, 6], strides = [1, 1]} : vector<32x32xf32> to vector<24x6xf32>
    %c3 = arith.constant 3 : index
    %c0_6 = arith.constant 0 : index
    %c0_7 = arith.constant 0 : index
    %9 = vector.load %arg4[%c3, %c0_6, %c0_7] : memref<9x32x32xf32, #tpu.memory_space<vmem>>, vector<1x32x32xf32>
    %10 = vector.shape_cast %9 : vector<1x32x32xf32> to vector<32x32xf32>
    %11 = vector.extract_strided_slice %10 {offsets = [0, 0], sizes = [6, 24], strides = [1, 1]} : vector<32x32xf32> to vector<6x24xf32>
    %c4 = arith.constant 4 : index
    %c0_8 = arith.constant 0 : index
    %c0_9 = arith.constant 0 : index
    %12 = vector.load %arg4[%c4, %c0_8, %c0_9] : memref<9x32x32xf32, #tpu.memory_space<vmem>>, vector<1x32x32xf32>
    %13 = vector.shape_cast %12 : vector<1x32x32xf32> to vector<32x32xf32>
    %14 = vector.extract_strided_slice %13 {offsets = [0, 0], sizes = [32, 8], strides = [1, 1]} : vector<32x32xf32> to vector<32x8xf32>
    %c5 = arith.constant 5 : index
    %c0_10 = arith.constant 0 : index
    %c0_11 = arith.constant 0 : index
    %15 = vector.load %arg4[%c5, %c0_10, %c0_11] : memref<9x32x32xf32, #tpu.memory_space<vmem>>, vector<1x32x32xf32>
    %16 = vector.shape_cast %15 : vector<1x32x32xf32> to vector<32x32xf32>
    %c6 = arith.constant 6 : index
    %c0_12 = arith.constant 0 : index
    %c0_13 = arith.constant 0 : index
    %17 = vector.load %arg4[%c6, %c0_12, %c0_13] : memref<9x32x32xf32, #tpu.memory_space<vmem>>, vector<1x32x32xf32>
    %18 = vector.shape_cast %17 : vector<1x32x32xf32> to vector<32x32xf32>
    %19 = vector.extract_strided_slice %18 {offsets = [0, 0], sizes = [32, 8], strides = [1, 1]} : vector<32x32xf32> to vector<32x8xf32>
    %c7 = arith.constant 7 : index
    %c0_14 = arith.constant 0 : index
    %c0_15 = arith.constant 0 : index
    %20 = vector.load %arg4[%c7, %c0_14, %c0_15] : memref<9x32x32xf32, #tpu.memory_space<vmem>>, vector<1x32x32xf32>
    %21 = vector.shape_cast %20 : vector<1x32x32xf32> to vector<32x32xf32>
    %22 = vector.extract_strided_slice %21 {offsets = [0, 0], sizes = [8, 32], strides = [1, 1]} : vector<32x32xf32> to vector<8x32xf32>
    %c8 = arith.constant 8 : index
    %c0_16 = arith.constant 0 : index
    %c0_17 = arith.constant 0 : index
    %23 = vector.load %arg4[%c8, %c0_16, %c0_17] : memref<9x32x32xf32, #tpu.memory_space<vmem>>, vector<1x32x32xf32>
    %24 = vector.shape_cast %23 : vector<1x32x32xf32> to vector<32x32xf32>
    %25 = vector.extract_strided_slice %24 {offsets = [0, 0], sizes = [32, 6], strides = [1, 1]} : vector<32x32xf32> to vector<32x6xf32>
    %c0_18 = arith.constant 0 : index
    %c0_19 = arith.constant 0 : index
    %26 = vector.load %arg2[%c0_18, %c0_19] : memref<6x1xf32, #tpu.memory_space<vmem>>, vector<6x1xf32>
    %c0_20 = arith.constant 0 : index
    %c0_21 = arith.constant 0 : index
    %27 = vector.load %arg0[%c0_20, %c0_21] : memref<6x32xf32, #tpu.memory_space<vmem>>, vector<6x32xf32>
    %c0_22 = arith.constant 0 : index
    %c0_23 = arith.constant 0 : index
    %28 = vector.load %arg1[%c0_22, %c0_23] : memref<6x32xf32, #tpu.memory_space<vmem>>, vector<6x32xf32>
    %29 = arith.subf %28, %27 : vector<6x32xf32>
    %30 = vector.broadcast %26 : vector<6x1xf32> to vector<6x32xf32>
    %31 = arith.mulf %30, %29 : vector<6x32xf32>
    %32 = arith.addf %27, %31 : vector<6x32xf32>
    %c0_24 = arith.constant 0 : index
    %c0_25 = arith.constant 0 : index
    %33 = vector.load %arg12[%c0_24, %c0_25] : memref<13x32xf32, #tpu.memory_space<vmem>>, vector<1x32xf32>
    %c0_26 = arith.constant 0 : index
    %c0_27 = arith.constant 0 : index
    %34 = vector.load %arg13[%c0_26, %c0_27] : memref<13x32xf32, #tpu.memory_space<vmem>>, vector<1x32xf32>
    %cst = arith.constant dense<0.000000e+00> : vector<6xf32>
    %35 = vector.multi_reduction <add>, %32, %cst [1] : vector<6x32xf32> to vector<6xf32>
    %36 = vector.shape_cast %35 : vector<6xf32> to vector<6x1xf32>
    %cst_28 = arith.constant 3.200000e+01 : f32
    %37 = vector.broadcast %cst_28 : f32 to vector<6x1xf32>
    %38 = arith.divf %36, %37 : vector<6x1xf32>
    %39 = vector.broadcast %38 : vector<6x1xf32> to vector<6x32xf32>
    %40 = arith.subf %32, %39 : vector<6x32xf32>
    %41 = arith.mulf %40, %40 : vector<6x32xf32>
    %cst_29 = arith.constant dense<0.000000e+00> : vector<6xf32>
    %42 = vector.multi_reduction <add>, %41, %cst_29 [1] : vector<6x32xf32> to vector<6xf32>
    %43 = vector.shape_cast %42 : vector<6xf32> to vector<6x1xf32>
    %cst_30 = arith.constant 3.200000e+01 : f32
    %44 = vector.broadcast %cst_30 : f32 to vector<6x1xf32>
    %45 = arith.divf %43, %44 : vector<6x1xf32>
    %cst_31 = arith.constant 9.99999974E-6 : f32
    %46 = vector.broadcast %cst_31 : f32 to vector<6x1xf32>
    %47 = arith.addf %45, %46 : vector<6x1xf32>
    %48 = math.rsqrt %47 : vector<6x1xf32>
    %49 = vector.broadcast %48 : vector<6x1xf32> to vector<6x32xf32>
    %50 = arith.mulf %40, %49 : vector<6x32xf32>
    %51 = vector.broadcast %33 : vector<1x32xf32> to vector<6x32xf32>
    %52 = arith.mulf %50, %51 : vector<6x32xf32>
    %53 = vector.broadcast %34 : vector<1x32xf32> to vector<6x32xf32>
    %54 = arith.addf %52, %53 : vector<6x32xf32>
    %c0_32 = arith.constant 0 : index
    %c0_33 = arith.constant 0 : index
    %c0_34 = arith.constant 0 : index
    %55 = vector.load %arg5[%c0_32, %c0_33, %c0_34] : memref<6x32x96xf32, #tpu.memory_space<vmem>>, vector<1x32x96xf32>
    %56 = vector.shape_cast %55 : vector<1x32x96xf32> to vector<32x96xf32>
    %c0_35 = arith.constant 0 : index
    %c0_36 = arith.constant 0 : index
    %57 = vector.load %arg6[%c0_35, %c0_36] : memref<6x96xf32, #tpu.memory_space<vmem>>, vector<1x96xf32>
    %cst_37 = arith.constant dense<0.000000e+00> : vector<6x96xf32>
    %58 = tpu.matmul %54, %56, %cst_37 {dimension_numbers = #tpu.dot_dimension_numbers<[1], [0], [0], [1], [0, 0, 1, 1], [], []>} : vector<6x32xf32>, vector<32x96xf32>, vector<6x96xf32> -> vector<6x96xf32>
    %59 = vector.broadcast %57 : vector<1x96xf32> to vector<6x96xf32>
    %60 = arith.addf %58, %59 : vector<6x96xf32>
    %61 = vector.extract_strided_slice %60 {offsets = [0, 0], sizes = [6, 32], strides = [1, 1]} : vector<6x96xf32> to vector<6x32xf32>
    %62 = vector.extract_strided_slice %60 {offsets = [0, 32], sizes = [6, 32], strides = [1, 1]} : vector<6x96xf32> to vector<6x32xf32>
    %63 = vector.extract_strided_slice %60 {offsets = [0, 64], sizes = [6, 32], strides = [1, 1]} : vector<6x96xf32> to vector<6x32xf32>
    %cst_38 = arith.constant dense<0.000000e+00> : vector<24x32xf32>
    %64 = tpu.matmul %2, %61, %cst_38 {dimension_numbers = #tpu.dot_dimension_numbers<[1], [0], [0], [1], [0, 0, 1, 1], [], []>} : vector<24x6xf32>, vector<6x32xf32>, vector<24x32xf32> -> vector<24x32xf32>
    %65 = arith.mulf %64, %5 : vector<24x32xf32>
    %cst_39 = arith.constant dense<0.000000e+00> : vector<24x6xf32>
    %66 = tpu.matmul %65, %62, %cst_39 {dimension_numbers = #tpu.dot_dimension_numbers<[1], [1], [0], [0], [0, 0, 1, 0], [], []>} : vector<24x32xf32>, vector<6x32xf32>, vector<24x6xf32> -> vector<24x6xf32>
    %67 = math.exp %66 : vector<24x6xf32>
    %68 = arith.mulf %67, %8 : vector<24x6xf32>
    %cst_40 = arith.constant dense<0.000000e+00> : vector<24xf32>
    %69 = vector.multi_reduction <add>, %68, %cst_40 [1] : vector<24x6xf32> to vector<24xf32>
    %70 = vector.shape_cast %69 : vector<24xf32> to vector<24x1xf32>
    %71 = tpu.reciprocal %70 {approx = true} : vector<24x1xf32> -> vector<24x1xf32>
    %72 = vector.broadcast %71 : vector<24x1xf32> to vector<24x6xf32>
    %73 = arith.mulf %68, %72 : vector<24x6xf32>
    %cst_41 = arith.constant dense<0.000000e+00> : vector<24x32xf32>
    %74 = tpu.matmul %73, %63, %cst_41 {dimension_numbers = #tpu.dot_dimension_numbers<[1], [0], [0], [1], [0, 0, 1, 1], [], []>} : vector<24x6xf32>, vector<6x32xf32>, vector<24x32xf32> -> vector<24x32xf32>
    %75 = arith.mulf %74, %5 : vector<24x32xf32>
    %cst_42 = arith.constant dense<0.000000e+00> : vector<6x32xf32>
    %76 = tpu.matmul %11, %75, %cst_42 {dimension_numbers = #tpu.dot_dimension_numbers<[1], [0], [0], [1], [0, 0, 1, 1], [], []>} : vector<6x24xf32>, vector<24x32xf32>, vector<6x32xf32> -> vector<6x32xf32>
    %c0_43 = arith.constant 0 : index
    %c0_44 = arith.constant 0 : index
    %c0_45 = arith.constant 0 : index
    %77 = vector.load %arg7[%c0_43, %c0_44, %c0_45] : memref<6x32x32xf32, #tpu.memory_space<vmem>>, vector<1x32x32xf32>
    %78 = vector.shape_cast %77 : vector<1x32x32xf32> to vector<32x32xf32>
    %cst_46 = arith.constant dense<0.000000e+00> : vector<6x32xf32>
    %79 = tpu.matmul %76, %78, %cst_46 {dimension_numbers = #tpu.dot_dimension_numbers<[1], [0], [0], [1], [0, 0, 1, 1], [], []>} : vector<6x32xf32>, vector<32x32xf32>, vector<6x32xf32> -> vector<6x32xf32>
    %c0_47 = arith.constant 0 : index
    %c0_48 = arith.constant 0 : index
    %80 = vector.load %arg8[%c0_47, %c0_48] : memref<10x32xf32, #tpu.memory_space<vmem>>, vector<1x32xf32>
    %81 = vector.broadcast %80 : vector<1x32xf32> to vector<6x32xf32>
    %82 = arith.addf %79, %81 : vector<6x32xf32>
    %83 = arith.addf %32, %82 : vector<6x32xf32>
    %c1_49 = arith.constant 1 : index
    %c0_50 = arith.constant 0 : index
    %84 = vector.load %arg12[%c1_49, %c0_50] : memref<13x32xf32, #tpu.memory_space<vmem>>, vector<1x32xf32>
    %c1_51 = arith.constant 1 : index
    %c0_52 = arith.constant 0 : index
    %85 = vector.load %arg13[%c1_51, %c0_52] : memref<13x32xf32, #tpu.memory_space<vmem>>, vector<1x32xf32>
    %cst_53 = arith.constant dense<0.000000e+00> : vector<6xf32>
    %86 = vector.multi_reduction <add>, %83, %cst_53 [1] : vector<6x32xf32> to vector<6xf32>
    %87 = vector.shape_cast %86 : vector<6xf32> to vector<6x1xf32>
    %cst_54 = arith.constant 3.200000e+01 : f32
    %88 = vector.broadcast %cst_54 : f32 to vector<6x1xf32>
    %89 = arith.divf %87, %88 : vector<6x1xf32>
    %90 = vector.broadcast %89 : vector<6x1xf32> to vector<6x32xf32>
    %91 = arith.subf %83, %90 : vector<6x32xf32>
    %92 = arith.mulf %91, %91 : vector<6x32xf32>
    %cst_55 = arith.constant dense<0.000000e+00> : vector<6xf32>
    %93 = vector.multi_reduction <add>, %92, %cst_55 [1] : vector<6x32xf32> to vector<6xf32>
    %94 = vector.shape_cast %93 : vector<6xf32> to vector<6x1xf32>
    %cst_56 = arith.constant 3.200000e+01 : f32
    %95 = vector.broadcast %cst_56 : f32 to vector<6x1xf32>
    %96 = arith.divf %94, %95 : vector<6x1xf32>
    %cst_57 = arith.constant 9.99999974E-6 : f32
    %97 = vector.broadcast %cst_57 : f32 to vector<6x1xf32>
    %98 = arith.addf %96, %97 : vector<6x1xf32>
    %99 = math.rsqrt %98 : vector<6x1xf32>
    %100 = vector.broadcast %99 : vector<6x1xf32> to vector<6x32xf32>
    %101 = arith.mulf %91, %100 : vector<6x32xf32>
    %102 = vector.broadcast %84 : vector<1x32xf32> to vector<6x32xf32>
    %103 = arith.mulf %101, %102 : vector<6x32xf32>
    %104 = vector.broadcast %85 : vector<1x32xf32> to vector<6x32xf32>
    %105 = arith.addf %103, %104 : vector<6x32xf32>
    %c0_58 = arith.constant 0 : index
    %c0_59 = arith.constant 0 : index
    %c0_60 = arith.constant 0 : index
    %106 = vector.load %arg9[%c0_58, %c0_59, %c0_60] : memref<4x32x64xf32, #tpu.memory_space<vmem>>, vector<1x32x64xf32>
    %107 = vector.shape_cast %106 : vector<1x32x64xf32> to vector<32x64xf32>
    %cst_61 = arith.constant dense<0.000000e+00> : vector<6x64xf32>
    %108 = tpu.matmul %105, %107, %cst_61 {dimension_numbers = #tpu.dot_dimension_numbers<[1], [0], [0], [1], [0, 0, 1, 1], [], []>} : vector<6x32xf32>, vector<32x64xf32>, vector<6x64xf32> -> vector<6x64xf32>
    %c0_62 = arith.constant 0 : index
    %c0_63 = arith.constant 0 : index
    %109 = vector.load %arg10[%c0_62, %c0_63] : memref<4x64xf32, #tpu.memory_space<vmem>>, vector<1x64xf32>
    %110 = vector.broadcast %109 : vector<1x64xf32> to vector<6x64xf32>
    %111 = arith.addf %108, %110 : vector<6x64xf32>
    %cst_64 = arith.constant 0.000000e+00 : f32
    %112 = vector.broadcast %cst_64 : f32 to vector<6x64xf32>
    %113 = arith.maximumf %111, %112 : vector<6x64xf32>
    %c0_65 = arith.constant 0 : index
    %c0_66 = arith.constant 0 : index
    %c0_67 = arith.constant 0 : index
    %114 = vector.load %arg11[%c0_65, %c0_66, %c0_67] : memref<4x64x32xf32, #tpu.memory_space<vmem>>, vector<1x64x32xf32>
    %115 = vector.shape_cast %114 : vector<1x64x32xf32> to vector<64x32xf32>
    %cst_68 = arith.constant dense<0.000000e+00> : vector<6x32xf32>
    %116 = tpu.matmul %113, %115, %cst_68 {dimension_numbers = #tpu.dot_dimension_numbers<[1], [0], [0], [1], [0, 0, 1, 1], [], []>} : vector<6x64xf32>, vector<64x32xf32>, vector<6x32xf32> -> vector<6x32xf32>
    %c6_69 = arith.constant 6 : index
    %c0_70 = arith.constant 0 : index
    %117 = vector.load %arg8[%c6_69, %c0_70] : memref<10x32xf32, #tpu.memory_space<vmem>>, vector<1x32xf32>
    %118 = vector.broadcast %117 : vector<1x32xf32> to vector<6x32xf32>
    %119 = arith.addf %116, %118 : vector<6x32xf32>
    %120 = arith.addf %83, %119 : vector<6x32xf32>
    %c2_71 = arith.constant 2 : index
    %c0_72 = arith.constant 0 : index
    %121 = vector.load %arg12[%c2_71, %c0_72] : memref<13x32xf32, #tpu.memory_space<vmem>>, vector<1x32xf32>
    %c2_73 = arith.constant 2 : index
    %c0_74 = arith.constant 0 : index
    %122 = vector.load %arg13[%c2_73, %c0_74] : memref<13x32xf32, #tpu.memory_space<vmem>>, vector<1x32xf32>
    %cst_75 = arith.constant dense<0.000000e+00> : vector<6xf32>
    %123 = vector.multi_reduction <add>, %120, %cst_75 [1] : vector<6x32xf32> to vector<6xf32>
    %124 = vector.shape_cast %123 : vector<6xf32> to vector<6x1xf32>
    %cst_76 = arith.constant 3.200000e+01 : f32
    %125 = vector.broadcast %cst_76 : f32 to vector<6x1xf32>
    %126 = arith.divf %124, %125 : vector<6x1xf32>
    %127 = vector.broadcast %126 : vector<6x1xf32> to vector<6x32xf32>
    %128 = arith.subf %120, %127 : vector<6x32xf32>
    %129 = arith.mulf %128, %128 : vector<6x32xf32>
    %cst_77 = arith.constant dense<0.000000e+00> : vector<6xf32>
    %130 = vector.multi_reduction <add>, %129, %cst_77 [1] : vector<6x32xf32> to vector<6xf32>
    %131 = vector.shape_cast %130 : vector<6xf32> to vector<6x1xf32>
    %cst_78 = arith.constant 3.200000e+01 : f32
    %132 = vector.broadcast %cst_78 : f32 to vector<6x1xf32>
    %133 = arith.divf %131, %132 : vector<6x1xf32>
    %cst_79 = arith.constant 9.99999974E-6 : f32
    %134 = vector.broadcast %cst_79 : f32 to vector<6x1xf32>
    %135 = arith.addf %133, %134 : vector<6x1xf32>
    %136 = math.rsqrt %135 : vector<6x1xf32>
    %137 = vector.broadcast %136 : vector<6x1xf32> to vector<6x32xf32>
    %138 = arith.mulf %128, %137 : vector<6x32xf32>
    %139 = vector.broadcast %121 : vector<1x32xf32> to vector<6x32xf32>
    %140 = arith.mulf %138, %139 : vector<6x32xf32>
    %141 = vector.broadcast %122 : vector<1x32xf32> to vector<6x32xf32>
    %142 = arith.addf %140, %141 : vector<6x32xf32>
    %c1_80 = arith.constant 1 : index
    %c0_81 = arith.constant 0 : index
    %c0_82 = arith.constant 0 : index
    %143 = vector.load %arg5[%c1_80, %c0_81, %c0_82] : memref<6x32x96xf32, #tpu.memory_space<vmem>>, vector<1x32x96xf32>
    %144 = vector.shape_cast %143 : vector<1x32x96xf32> to vector<32x96xf32>
    %c1_83 = arith.constant 1 : index
    %c0_84 = arith.constant 0 : index
    %145 = vector.load %arg6[%c1_83, %c0_84] : memref<6x96xf32, #tpu.memory_space<vmem>>, vector<1x96xf32>
    %cst_85 = arith.constant dense<0.000000e+00> : vector<6x96xf32>
    %146 = tpu.matmul %142, %144, %cst_85 {dimension_numbers = #tpu.dot_dimension_numbers<[1], [0], [0], [1], [0, 0, 1, 1], [], []>} : vector<6x32xf32>, vector<32x96xf32>, vector<6x96xf32> -> vector<6x96xf32>
    %147 = vector.broadcast %145 : vector<1x96xf32> to vector<6x96xf32>
    %148 = arith.addf %146, %147 : vector<6x96xf32>
    %149 = vector.extract_strided_slice %148 {offsets = [0, 0], sizes = [6, 32], strides = [1, 1]} : vector<6x96xf32> to vector<6x32xf32>
    %150 = vector.extract_strided_slice %148 {offsets = [0, 32], sizes = [6, 32], strides = [1, 1]} : vector<6x96xf32> to vector<6x32xf32>
    %151 = vector.extract_strided_slice %148 {offsets = [0, 64], sizes = [6, 32], strides = [1, 1]} : vector<6x96xf32> to vector<6x32xf32>
    %cst_86 = arith.constant dense<0.000000e+00> : vector<24x32xf32>
    %152 = tpu.matmul %2, %149, %cst_86 {dimension_numbers = #tpu.dot_dimension_numbers<[1], [0], [0], [1], [0, 0, 1, 1], [], []>} : vector<24x6xf32>, vector<6x32xf32>, vector<24x32xf32> -> vector<24x32xf32>
    %153 = arith.mulf %152, %5 : vector<24x32xf32>
    %cst_87 = arith.constant dense<0.000000e+00> : vector<24x6xf32>
    %154 = tpu.matmul %153, %150, %cst_87 {dimension_numbers = #tpu.dot_dimension_numbers<[1], [1], [0], [0], [0, 0, 1, 0], [], []>} : vector<24x32xf32>, vector<6x32xf32>, vector<24x6xf32> -> vector<24x6xf32>
    %155 = math.exp %154 : vector<24x6xf32>
    %156 = arith.mulf %155, %8 : vector<24x6xf32>
    %cst_88 = arith.constant dense<0.000000e+00> : vector<24xf32>
    %157 = vector.multi_reduction <add>, %156, %cst_88 [1] : vector<24x6xf32> to vector<24xf32>
    %158 = vector.shape_cast %157 : vector<24xf32> to vector<24x1xf32>
    %159 = tpu.reciprocal %158 {approx = true} : vector<24x1xf32> -> vector<24x1xf32>
    %160 = vector.broadcast %159 : vector<24x1xf32> to vector<24x6xf32>
    %161 = arith.mulf %156, %160 : vector<24x6xf32>
    %cst_89 = arith.constant dense<0.000000e+00> : vector<24x32xf32>
    %162 = tpu.matmul %161, %151, %cst_89 {dimension_numbers = #tpu.dot_dimension_numbers<[1], [0], [0], [1], [0, 0, 1, 1], [], []>} : vector<24x6xf32>, vector<6x32xf32>, vector<24x32xf32> -> vector<24x32xf32>
    %163 = arith.mulf %162, %5 : vector<24x32xf32>
    %cst_90 = arith.constant dense<0.000000e+00> : vector<6x32xf32>
    %164 = tpu.matmul %11, %163, %cst_90 {dimension_numbers = #tpu.dot_dimension_numbers<[1], [0], [0], [1], [0, 0, 1, 1], [], []>} : vector<6x24xf32>, vector<24x32xf32>, vector<6x32xf32> -> vector<6x32xf32>
    %c1_91 = arith.constant 1 : index
    %c0_92 = arith.constant 0 : index
    %c0_93 = arith.constant 0 : index
    %165 = vector.load %arg7[%c1_91, %c0_92, %c0_93] : memref<6x32x32xf32, #tpu.memory_space<vmem>>, vector<1x32x32xf32>
    %166 = vector.shape_cast %165 : vector<1x32x32xf32> to vector<32x32xf32>
    %cst_94 = arith.constant dense<0.000000e+00> : vector<6x32xf32>
    %167 = tpu.matmul %164, %166, %cst_94 {dimension_numbers = #tpu.dot_dimension_numbers<[1], [0], [0], [1], [0, 0, 1, 1], [], []>} : vector<6x32xf32>, vector<32x32xf32>, vector<6x32xf32> -> vector<6x32xf32>
    %c1_95 = arith.constant 1 : index
    %c0_96 = arith.constant 0 : index
    %168 = vector.load %arg8[%c1_95, %c0_96] : memref<10x32xf32, #tpu.memory_space<vmem>>, vector<1x32xf32>
    %169 = vector.broadcast %168 : vector<1x32xf32> to vector<6x32xf32>
    %170 = arith.addf %167, %169 : vector<6x32xf32>
    %171 = arith.addf %120, %170 : vector<6x32xf32>
    %c3_97 = arith.constant 3 : index
    %c0_98 = arith.constant 0 : index
    %172 = vector.load %arg12[%c3_97, %c0_98] : memref<13x32xf32, #tpu.memory_space<vmem>>, vector<1x32xf32>
    %c3_99 = arith.constant 3 : index
    %c0_100 = arith.constant 0 : index
    %173 = vector.load %arg13[%c3_99, %c0_100] : memref<13x32xf32, #tpu.memory_space<vmem>>, vector<1x32xf32>
    %cst_101 = arith.constant dense<0.000000e+00> : vector<6xf32>
    %174 = vector.multi_reduction <add>, %171, %cst_101 [1] : vector<6x32xf32> to vector<6xf32>
    %175 = vector.shape_cast %174 : vector<6xf32> to vector<6x1xf32>
    %cst_102 = arith.constant 3.200000e+01 : f32
    %176 = vector.broadcast %cst_102 : f32 to vector<6x1xf32>
    %177 = arith.divf %175, %176 : vector<6x1xf32>
    %178 = vector.broadcast %177 : vector<6x1xf32> to vector<6x32xf32>
    %179 = arith.subf %171, %178 : vector<6x32xf32>
    %180 = arith.mulf %179, %179 : vector<6x32xf32>
    %cst_103 = arith.constant dense<0.000000e+00> : vector<6xf32>
    %181 = vector.multi_reduction <add>, %180, %cst_103 [1] : vector<6x32xf32> to vector<6xf32>
    %182 = vector.shape_cast %181 : vector<6xf32> to vector<6x1xf32>
    %cst_104 = arith.constant 3.200000e+01 : f32
    %183 = vector.broadcast %cst_104 : f32 to vector<6x1xf32>
    %184 = arith.divf %182, %183 : vector<6x1xf32>
    %cst_105 = arith.constant 9.99999974E-6 : f32
    %185 = vector.broadcast %cst_105 : f32 to vector<6x1xf32>
    %186 = arith.addf %184, %185 : vector<6x1xf32>
    %187 = math.rsqrt %186 : vector<6x1xf32>
    %188 = vector.broadcast %187 : vector<6x1xf32> to vector<6x32xf32>
    %189 = arith.mulf %179, %188 : vector<6x32xf32>
    %190 = vector.broadcast %172 : vector<1x32xf32> to vector<6x32xf32>
    %191 = arith.mulf %189, %190 : vector<6x32xf32>
    %192 = vector.broadcast %173 : vector<1x32xf32> to vector<6x32xf32>
    %193 = arith.addf %191, %192 : vector<6x32xf32>
    %c1_106 = arith.constant 1 : index
    %c0_107 = arith.constant 0 : index
    %c0_108 = arith.constant 0 : index
    %194 = vector.load %arg9[%c1_106, %c0_107, %c0_108] : memref<4x32x64xf32, #tpu.memory_space<vmem>>, vector<1x32x64xf32>
    %195 = vector.shape_cast %194 : vector<1x32x64xf32> to vector<32x64xf32>
    %cst_109 = arith.constant dense<0.000000e+00> : vector<6x64xf32>
    %196 = tpu.matmul %193, %195, %cst_109 {dimension_numbers = #tpu.dot_dimension_numbers<[1], [0], [0], [1], [0, 0, 1, 1], [], []>} : vector<6x32xf32>, vector<32x64xf32>, vector<6x64xf32> -> vector<6x64xf32>
    %c1_110 = arith.constant 1 : index
    %c0_111 = arith.constant 0 : index
    %197 = vector.load %arg10[%c1_110, %c0_111] : memref<4x64xf32, #tpu.memory_space<vmem>>, vector<1x64xf32>
    %198 = vector.broadcast %197 : vector<1x64xf32> to vector<6x64xf32>
    %199 = arith.addf %196, %198 : vector<6x64xf32>
    %cst_112 = arith.constant 0.000000e+00 : f32
    %200 = vector.broadcast %cst_112 : f32 to vector<6x64xf32>
    %201 = arith.maximumf %199, %200 : vector<6x64xf32>
    %c1_113 = arith.constant 1 : index
    %c0_114 = arith.constant 0 : index
    %c0_115 = arith.constant 0 : index
    %202 = vector.load %arg11[%c1_113, %c0_114, %c0_115] : memref<4x64x32xf32, #tpu.memory_space<vmem>>, vector<1x64x32xf32>
    %203 = vector.shape_cast %202 : vector<1x64x32xf32> to vector<64x32xf32>
    %cst_116 = arith.constant dense<0.000000e+00> : vector<6x32xf32>
    %204 = tpu.matmul %201, %203, %cst_116 {dimension_numbers = #tpu.dot_dimension_numbers<[1], [0], [0], [1], [0, 0, 1, 1], [], []>} : vector<6x64xf32>, vector<64x32xf32>, vector<6x32xf32> -> vector<6x32xf32>
    %c7_117 = arith.constant 7 : index
    %c0_118 = arith.constant 0 : index
    %205 = vector.load %arg8[%c7_117, %c0_118] : memref<10x32xf32, #tpu.memory_space<vmem>>, vector<1x32xf32>
    %206 = vector.broadcast %205 : vector<1x32xf32> to vector<6x32xf32>
    %207 = arith.addf %204, %206 : vector<6x32xf32>
    %208 = arith.addf %171, %207 : vector<6x32xf32>
    %c4_119 = arith.constant 4 : index
    %c0_120 = arith.constant 0 : index
    %209 = vector.load %arg12[%c4_119, %c0_120] : memref<13x32xf32, #tpu.memory_space<vmem>>, vector<1x32xf32>
    %c4_121 = arith.constant 4 : index
    %c0_122 = arith.constant 0 : index
    %210 = vector.load %arg13[%c4_121, %c0_122] : memref<13x32xf32, #tpu.memory_space<vmem>>, vector<1x32xf32>
    %cst_123 = arith.constant dense<0.000000e+00> : vector<6xf32>
    %211 = vector.multi_reduction <add>, %208, %cst_123 [1] : vector<6x32xf32> to vector<6xf32>
    %212 = vector.shape_cast %211 : vector<6xf32> to vector<6x1xf32>
    %cst_124 = arith.constant 3.200000e+01 : f32
    %213 = vector.broadcast %cst_124 : f32 to vector<6x1xf32>
    %214 = arith.divf %212, %213 : vector<6x1xf32>
    %215 = vector.broadcast %214 : vector<6x1xf32> to vector<6x32xf32>
    %216 = arith.subf %208, %215 : vector<6x32xf32>
    %217 = arith.mulf %216, %216 : vector<6x32xf32>
    %cst_125 = arith.constant dense<0.000000e+00> : vector<6xf32>
    %218 = vector.multi_reduction <add>, %217, %cst_125 [1] : vector<6x32xf32> to vector<6xf32>
    %219 = vector.shape_cast %218 : vector<6xf32> to vector<6x1xf32>
    %cst_126 = arith.constant 3.200000e+01 : f32
    %220 = vector.broadcast %cst_126 : f32 to vector<6x1xf32>
    %221 = arith.divf %219, %220 : vector<6x1xf32>
    %cst_127 = arith.constant 9.99999974E-6 : f32
    %222 = vector.broadcast %cst_127 : f32 to vector<6x1xf32>
    %223 = arith.addf %221, %222 : vector<6x1xf32>
    %224 = math.rsqrt %223 : vector<6x1xf32>
    %225 = vector.broadcast %224 : vector<6x1xf32> to vector<6x32xf32>
    %226 = arith.mulf %216, %225 : vector<6x32xf32>
    %227 = vector.broadcast %209 : vector<1x32xf32> to vector<6x32xf32>
    %228 = arith.mulf %226, %227 : vector<6x32xf32>
    %229 = vector.broadcast %210 : vector<1x32xf32> to vector<6x32xf32>
    %230 = arith.addf %228, %229 : vector<6x32xf32>
    %c0_128 = arith.constant 0 : index
    %c0_129 = arith.constant 0 : index
    %231 = vector.load %arg3[%c0_128, %c0_129] : memref<8x32xf32, #tpu.memory_space<vmem>>, vector<8x32xf32>
    %c5_130 = arith.constant 5 : index
    %c0_131 = arith.constant 0 : index
    %232 = vector.load %arg12[%c5_130, %c0_131] : memref<13x32xf32, #tpu.memory_space<vmem>>, vector<1x32xf32>
    %c5_132 = arith.constant 5 : index
    %c0_133 = arith.constant 0 : index
    %233 = vector.load %arg13[%c5_132, %c0_133] : memref<13x32xf32, #tpu.memory_space<vmem>>, vector<1x32xf32>
    %cst_134 = arith.constant dense<0.000000e+00> : vector<8xf32>
    %234 = vector.multi_reduction <add>, %231, %cst_134 [1] : vector<8x32xf32> to vector<8xf32>
    %235 = vector.shape_cast %234 : vector<8xf32> to vector<8x1xf32>
    %cst_135 = arith.constant 3.200000e+01 : f32
    %236 = vector.broadcast %cst_135 : f32 to vector<8x1xf32>
    %237 = arith.divf %235, %236 : vector<8x1xf32>
    %238 = vector.broadcast %237 : vector<8x1xf32> to vector<8x32xf32>
    %239 = arith.subf %231, %238 : vector<8x32xf32>
    %240 = arith.mulf %239, %239 : vector<8x32xf32>
    %cst_136 = arith.constant dense<0.000000e+00> : vector<8xf32>
    %241 = vector.multi_reduction <add>, %240, %cst_136 [1] : vector<8x32xf32> to vector<8xf32>
    %242 = vector.shape_cast %241 : vector<8xf32> to vector<8x1xf32>
    %cst_137 = arith.constant 3.200000e+01 : f32
    %243 = vector.broadcast %cst_137 : f32 to vector<8x1xf32>
    %244 = arith.divf %242, %243 : vector<8x1xf32>
    %cst_138 = arith.constant 9.99999974E-6 : f32
    %245 = vector.broadcast %cst_138 : f32 to vector<8x1xf32>
    %246 = arith.addf %244, %245 : vector<8x1xf32>
    %247 = math.rsqrt %246 : vector<8x1xf32>
    %248 = vector.broadcast %247 : vector<8x1xf32> to vector<8x32xf32>
    %249 = arith.mulf %239, %248 : vector<8x32xf32>
    %250 = vector.broadcast %232 : vector<1x32xf32> to vector<8x32xf32>
    %251 = arith.mulf %249, %250 : vector<8x32xf32>
    %252 = vector.broadcast %233 : vector<1x32xf32> to vector<8x32xf32>
    %253 = arith.addf %251, %252 : vector<8x32xf32>
    %c2_139 = arith.constant 2 : index
    %c0_140 = arith.constant 0 : index
    %c0_141 = arith.constant 0 : index
    %254 = vector.load %arg5[%c2_139, %c0_140, %c0_141] : memref<6x32x96xf32, #tpu.memory_space<vmem>>, vector<1x32x96xf32>
    %255 = vector.shape_cast %254 : vector<1x32x96xf32> to vector<32x96xf32>
    %c2_142 = arith.constant 2 : index
    %c0_143 = arith.constant 0 : index
    %256 = vector.load %arg6[%c2_142, %c0_143] : memref<6x96xf32, #tpu.memory_space<vmem>>, vector<1x96xf32>
    %cst_144 = arith.constant dense<0.000000e+00> : vector<8x96xf32>
    %257 = tpu.matmul %253, %255, %cst_144 {dimension_numbers = #tpu.dot_dimension_numbers<[1], [0], [0], [1], [0, 0, 1, 1], [], []>} : vector<8x32xf32>, vector<32x96xf32>, vector<8x96xf32> -> vector<8x96xf32>
    %258 = vector.broadcast %256 : vector<1x96xf32> to vector<8x96xf32>
    %259 = arith.addf %257, %258 : vector<8x96xf32>
    %260 = vector.extract_strided_slice %259 {offsets = [0, 0], sizes = [8, 32], strides = [1, 1]} : vector<8x96xf32> to vector<8x32xf32>
    %261 = vector.extract_strided_slice %259 {offsets = [0, 32], sizes = [8, 32], strides = [1, 1]} : vector<8x96xf32> to vector<8x32xf32>
    %262 = vector.extract_strided_slice %259 {offsets = [0, 64], sizes = [8, 32], strides = [1, 1]} : vector<8x96xf32> to vector<8x32xf32>
    %cst_145 = arith.constant dense<0.000000e+00> : vector<32x32xf32>
    %263 = tpu.matmul %14, %260, %cst_145 {dimension_numbers = #tpu.dot_dimension_numbers<[1], [0], [0], [1], [0, 0, 1, 1], [], []>} : vector<32x8xf32>, vector<8x32xf32>, vector<32x32xf32> -> vector<32x32xf32>
    %264 = arith.mulf %263, %16 : vector<32x32xf32>
    %cst_146 = arith.constant dense<0.000000e+00> : vector<32x8xf32>
    %265 = tpu.matmul %264, %261, %cst_146 {dimension_numbers = #tpu.dot_dimension_numbers<[1], [1], [0], [0], [0, 0, 1, 0], [], []>} : vector<32x32xf32>, vector<8x32xf32>, vector<32x8xf32> -> vector<32x8xf32>
    %266 = math.exp %265 : vector<32x8xf32>
    %267 = arith.mulf %266, %19 : vector<32x8xf32>
    %cst_147 = arith.constant dense<0.000000e+00> : vector<32xf32>
    %268 = vector.multi_reduction <add>, %267, %cst_147 [1] : vector<32x8xf32> to vector<32xf32>
    %269 = vector.shape_cast %268 : vector<32xf32> to vector<32x1xf32>
    %270 = tpu.reciprocal %269 {approx = true} : vector<32x1xf32> -> vector<32x1xf32>
    %271 = vector.broadcast %270 : vector<32x1xf32> to vector<32x8xf32>
    %272 = arith.mulf %267, %271 : vector<32x8xf32>
    %cst_148 = arith.constant dense<0.000000e+00> : vector<32x32xf32>
    %273 = tpu.matmul %272, %262, %cst_148 {dimension_numbers = #tpu.dot_dimension_numbers<[1], [0], [0], [1], [0, 0, 1, 1], [], []>} : vector<32x8xf32>, vector<8x32xf32>, vector<32x32xf32> -> vector<32x32xf32>
    %274 = arith.mulf %273, %16 : vector<32x32xf32>
    %cst_149 = arith.constant dense<0.000000e+00> : vector<8x32xf32>
    %275 = tpu.matmul %22, %274, %cst_149 {dimension_numbers = #tpu.dot_dimension_numbers<[1], [0], [0], [1], [0, 0, 1, 1], [], []>} : vector<8x32xf32>, vector<32x32xf32>, vector<8x32xf32> -> vector<8x32xf32>
    %c2_150 = arith.constant 2 : index
    %c0_151 = arith.constant 0 : index
    %c0_152 = arith.constant 0 : index
    %276 = vector.load %arg7[%c2_150, %c0_151, %c0_152] : memref<6x32x32xf32, #tpu.memory_space<vmem>>, vector<1x32x32xf32>
    %277 = vector.shape_cast %276 : vector<1x32x32xf32> to vector<32x32xf32>
    %cst_153 = arith.constant dense<0.000000e+00> : vector<8x32xf32>
    %278 = tpu.matmul %275, %277, %cst_153 {dimension_numbers = #tpu.dot_dimension_numbers<[1], [0], [0], [1], [0, 0, 1, 1], [], []>} : vector<8x32xf32>, vector<32x32xf32>, vector<8x32xf32> -> vector<8x32xf32>
    %c2_154 = arith.constant 2 : index
    %c0_155 = arith.constant 0 : index
    %279 = vector.load %arg8[%c2_154, %c0_155] : memref<10x32xf32, #tpu.memory_space<vmem>>, vector<1x32xf32>
    %280 = vector.broadcast %279 : vector<1x32xf32> to vector<8x32xf32>
    %281 = arith.addf %278, %280 : vector<8x32xf32>
    %282 = arith.addf %231, %281 : vector<8x32xf32>
    %c6_156 = arith.constant 6 : index
    %c0_157 = arith.constant 0 : index
    %283 = vector.load %arg12[%c6_156, %c0_157] : memref<13x32xf32, #tpu.memory_space<vmem>>, vector<1x32xf32>
    %c6_158 = arith.constant 6 : index
    %c0_159 = arith.constant 0 : index
    %284 = vector.load %arg13[%c6_158, %c0_159] : memref<13x32xf32, #tpu.memory_space<vmem>>, vector<1x32xf32>
    %cst_160 = arith.constant dense<0.000000e+00> : vector<8xf32>
    %285 = vector.multi_reduction <add>, %282, %cst_160 [1] : vector<8x32xf32> to vector<8xf32>
    %286 = vector.shape_cast %285 : vector<8xf32> to vector<8x1xf32>
    %cst_161 = arith.constant 3.200000e+01 : f32
    %287 = vector.broadcast %cst_161 : f32 to vector<8x1xf32>
    %288 = arith.divf %286, %287 : vector<8x1xf32>
    %289 = vector.broadcast %288 : vector<8x1xf32> to vector<8x32xf32>
    %290 = arith.subf %282, %289 : vector<8x32xf32>
    %291 = arith.mulf %290, %290 : vector<8x32xf32>
    %cst_162 = arith.constant dense<0.000000e+00> : vector<8xf32>
    %292 = vector.multi_reduction <add>, %291, %cst_162 [1] : vector<8x32xf32> to vector<8xf32>
    %293 = vector.shape_cast %292 : vector<8xf32> to vector<8x1xf32>
    %cst_163 = arith.constant 3.200000e+01 : f32
    %294 = vector.broadcast %cst_163 : f32 to vector<8x1xf32>
    %295 = arith.divf %293, %294 : vector<8x1xf32>
    %cst_164 = arith.constant 9.99999974E-6 : f32
    %296 = vector.broadcast %cst_164 : f32 to vector<8x1xf32>
    %297 = arith.addf %295, %296 : vector<8x1xf32>
    %298 = math.rsqrt %297 : vector<8x1xf32>
    %299 = vector.broadcast %298 : vector<8x1xf32> to vector<8x32xf32>
    %300 = arith.mulf %290, %299 : vector<8x32xf32>
    %301 = vector.broadcast %283 : vector<1x32xf32> to vector<8x32xf32>
    %302 = arith.mulf %300, %301 : vector<8x32xf32>
    %303 = vector.broadcast %284 : vector<1x32xf32> to vector<8x32xf32>
    %304 = arith.addf %302, %303 : vector<8x32xf32>
    %c3_165 = arith.constant 3 : index
    %c0_166 = arith.constant 0 : index
    %c0_167 = arith.constant 0 : index
    %305 = vector.load %arg5[%c3_165, %c0_166, %c0_167] : memref<6x32x96xf32, #tpu.memory_space<vmem>>, vector<1x32x96xf32>
    %306 = vector.shape_cast %305 : vector<1x32x96xf32> to vector<32x96xf32>
    %c3_168 = arith.constant 3 : index
    %c0_169 = arith.constant 0 : index
    %307 = vector.load %arg6[%c3_168, %c0_169] : memref<6x96xf32, #tpu.memory_space<vmem>>, vector<1x96xf32>
    %cst_170 = arith.constant dense<0.000000e+00> : vector<8x96xf32>
    %308 = tpu.matmul %304, %306, %cst_170 {dimension_numbers = #tpu.dot_dimension_numbers<[1], [0], [0], [1], [0, 0, 1, 1], [], []>} : vector<8x32xf32>, vector<32x96xf32>, vector<8x96xf32> -> vector<8x96xf32>
    %309 = vector.broadcast %307 : vector<1x96xf32> to vector<8x96xf32>
    %310 = arith.addf %308, %309 : vector<8x96xf32>
    %cst_171 = arith.constant dense<0.000000e+00> : vector<6x96xf32>
    %311 = tpu.matmul %230, %306, %cst_171 {dimension_numbers = #tpu.dot_dimension_numbers<[1], [0], [0], [1], [0, 0, 1, 1], [], []>} : vector<6x32xf32>, vector<32x96xf32>, vector<6x96xf32> -> vector<6x96xf32>
    %312 = vector.broadcast %307 : vector<1x96xf32> to vector<6x96xf32>
    %313 = arith.addf %311, %312 : vector<6x96xf32>
    %314 = vector.extract_strided_slice %310 {offsets = [0, 0], sizes = [8, 32], strides = [1, 1]} : vector<8x96xf32> to vector<8x32xf32>
    %315 = vector.extract_strided_slice %313 {offsets = [0, 32], sizes = [6, 32], strides = [1, 1]} : vector<6x96xf32> to vector<6x32xf32>
    %316 = vector.extract_strided_slice %313 {offsets = [0, 64], sizes = [6, 32], strides = [1, 1]} : vector<6x96xf32> to vector<6x32xf32>
    %cst_172 = arith.constant dense<0.000000e+00> : vector<32x32xf32>
    %317 = tpu.matmul %14, %314, %cst_172 {dimension_numbers = #tpu.dot_dimension_numbers<[1], [0], [0], [1], [0, 0, 1, 1], [], []>} : vector<32x8xf32>, vector<8x32xf32>, vector<32x32xf32> -> vector<32x32xf32>
    %318 = arith.mulf %317, %16 : vector<32x32xf32>
    %cst_173 = arith.constant dense<0.000000e+00> : vector<32x6xf32>
    %319 = tpu.matmul %318, %315, %cst_173 {dimension_numbers = #tpu.dot_dimension_numbers<[1], [1], [0], [0], [0, 0, 1, 0], [], []>} : vector<32x32xf32>, vector<6x32xf32>, vector<32x6xf32> -> vector<32x6xf32>
    %320 = math.exp %319 : vector<32x6xf32>
    %321 = arith.mulf %320, %25 : vector<32x6xf32>
    %cst_174 = arith.constant dense<0.000000e+00> : vector<32xf32>
    %322 = vector.multi_reduction <add>, %321, %cst_174 [1] : vector<32x6xf32> to vector<32xf32>
    %323 = vector.shape_cast %322 : vector<32xf32> to vector<32x1xf32>
    %324 = tpu.reciprocal %323 {approx = true} : vector<32x1xf32> -> vector<32x1xf32>
    %325 = vector.broadcast %324 : vector<32x1xf32> to vector<32x6xf32>
    %326 = arith.mulf %321, %325 : vector<32x6xf32>
    %cst_175 = arith.constant dense<0.000000e+00> : vector<32x32xf32>
    %327 = tpu.matmul %326, %316, %cst_175 {dimension_numbers = #tpu.dot_dimension_numbers<[1], [0], [0], [1], [0, 0, 1, 1], [], []>} : vector<32x6xf32>, vector<6x32xf32>, vector<32x32xf32> -> vector<32x32xf32>
    %328 = arith.mulf %327, %16 : vector<32x32xf32>
    %cst_176 = arith.constant dense<0.000000e+00> : vector<8x32xf32>
    %329 = tpu.matmul %22, %328, %cst_176 {dimension_numbers = #tpu.dot_dimension_numbers<[1], [0], [0], [1], [0, 0, 1, 1], [], []>} : vector<8x32xf32>, vector<32x32xf32>, vector<8x32xf32> -> vector<8x32xf32>
    %c3_177 = arith.constant 3 : index
    %c0_178 = arith.constant 0 : index
    %c0_179 = arith.constant 0 : index
    %330 = vector.load %arg7[%c3_177, %c0_178, %c0_179] : memref<6x32x32xf32, #tpu.memory_space<vmem>>, vector<1x32x32xf32>
    %331 = vector.shape_cast %330 : vector<1x32x32xf32> to vector<32x32xf32>
    %cst_180 = arith.constant dense<0.000000e+00> : vector<8x32xf32>
    %332 = tpu.matmul %329, %331, %cst_180 {dimension_numbers = #tpu.dot_dimension_numbers<[1], [0], [0], [1], [0, 0, 1, 1], [], []>} : vector<8x32xf32>, vector<32x32xf32>, vector<8x32xf32> -> vector<8x32xf32>
    %c3_181 = arith.constant 3 : index
    %c0_182 = arith.constant 0 : index
    %333 = vector.load %arg8[%c3_181, %c0_182] : memref<10x32xf32, #tpu.memory_space<vmem>>, vector<1x32xf32>
    %334 = vector.broadcast %333 : vector<1x32xf32> to vector<8x32xf32>
    %335 = arith.addf %332, %334 : vector<8x32xf32>
    %336 = arith.addf %282, %335 : vector<8x32xf32>
    %c7_183 = arith.constant 7 : index
    %c0_184 = arith.constant 0 : index
    %337 = vector.load %arg12[%c7_183, %c0_184] : memref<13x32xf32, #tpu.memory_space<vmem>>, vector<1x32xf32>
    %c7_185 = arith.constant 7 : index
    %c0_186 = arith.constant 0 : index
    %338 = vector.load %arg13[%c7_185, %c0_186] : memref<13x32xf32, #tpu.memory_space<vmem>>, vector<1x32xf32>
    %cst_187 = arith.constant dense<0.000000e+00> : vector<8xf32>
    %339 = vector.multi_reduction <add>, %336, %cst_187 [1] : vector<8x32xf32> to vector<8xf32>
    %340 = vector.shape_cast %339 : vector<8xf32> to vector<8x1xf32>
    %cst_188 = arith.constant 3.200000e+01 : f32
    %341 = vector.broadcast %cst_188 : f32 to vector<8x1xf32>
    %342 = arith.divf %340, %341 : vector<8x1xf32>
    %343 = vector.broadcast %342 : vector<8x1xf32> to vector<8x32xf32>
    %344 = arith.subf %336, %343 : vector<8x32xf32>
    %345 = arith.mulf %344, %344 : vector<8x32xf32>
    %cst_189 = arith.constant dense<0.000000e+00> : vector<8xf32>
    %346 = vector.multi_reduction <add>, %345, %cst_189 [1] : vector<8x32xf32> to vector<8xf32>
    %347 = vector.shape_cast %346 : vector<8xf32> to vector<8x1xf32>
    %cst_190 = arith.constant 3.200000e+01 : f32
    %348 = vector.broadcast %cst_190 : f32 to vector<8x1xf32>
    %349 = arith.divf %347, %348 : vector<8x1xf32>
    %cst_191 = arith.constant 9.99999974E-6 : f32
    %350 = vector.broadcast %cst_191 : f32 to vector<8x1xf32>
    %351 = arith.addf %349, %350 : vector<8x1xf32>
    %352 = math.rsqrt %351 : vector<8x1xf32>
    %353 = vector.broadcast %352 : vector<8x1xf32> to vector<8x32xf32>
    %354 = arith.mulf %344, %353 : vector<8x32xf32>
    %355 = vector.broadcast %337 : vector<1x32xf32> to vector<8x32xf32>
    %356 = arith.mulf %354, %355 : vector<8x32xf32>
    %357 = vector.broadcast %338 : vector<1x32xf32> to vector<8x32xf32>
    %358 = arith.addf %356, %357 : vector<8x32xf32>
    %c2_192 = arith.constant 2 : index
    %c0_193 = arith.constant 0 : index
    %c0_194 = arith.constant 0 : index
    %359 = vector.load %arg9[%c2_192, %c0_193, %c0_194] : memref<4x32x64xf32, #tpu.memory_space<vmem>>, vector<1x32x64xf32>
    %360 = vector.shape_cast %359 : vector<1x32x64xf32> to vector<32x64xf32>
    %cst_195 = arith.constant dense<0.000000e+00> : vector<8x64xf32>
    %361 = tpu.matmul %358, %360, %cst_195 {dimension_numbers = #tpu.dot_dimension_numbers<[1], [0], [0], [1], [0, 0, 1, 1], [], []>} : vector<8x32xf32>, vector<32x64xf32>, vector<8x64xf32> -> vector<8x64xf32>
    %c2_196 = arith.constant 2 : index
    %c0_197 = arith.constant 0 : index
    %362 = vector.load %arg10[%c2_196, %c0_197] : memref<4x64xf32, #tpu.memory_space<vmem>>, vector<1x64xf32>
    %363 = vector.broadcast %362 : vector<1x64xf32> to vector<8x64xf32>
    %364 = arith.addf %361, %363 : vector<8x64xf32>
    %cst_198 = arith.constant 0.000000e+00 : f32
    %365 = vector.broadcast %cst_198 : f32 to vector<8x64xf32>
    %366 = arith.maximumf %364, %365 : vector<8x64xf32>
    %c2_199 = arith.constant 2 : index
    %c0_200 = arith.constant 0 : index
    %c0_201 = arith.constant 0 : index
    %367 = vector.load %arg11[%c2_199, %c0_200, %c0_201] : memref<4x64x32xf32, #tpu.memory_space<vmem>>, vector<1x64x32xf32>
    %368 = vector.shape_cast %367 : vector<1x64x32xf32> to vector<64x32xf32>
    %cst_202 = arith.constant dense<0.000000e+00> : vector<8x32xf32>
    %369 = tpu.matmul %366, %368, %cst_202 {dimension_numbers = #tpu.dot_dimension_numbers<[1], [0], [0], [1], [0, 0, 1, 1], [], []>} : vector<8x64xf32>, vector<64x32xf32>, vector<8x32xf32> -> vector<8x32xf32>
    %c8_203 = arith.constant 8 : index
    %c0_204 = arith.constant 0 : index
    %370 = vector.load %arg8[%c8_203, %c0_204] : memref<10x32xf32, #tpu.memory_space<vmem>>, vector<1x32xf32>
    %371 = vector.broadcast %370 : vector<1x32xf32> to vector<8x32xf32>
    %372 = arith.addf %369, %371 : vector<8x32xf32>
    %373 = arith.addf %336, %372 : vector<8x32xf32>
    %c8_205 = arith.constant 8 : index
    %c0_206 = arith.constant 0 : index
    %374 = vector.load %arg12[%c8_205, %c0_206] : memref<13x32xf32, #tpu.memory_space<vmem>>, vector<1x32xf32>
    %c8_207 = arith.constant 8 : index
    %c0_208 = arith.constant 0 : index
    %375 = vector.load %arg13[%c8_207, %c0_208] : memref<13x32xf32, #tpu.memory_space<vmem>>, vector<1x32xf32>
    %cst_209 = arith.constant dense<0.000000e+00> : vector<8xf32>
    %376 = vector.multi_reduction <add>, %373, %cst_209 [1] : vector<8x32xf32> to vector<8xf32>
    %377 = vector.shape_cast %376 : vector<8xf32> to vector<8x1xf32>
    %cst_210 = arith.constant 3.200000e+01 : f32
    %378 = vector.broadcast %cst_210 : f32 to vector<8x1xf32>
    %379 = arith.divf %377, %378 : vector<8x1xf32>
    %380 = vector.broadcast %379 : vector<8x1xf32> to vector<8x32xf32>
    %381 = arith.subf %373, %380 : vector<8x32xf32>
    %382 = arith.mulf %381, %381 : vector<8x32xf32>
    %cst_211 = arith.constant dense<0.000000e+00> : vector<8xf32>
    %383 = vector.multi_reduction <add>, %382, %cst_211 [1] : vector<8x32xf32> to vector<8xf32>
    %384 = vector.shape_cast %383 : vector<8xf32> to vector<8x1xf32>
    %cst_212 = arith.constant 3.200000e+01 : f32
    %385 = vector.broadcast %cst_212 : f32 to vector<8x1xf32>
    %386 = arith.divf %384, %385 : vector<8x1xf32>
    %cst_213 = arith.constant 9.99999974E-6 : f32
    %387 = vector.broadcast %cst_213 : f32 to vector<8x1xf32>
    %388 = arith.addf %386, %387 : vector<8x1xf32>
    %389 = math.rsqrt %388 : vector<8x1xf32>
    %390 = vector.broadcast %389 : vector<8x1xf32> to vector<8x32xf32>
    %391 = arith.mulf %381, %390 : vector<8x32xf32>
    %392 = vector.broadcast %374 : vector<1x32xf32> to vector<8x32xf32>
    %393 = arith.mulf %391, %392 : vector<8x32xf32>
    %394 = vector.broadcast %375 : vector<1x32xf32> to vector<8x32xf32>
    %395 = arith.addf %393, %394 : vector<8x32xf32>
    %c4_214 = arith.constant 4 : index
    %c0_215 = arith.constant 0 : index
    %c0_216 = arith.constant 0 : index
    %396 = vector.load %arg5[%c4_214, %c0_215, %c0_216] : memref<6x32x96xf32, #tpu.memory_space<vmem>>, vector<1x32x96xf32>
    %397 = vector.shape_cast %396 : vector<1x32x96xf32> to vector<32x96xf32>
    %c4_217 = arith.constant 4 : index
    %c0_218 = arith.constant 0 : index
    %398 = vector.load %arg6[%c4_217, %c0_218] : memref<6x96xf32, #tpu.memory_space<vmem>>, vector<1x96xf32>
    %cst_219 = arith.constant dense<0.000000e+00> : vector<8x96xf32>
    %399 = tpu.matmul %395, %397, %cst_219 {dimension_numbers = #tpu.dot_dimension_numbers<[1], [0], [0], [1], [0, 0, 1, 1], [], []>} : vector<8x32xf32>, vector<32x96xf32>, vector<8x96xf32> -> vector<8x96xf32>
    %400 = vector.broadcast %398 : vector<1x96xf32> to vector<8x96xf32>
    %401 = arith.addf %399, %400 : vector<8x96xf32>
    %402 = vector.extract_strided_slice %401 {offsets = [0, 0], sizes = [8, 32], strides = [1, 1]} : vector<8x96xf32> to vector<8x32xf32>
    %403 = vector.extract_strided_slice %401 {offsets = [0, 32], sizes = [8, 32], strides = [1, 1]} : vector<8x96xf32> to vector<8x32xf32>
    %404 = vector.extract_strided_slice %401 {offsets = [0, 64], sizes = [8, 32], strides = [1, 1]} : vector<8x96xf32> to vector<8x32xf32>
    %cst_220 = arith.constant dense<0.000000e+00> : vector<32x32xf32>
    %405 = tpu.matmul %14, %402, %cst_220 {dimension_numbers = #tpu.dot_dimension_numbers<[1], [0], [0], [1], [0, 0, 1, 1], [], []>} : vector<32x8xf32>, vector<8x32xf32>, vector<32x32xf32> -> vector<32x32xf32>
    %406 = arith.mulf %405, %16 : vector<32x32xf32>
    %cst_221 = arith.constant dense<0.000000e+00> : vector<32x8xf32>
    %407 = tpu.matmul %406, %403, %cst_221 {dimension_numbers = #tpu.dot_dimension_numbers<[1], [1], [0], [0], [0, 0, 1, 0], [], []>} : vector<32x32xf32>, vector<8x32xf32>, vector<32x8xf32> -> vector<32x8xf32>
    %408 = math.exp %407 : vector<32x8xf32>
    %409 = arith.mulf %408, %19 : vector<32x8xf32>
    %cst_222 = arith.constant dense<0.000000e+00> : vector<32xf32>
    %410 = vector.multi_reduction <add>, %409, %cst_222 [1] : vector<32x8xf32> to vector<32xf32>
    %411 = vector.shape_cast %410 : vector<32xf32> to vector<32x1xf32>
    %412 = tpu.reciprocal %411 {approx = true} : vector<32x1xf32> -> vector<32x1xf32>
    %413 = vector.broadcast %412 : vector<32x1xf32> to vector<32x8xf32>
    %414 = arith.mulf %409, %413 : vector<32x8xf32>
    %cst_223 = arith.constant dense<0.000000e+00> : vector<32x32xf32>
    %415 = tpu.matmul %414, %404, %cst_223 {dimension_numbers = #tpu.dot_dimension_numbers<[1], [0], [0], [1], [0, 0, 1, 1], [], []>} : vector<32x8xf32>, vector<8x32xf32>, vector<32x32xf32> -> vector<32x32xf32>
    %416 = arith.mulf %415, %16 : vector<32x32xf32>
    %cst_224 = arith.constant dense<0.000000e+00> : vector<8x32xf32>
    %417 = tpu.matmul %22, %416, %cst_224 {dimension_numbers = #tpu.dot_dimension_numbers<[1], [0], [0], [1], [0, 0, 1, 1], [], []>} : vector<8x32xf32>, vector<32x32xf32>, vector<8x32xf32> -> vector<8x32xf32>
    %c4_225 = arith.constant 4 : index
    %c0_226 = arith.constant 0 : index
    %c0_227 = arith.constant 0 : index
    %418 = vector.load %arg7[%c4_225, %c0_226, %c0_227] : memref<6x32x32xf32, #tpu.memory_space<vmem>>, vector<1x32x32xf32>
    %419 = vector.shape_cast %418 : vector<1x32x32xf32> to vector<32x32xf32>
    %cst_228 = arith.constant dense<0.000000e+00> : vector<8x32xf32>
    %420 = tpu.matmul %417, %419, %cst_228 {dimension_numbers = #tpu.dot_dimension_numbers<[1], [0], [0], [1], [0, 0, 1, 1], [], []>} : vector<8x32xf32>, vector<32x32xf32>, vector<8x32xf32> -> vector<8x32xf32>
    %c4_229 = arith.constant 4 : index
    %c0_230 = arith.constant 0 : index
    %421 = vector.load %arg8[%c4_229, %c0_230] : memref<10x32xf32, #tpu.memory_space<vmem>>, vector<1x32xf32>
    %422 = vector.broadcast %421 : vector<1x32xf32> to vector<8x32xf32>
    %423 = arith.addf %420, %422 : vector<8x32xf32>
    %424 = arith.addf %373, %423 : vector<8x32xf32>
    %c9 = arith.constant 9 : index
    %c0_231 = arith.constant 0 : index
    %425 = vector.load %arg12[%c9, %c0_231] : memref<13x32xf32, #tpu.memory_space<vmem>>, vector<1x32xf32>
    %c9_232 = arith.constant 9 : index
    %c0_233 = arith.constant 0 : index
    %426 = vector.load %arg13[%c9_232, %c0_233] : memref<13x32xf32, #tpu.memory_space<vmem>>, vector<1x32xf32>
    %cst_234 = arith.constant dense<0.000000e+00> : vector<8xf32>
    %427 = vector.multi_reduction <add>, %424, %cst_234 [1] : vector<8x32xf32> to vector<8xf32>
    %428 = vector.shape_cast %427 : vector<8xf32> to vector<8x1xf32>
    %cst_235 = arith.constant 3.200000e+01 : f32
    %429 = vector.broadcast %cst_235 : f32 to vector<8x1xf32>
    %430 = arith.divf %428, %429 : vector<8x1xf32>
    %431 = vector.broadcast %430 : vector<8x1xf32> to vector<8x32xf32>
    %432 = arith.subf %424, %431 : vector<8x32xf32>
    %433 = arith.mulf %432, %432 : vector<8x32xf32>
    %cst_236 = arith.constant dense<0.000000e+00> : vector<8xf32>
    %434 = vector.multi_reduction <add>, %433, %cst_236 [1] : vector<8x32xf32> to vector<8xf32>
    %435 = vector.shape_cast %434 : vector<8xf32> to vector<8x1xf32>
    %cst_237 = arith.constant 3.200000e+01 : f32
    %436 = vector.broadcast %cst_237 : f32 to vector<8x1xf32>
    %437 = arith.divf %435, %436 : vector<8x1xf32>
    %cst_238 = arith.constant 9.99999974E-6 : f32
    %438 = vector.broadcast %cst_238 : f32 to vector<8x1xf32>
    %439 = arith.addf %437, %438 : vector<8x1xf32>
    %440 = math.rsqrt %439 : vector<8x1xf32>
    %441 = vector.broadcast %440 : vector<8x1xf32> to vector<8x32xf32>
    %442 = arith.mulf %432, %441 : vector<8x32xf32>
    %443 = vector.broadcast %425 : vector<1x32xf32> to vector<8x32xf32>
    %444 = arith.mulf %442, %443 : vector<8x32xf32>
    %445 = vector.broadcast %426 : vector<1x32xf32> to vector<8x32xf32>
    %446 = arith.addf %444, %445 : vector<8x32xf32>
    %c5_239 = arith.constant 5 : index
    %c0_240 = arith.constant 0 : index
    %c0_241 = arith.constant 0 : index
    %447 = vector.load %arg5[%c5_239, %c0_240, %c0_241] : memref<6x32x96xf32, #tpu.memory_space<vmem>>, vector<1x32x96xf32>
    %448 = vector.shape_cast %447 : vector<1x32x96xf32> to vector<32x96xf32>
    %c5_242 = arith.constant 5 : index
    %c0_243 = arith.constant 0 : index
    %449 = vector.load %arg6[%c5_242, %c0_243] : memref<6x96xf32, #tpu.memory_space<vmem>>, vector<1x96xf32>
    %cst_244 = arith.constant dense<0.000000e+00> : vector<8x96xf32>
    %450 = tpu.matmul %446, %448, %cst_244 {dimension_numbers = #tpu.dot_dimension_numbers<[1], [0], [0], [1], [0, 0, 1, 1], [], []>} : vector<8x32xf32>, vector<32x96xf32>, vector<8x96xf32> -> vector<8x96xf32>
    %451 = vector.broadcast %449 : vector<1x96xf32> to vector<8x96xf32>
    %452 = arith.addf %450, %451 : vector<8x96xf32>
    %cst_245 = arith.constant dense<0.000000e+00> : vector<6x96xf32>
    %453 = tpu.matmul %230, %448, %cst_245 {dimension_numbers = #tpu.dot_dimension_numbers<[1], [0], [0], [1], [0, 0, 1, 1], [], []>} : vector<6x32xf32>, vector<32x96xf32>, vector<6x96xf32> -> vector<6x96xf32>
    %454 = vector.broadcast %449 : vector<1x96xf32> to vector<6x96xf32>
    %455 = arith.addf %453, %454 : vector<6x96xf32>
    %456 = vector.extract_strided_slice %452 {offsets = [0, 0], sizes = [8, 32], strides = [1, 1]} : vector<8x96xf32> to vector<8x32xf32>
    %457 = vector.extract_strided_slice %455 {offsets = [0, 32], sizes = [6, 32], strides = [1, 1]} : vector<6x96xf32> to vector<6x32xf32>
    %458 = vector.extract_strided_slice %455 {offsets = [0, 64], sizes = [6, 32], strides = [1, 1]} : vector<6x96xf32> to vector<6x32xf32>
    %cst_246 = arith.constant dense<0.000000e+00> : vector<32x32xf32>
    %459 = tpu.matmul %14, %456, %cst_246 {dimension_numbers = #tpu.dot_dimension_numbers<[1], [0], [0], [1], [0, 0, 1, 1], [], []>} : vector<32x8xf32>, vector<8x32xf32>, vector<32x32xf32> -> vector<32x32xf32>
    %460 = arith.mulf %459, %16 : vector<32x32xf32>
    %cst_247 = arith.constant dense<0.000000e+00> : vector<32x6xf32>
    %461 = tpu.matmul %460, %457, %cst_247 {dimension_numbers = #tpu.dot_dimension_numbers<[1], [1], [0], [0], [0, 0, 1, 0], [], []>} : vector<32x32xf32>, vector<6x32xf32>, vector<32x6xf32> -> vector<32x6xf32>
    %462 = math.exp %461 : vector<32x6xf32>
    %463 = arith.mulf %462, %25 : vector<32x6xf32>
    %cst_248 = arith.constant dense<0.000000e+00> : vector<32xf32>
    %464 = vector.multi_reduction <add>, %463, %cst_248 [1] : vector<32x6xf32> to vector<32xf32>
    %465 = vector.shape_cast %464 : vector<32xf32> to vector<32x1xf32>
    %466 = tpu.reciprocal %465 {approx = true} : vector<32x1xf32> -> vector<32x1xf32>
    %467 = vector.broadcast %466 : vector<32x1xf32> to vector<32x6xf32>
    %468 = arith.mulf %463, %467 : vector<32x6xf32>
    %cst_249 = arith.constant dense<0.000000e+00> : vector<32x32xf32>
    %469 = tpu.matmul %468, %458, %cst_249 {dimension_numbers = #tpu.dot_dimension_numbers<[1], [0], [0], [1], [0, 0, 1, 1], [], []>} : vector<32x6xf32>, vector<6x32xf32>, vector<32x32xf32> -> vector<32x32xf32>
    %470 = arith.mulf %469, %16 : vector<32x32xf32>
    %cst_250 = arith.constant dense<0.000000e+00> : vector<8x32xf32>
    %471 = tpu.matmul %22, %470, %cst_250 {dimension_numbers = #tpu.dot_dimension_numbers<[1], [0], [0], [1], [0, 0, 1, 1], [], []>} : vector<8x32xf32>, vector<32x32xf32>, vector<8x32xf32> -> vector<8x32xf32>
    %c5_251 = arith.constant 5 : index
    %c0_252 = arith.constant 0 : index
    %c0_253 = arith.constant 0 : index
    %472 = vector.load %arg7[%c5_251, %c0_252, %c0_253] : memref<6x32x32xf32, #tpu.memory_space<vmem>>, vector<1x32x32xf32>
    %473 = vector.shape_cast %472 : vector<1x32x32xf32> to vector<32x32xf32>
    %cst_254 = arith.constant dense<0.000000e+00> : vector<8x32xf32>
    %474 = tpu.matmul %471, %473, %cst_254 {dimension_numbers = #tpu.dot_dimension_numbers<[1], [0], [0], [1], [0, 0, 1, 1], [], []>} : vector<8x32xf32>, vector<32x32xf32>, vector<8x32xf32> -> vector<8x32xf32>
    %c5_255 = arith.constant 5 : index
    %c0_256 = arith.constant 0 : index
    %475 = vector.load %arg8[%c5_255, %c0_256] : memref<10x32xf32, #tpu.memory_space<vmem>>, vector<1x32xf32>
    %476 = vector.broadcast %475 : vector<1x32xf32> to vector<8x32xf32>
    %477 = arith.addf %474, %476 : vector<8x32xf32>
    %478 = arith.addf %424, %477 : vector<8x32xf32>
    %c10 = arith.constant 10 : index
    %c0_257 = arith.constant 0 : index
    %479 = vector.load %arg12[%c10, %c0_257] : memref<13x32xf32, #tpu.memory_space<vmem>>, vector<1x32xf32>
    %c10_258 = arith.constant 10 : index
    %c0_259 = arith.constant 0 : index
    %480 = vector.load %arg13[%c10_258, %c0_259] : memref<13x32xf32, #tpu.memory_space<vmem>>, vector<1x32xf32>
    %cst_260 = arith.constant dense<0.000000e+00> : vector<8xf32>
    %481 = vector.multi_reduction <add>, %478, %cst_260 [1] : vector<8x32xf32> to vector<8xf32>
    %482 = vector.shape_cast %481 : vector<8xf32> to vector<8x1xf32>
    %cst_261 = arith.constant 3.200000e+01 : f32
    %483 = vector.broadcast %cst_261 : f32 to vector<8x1xf32>
    %484 = arith.divf %482, %483 : vector<8x1xf32>
    %485 = vector.broadcast %484 : vector<8x1xf32> to vector<8x32xf32>
    %486 = arith.subf %478, %485 : vector<8x32xf32>
    %487 = arith.mulf %486, %486 : vector<8x32xf32>
    %cst_262 = arith.constant dense<0.000000e+00> : vector<8xf32>
    %488 = vector.multi_reduction <add>, %487, %cst_262 [1] : vector<8x32xf32> to vector<8xf32>
    %489 = vector.shape_cast %488 : vector<8xf32> to vector<8x1xf32>
    %cst_263 = arith.constant 3.200000e+01 : f32
    %490 = vector.broadcast %cst_263 : f32 to vector<8x1xf32>
    %491 = arith.divf %489, %490 : vector<8x1xf32>
    %cst_264 = arith.constant 9.99999974E-6 : f32
    %492 = vector.broadcast %cst_264 : f32 to vector<8x1xf32>
    %493 = arith.addf %491, %492 : vector<8x1xf32>
    %494 = math.rsqrt %493 : vector<8x1xf32>
    %495 = vector.broadcast %494 : vector<8x1xf32> to vector<8x32xf32>
    %496 = arith.mulf %486, %495 : vector<8x32xf32>
    %497 = vector.broadcast %479 : vector<1x32xf32> to vector<8x32xf32>
    %498 = arith.mulf %496, %497 : vector<8x32xf32>
    %499 = vector.broadcast %480 : vector<1x32xf32> to vector<8x32xf32>
    %500 = arith.addf %498, %499 : vector<8x32xf32>
    %c3_265 = arith.constant 3 : index
    %c0_266 = arith.constant 0 : index
    %c0_267 = arith.constant 0 : index
    %501 = vector.load %arg9[%c3_265, %c0_266, %c0_267] : memref<4x32x64xf32, #tpu.memory_space<vmem>>, vector<1x32x64xf32>
    %502 = vector.shape_cast %501 : vector<1x32x64xf32> to vector<32x64xf32>
    %cst_268 = arith.constant dense<0.000000e+00> : vector<8x64xf32>
    %503 = tpu.matmul %500, %502, %cst_268 {dimension_numbers = #tpu.dot_dimension_numbers<[1], [0], [0], [1], [0, 0, 1, 1], [], []>} : vector<8x32xf32>, vector<32x64xf32>, vector<8x64xf32> -> vector<8x64xf32>
    %c3_269 = arith.constant 3 : index
    %c0_270 = arith.constant 0 : index
    %504 = vector.load %arg10[%c3_269, %c0_270] : memref<4x64xf32, #tpu.memory_space<vmem>>, vector<1x64xf32>
    %505 = vector.broadcast %504 : vector<1x64xf32> to vector<8x64xf32>
    %506 = arith.addf %503, %505 : vector<8x64xf32>
    %cst_271 = arith.constant 0.000000e+00 : f32
    %507 = vector.broadcast %cst_271 : f32 to vector<8x64xf32>
    %508 = arith.maximumf %506, %507 : vector<8x64xf32>
    %c3_272 = arith.constant 3 : index
    %c0_273 = arith.constant 0 : index
    %c0_274 = arith.constant 0 : index
    %509 = vector.load %arg11[%c3_272, %c0_273, %c0_274] : memref<4x64x32xf32, #tpu.memory_space<vmem>>, vector<1x64x32xf32>
    %510 = vector.shape_cast %509 : vector<1x64x32xf32> to vector<64x32xf32>
    %cst_275 = arith.constant dense<0.000000e+00> : vector<8x32xf32>
    %511 = tpu.matmul %508, %510, %cst_275 {dimension_numbers = #tpu.dot_dimension_numbers<[1], [0], [0], [1], [0, 0, 1, 1], [], []>} : vector<8x64xf32>, vector<64x32xf32>, vector<8x32xf32> -> vector<8x32xf32>
    %c9_276 = arith.constant 9 : index
    %c0_277 = arith.constant 0 : index
    %512 = vector.load %arg8[%c9_276, %c0_277] : memref<10x32xf32, #tpu.memory_space<vmem>>, vector<1x32xf32>
    %513 = vector.broadcast %512 : vector<1x32xf32> to vector<8x32xf32>
    %514 = arith.addf %511, %513 : vector<8x32xf32>
    %515 = arith.addf %478, %514 : vector<8x32xf32>
    %c11 = arith.constant 11 : index
    %c0_278 = arith.constant 0 : index
    %516 = vector.load %arg12[%c11, %c0_278] : memref<13x32xf32, #tpu.memory_space<vmem>>, vector<1x32xf32>
    %c11_279 = arith.constant 11 : index
    %c0_280 = arith.constant 0 : index
    %517 = vector.load %arg13[%c11_279, %c0_280] : memref<13x32xf32, #tpu.memory_space<vmem>>, vector<1x32xf32>
    %cst_281 = arith.constant dense<0.000000e+00> : vector<8xf32>
    %518 = vector.multi_reduction <add>, %515, %cst_281 [1] : vector<8x32xf32> to vector<8xf32>
    %519 = vector.shape_cast %518 : vector<8xf32> to vector<8x1xf32>
    %cst_282 = arith.constant 3.200000e+01 : f32
    %520 = vector.broadcast %cst_282 : f32 to vector<8x1xf32>
    %521 = arith.divf %519, %520 : vector<8x1xf32>
    %522 = vector.broadcast %521 : vector<8x1xf32> to vector<8x32xf32>
    %523 = arith.subf %515, %522 : vector<8x32xf32>
    %524 = arith.mulf %523, %523 : vector<8x32xf32>
    %cst_283 = arith.constant dense<0.000000e+00> : vector<8xf32>
    %525 = vector.multi_reduction <add>, %524, %cst_283 [1] : vector<8x32xf32> to vector<8xf32>
    %526 = vector.shape_cast %525 : vector<8xf32> to vector<8x1xf32>
    %cst_284 = arith.constant 3.200000e+01 : f32
    %527 = vector.broadcast %cst_284 : f32 to vector<8x1xf32>
    %528 = arith.divf %526, %527 : vector<8x1xf32>
    %cst_285 = arith.constant 9.99999974E-6 : f32
    %529 = vector.broadcast %cst_285 : f32 to vector<8x1xf32>
    %530 = arith.addf %528, %529 : vector<8x1xf32>
    %531 = math.rsqrt %530 : vector<8x1xf32>
    %532 = vector.broadcast %531 : vector<8x1xf32> to vector<8x32xf32>
    %533 = arith.mulf %523, %532 : vector<8x32xf32>
    %534 = vector.broadcast %516 : vector<1x32xf32> to vector<8x32xf32>
    %535 = arith.mulf %533, %534 : vector<8x32xf32>
    %536 = vector.broadcast %517 : vector<1x32xf32> to vector<8x32xf32>
    %537 = arith.addf %535, %536 : vector<8x32xf32>
    %538 = vector.extract_strided_slice %537 {offsets = [0, 0], sizes = [4, 32], strides = [1, 1]} : vector<8x32xf32> to vector<4x32xf32>
    %cst_286 = arith.constant dense<0xFF800000> : vector<32xf32>
    %539 = vector.multi_reduction <maximumf>, %538, %cst_286 [0] : vector<4x32xf32> to vector<32xf32>
    %540 = vector.shape_cast %539 : vector<32xf32> to vector<1x32xf32>
    %541 = vector.extract_strided_slice %537 {offsets = [4, 0], sizes = [4, 32], strides = [1, 1]} : vector<8x32xf32> to vector<4x32xf32>
    %cst_287 = arith.constant dense<0xFF800000> : vector<32xf32>
    %542 = vector.multi_reduction <maximumf>, %541, %cst_287 [0] : vector<4x32xf32> to vector<32xf32>
    %543 = vector.shape_cast %542 : vector<32xf32> to vector<1x32xf32>
    %544 = tpu.concatenate %540, %543 in 0 : vector<1x32xf32>, vector<1x32xf32> -> vector<2x32xf32>
    %cst_288 = arith.constant 0.000000e+00 : f32
    %545 = vector.broadcast %cst_288 : f32 to vector<2x32xf32>
    %546 = arith.maximumf %544, %545 : vector<2x32xf32>
    %c12 = arith.constant 12 : index
    %c0_289 = arith.constant 0 : index
    %547 = vector.load %arg12[%c12, %c0_289] : memref<13x32xf32, #tpu.memory_space<vmem>>, vector<1x32xf32>
    %c12_290 = arith.constant 12 : index
    %c0_291 = arith.constant 0 : index
    %548 = vector.load %arg13[%c12_290, %c0_291] : memref<13x32xf32, #tpu.memory_space<vmem>>, vector<1x32xf32>
    %cst_292 = arith.constant dense<0.000000e+00> : vector<2xf32>
    %549 = vector.multi_reduction <add>, %546, %cst_292 [1] : vector<2x32xf32> to vector<2xf32>
    %550 = vector.shape_cast %549 : vector<2xf32> to vector<2x1xf32>
    %cst_293 = arith.constant 3.200000e+01 : f32
    %551 = vector.broadcast %cst_293 : f32 to vector<2x1xf32>
    %552 = arith.divf %550, %551 : vector<2x1xf32>
    %553 = vector.broadcast %552 : vector<2x1xf32> to vector<2x32xf32>
    %554 = arith.subf %546, %553 : vector<2x32xf32>
    %555 = arith.mulf %554, %554 : vector<2x32xf32>
    %cst_294 = arith.constant dense<0.000000e+00> : vector<2xf32>
    %556 = vector.multi_reduction <add>, %555, %cst_294 [1] : vector<2x32xf32> to vector<2xf32>
    %557 = vector.shape_cast %556 : vector<2xf32> to vector<2x1xf32>
    %cst_295 = arith.constant 3.200000e+01 : f32
    %558 = vector.broadcast %cst_295 : f32 to vector<2x1xf32>
    %559 = arith.divf %557, %558 : vector<2x1xf32>
    %cst_296 = arith.constant 9.99999974E-6 : f32
    %560 = vector.broadcast %cst_296 : f32 to vector<2x1xf32>
    %561 = arith.addf %559, %560 : vector<2x1xf32>
    %562 = math.rsqrt %561 : vector<2x1xf32>
    %563 = vector.broadcast %562 : vector<2x1xf32> to vector<2x32xf32>
    %564 = arith.mulf %554, %563 : vector<2x32xf32>
    %565 = vector.broadcast %547 : vector<1x32xf32> to vector<2x32xf32>
    %566 = arith.mulf %564, %565 : vector<2x32xf32>
    %567 = vector.broadcast %548 : vector<1x32xf32> to vector<2x32xf32>
    %568 = arith.addf %566, %567 : vector<2x32xf32>
    %c0_297 = arith.constant 0 : index
    %c0_298 = arith.constant 0 : index
    %569 = vector.load %arg14[%c0_297, %c0_298] : memref<32x128xf32, #tpu.memory_space<vmem>>, vector<32x128xf32>
    %cst_299 = arith.constant dense<0.000000e+00> : vector<2x128xf32>
    %570 = tpu.matmul %568, %569, %cst_299 {dimension_numbers = #tpu.dot_dimension_numbers<[1], [0], [0], [1], [0, 0, 1, 1], [], []>} : vector<2x32xf32>, vector<32x128xf32>, vector<2x128xf32> -> vector<2x128xf32>
    %c0_300 = arith.constant 0 : index
    %c0_301 = arith.constant 0 : index
    %571 = vector.load %arg15[%c0_300, %c0_301] : memref<2x128xf32, #tpu.memory_space<vmem>>, vector<2x128xf32>
    tpu.vector_store %arg15[%c0_300, %c0_301], %570 {strides = array<i32>} : memref<2x128xf32, #tpu.memory_space<vmem>>, vector<2x128xf32>,
    return
  }
}

</mosaic_0001>

<bundles_post_ra>
// kernel: tile.9
= control target key start
LH: loop header
LB: loop body
LE: loop exit
PB: predicated region body
PF: predicated region fallthrough
CT: control target
= control target key end

     0   :  { %vm12_vm0 = vcmask 261120   ;;  %s43_s0 = inlined_call_operand.vmem [shape: f32[2,3,32], index: 0, kind: input, shape index: {}]   ;;  %s44_s1 = inlined_call_operand.vmem [shape: f32[6,32], index: 1, kind: output, shape index: {}]  }
   0x1   :  { %v19_v0 = vld [vmem:[%s43_s0 + $0x4] sm:$0xf]  ;;  %v9_v1 = vld [vmem:[%s43_s0] sm:$0xf] }
   0x2   :  { %8 = vst [vmem:[#allocation0 + $0x8] sm:$0xf] %v19_v0  ;;  %10 = vst [vmem:[#allocation0] sm:$0xf] %v9_v1 }
   0x9   :  { %v11_v2 = vld [vmem:[#allocation0] sm:$0x7]   ;;  %v15_v3 = vld [vmem:[#allocation0 + $0x8] sm:$0x7]  }
   0xa   :  { %13 = vst.msk [vmem:[%s44_s1] sm:$0x7] %vm12_vm0, %v11_v2   ;;  %20 = vst.msk [vmem:[%s44_s1 + $0x3] sm:$0x7] %vm12_vm0, %v15_v3  }

// kernel: forward.1
= control target key start
LH: loop header
LB: loop body
LE: loop exit
PB: predicated region body
PF: predicated region fallthrough
CT: control target
= control target key end

     0   :  { %20 = vsyncpa [#allocation3], 0  ;;  %s7246_s0 = inlined_call_operand.vmem [shape: f32[6,32], index: 0, kind: input, shape index: {}]   ;;  %s7247_s1 = inlined_call_operand.vmem [shape: f32[6,32], index: 1, kind: input, shape index: {}]   ;;  %s7248_s2 = inlined_call_operand.vmem [shape: f32[6,1], index: 2, kind: input, shape index: {}]   ;;  %s7249_s3 = inlined_call_operand.vmem [shape: f32[8,32], index: 3, kind: input, shape index: {}]   ;;  %s7250_s4 = inlined_call_operand.vmem [shape: f32[9,32,32], index: 4, kind: input, shape index: {}]   ;;  %s7251_s5 = inlined_call_operand.vmem [shape: f32[6,32,96], index: 5, kind: input, shape index: {}]   ;;  %s7252_s6 = inlined_call_operand.hbm [shape: f32[6,96], index: 6, kind: input, shape index: {}]   ;;  %s7253_s7 = inlined_call_operand.vmem [shape: f32[6,32,32], index: 7, kind: input, shape index: {}]   ;;  %s7254_s8 = inlined_call_operand.hbm [shape: f32[10,32], index: 8, kind: input, shape index: {}]   ;;  %s7255_s9 = inlined_call_operand.hbm [shape: f32[4,32,64], index: 9, kind: input, shape index: {}]   ;;  %s7256_s10 = inlined_call_operand.hbm [shape: f32[4,64], index: 10, kind: input, shape index: {}]   ;;  %s7257_s11 = inlined_call_operand.vmem [shape: f32[4,64,32], index: 11, kind: input, shape index: {}]   ;;  %s7258_s12 = inlined_call_operand.hbm [shape: f32[13,32], index: 12, kind: input, shape index: {}]   ;;  %s7259_s13 = inlined_call_operand.hbm [shape: f32[13,32], index: 13, kind: input, shape index: {}]   ;;  %s7260_s14 = inlined_call_operand.hbm [shape: f32[32,128], index: 14, kind: input, shape index: {}]   ;;  %s7261_s15 = inlined_call_operand.hbm [shape: f32[2,128], index: 15, kind: output, shape index: {}]  }
   0x1   :  { %21 = vsyncpa [#allocation6], 0 }
   0x2   :  { %22 = vsyncpa [#allocation9], 0 }
   0x3   :  { %23 = vsyncpa [#allocation12], 0 }
   0x4   :  { %24 = vsyncpa [#allocation4], 0  ;;  %s6126_s18 = smov [#allocation5]  }
   0x5   :  { %s54_s19 = sshll.u32 %s6126_s18, 4  ;;  %s55_s19 = int_to_ptr.vmem [resolvable:$true] %s54_s19 }
   0x6   :  { %s5964_s20 = scalar_lea.vmem %s55_s19, 256  ;;  %p5969_p1 = scmp.lt.s32.totalorder %s55_s19, %s55_s19 }
   0x7   :  { %p5965_p0 = scmp.ne.s32.totalorder %s55_s19, %s5964_s20  ;;  %p5970_p2 = scmp.lt.s32.totalorder %s5964_s20, %s5964_s20 }
   0x9   :  { %p5971_p3 = por %p5970_p2, %p5969_p1 }
   0xb   :  { %p5972_p4 = pnand %p5971_p3, %p5965_p0 }
   0xd   :  { %5975 = shalt.err (!%p5972_p4)
}
   0xe   :  { %s6127_s21 = smov 128   ;;  %s6128_s22 = smov 8  }
   0xf   :  { %60 = dma.hbm_to_vmem [thread:$0]  %s7254_s8, 256, %s55_s19, [#allocation6], %s6127_s21, %s6127_s21, %s6128_s22  }
  0x10   :  { %s6129_s25 = smov [#allocation8]   ;;  %s6130_s27 = smov [#allocation11]  }
  0x11   :  { %s79_s26 = sshll.u32 %s6129_s25, 4  ;;  %s102_s28 = sshll.u32 %s6130_s27, 4  ;;  %s80_s26 = int_to_ptr.vmem [resolvable:$true] %s79_s26  ;;  %s103_s28 = int_to_ptr.vmem [resolvable:$true] %s102_s28 }
  0x12   :  { %s5984_s29 = scalar_lea.vmem %s80_s26, 64  ;;  %p5989_p6 = scmp.lt.s32.totalorder %s80_s26, %s80_s26 }
  0x13   :  { %p5985_p5 = scmp.ne.s32.totalorder %s80_s26, %s5984_s29  ;;  %p5990_p7 = scmp.lt.s32.totalorder %s5984_s29, %s5984_s29 }
  0x15   :  { %p5991_p8 = por %p5990_p7, %p5989_p6 }
  0x17   :  { %p5992_p9 = pnand %p5991_p8, %p5985_p5 }
  0x19   :  { %5995 = shalt.err (!%p5992_p9)
}
  0x1a   :  { %82 = dma.hbm_to_vmem [thread:$0]  %s7256_s10, 64, %s80_s26, [#allocation9]  }
  0x1b   :  { %s6004_s17 = scalar_lea.vmem %s103_s28, 256  ;;  %p6009_p11 = scmp.lt.s32.totalorder %s103_s28, %s103_s28 }
  0x1c   :  { %p6005_p10 = scmp.ne.s32.totalorder %s103_s28, %s6004_s17  ;;  %p6010_p12 = scmp.lt.s32.totalorder %s6004_s17, %s6004_s17 }
  0x1e   :  { %p6011_p13 = por %p6010_p12, %p6009_p11 }
  0x20   :  { %p6012_p0 = pnand %p6011_p13, %p6005_p10 }
  0x22   :  { %6015 = shalt.err (!%p6012_p0)
}
  0x23   :  { %108 = dma.hbm_to_vmem [thread:$0]  %s7259_s13, 256, %s103_s28, [#allocation12], %s6127_s21, %s6127_s21, %s6128_s22  }
  0x24   :  { %s6131_s19 = smov [#allocation2]   ;;  %s6132_s23 = smov [#allocation7]  }
  0x25   :  { %s43_s20 = sshll.u32 %s6131_s19, 4  ;;  %s66_s10 = sshll.u32 %s6132_s23, 4  ;;  %s44_s20 = int_to_ptr.vmem [resolvable:$true] %s43_s20  ;;  %s67_s10 = int_to_ptr.vmem [resolvable:$true] %s66_s10 }
  0x26   :  { %s6024_s24 = scalar_lea.vmem %s44_s20, 128  ;;  %p6029_p2 = scmp.lt.s32.totalorder %s44_s20, %s44_s20 }
  0x27   :  { %p6025_p1 = scmp.ne.s32.totalorder %s44_s20, %s6024_s24  ;;  %p6030_p3 = scmp.lt.s32.totalorder %s6024_s24, %s6024_s24 }
  0x29   :  { %p6031_p4 = por %p6030_p3, %p6029_p2 }
  0x2b   :  { %p6032_p5 = pnand %p6031_p4, %p6025_p1 }
  0x2d   :  { %6035 = shalt.err (!%p6032_p5)
}
  0x2e   :  { %46 = dma.hbm_to_vmem [thread:$0]  %s7252_s6, 128, %s44_s20, [#allocation3]  }
  0x2f   :  { %s6044_s27 = scalar_lea.vmem %s67_s10, 2048  ;;  %p6049_p7 = scmp.lt.s32.totalorder %s67_s10, %s67_s10 }
  0x30   :  { %p6045_p6 = scmp.ne.s32.totalorder %s67_s10, %s6044_s27  ;;  %p6050_p8 = scmp.lt.s32.totalorder %s6044_s27, %s6044_s27 }
  0x32   :  { %p6051_p9 = por %p6050_p8, %p6049_p7 }
  0x34   :  { %p6052_p10 = pnand %p6051_p9, %p6045_p6 }
  0x36   :  { %6055 = shalt.err (!%p6052_p10)
}
  0x37   :  { %72 = dma.hbm_to_vmem [thread:$0]  %s7255_s9, 2048, %s67_s10, [#allocation6], %s6127_s21, %s6127_s21, %s6128_s22  }
  0x38   :  { %s6133_s29 = smov [#allocation10]   ;;  %s6134_s16 = smov [#allocation13]  }
  0x39   :  { %s90_s30 = sshll.u32 %s6133_s29, 4  ;;  %s114_s6 = sshll.u32 %s6134_s16, 4  ;;  %s91_s30 = int_to_ptr.vmem [resolvable:$true] %s90_s30  ;;  %s115_s6 = int_to_ptr.vmem [resolvable:$true] %s114_s6 }
  0x3a   :  { %s6064_s17 = scalar_lea.vmem %s91_s30, 256  ;;  %p6069_p12 = scmp.lt.s32.totalorder %s91_s30, %s91_s30 }
  0x3b   :  { %p6065_p11 = scmp.ne.s32.totalorder %s91_s30, %s6064_s17  ;;  %p6070_p13 = scmp.lt.s32.totalorder %s6064_s17, %s6064_s17 }
  0x3d   :  { %p6071_p0 = por %p6070_p13, %p6069_p12 }
  0x3f   :  { %p6072_p1 = pnand %p6071_p0, %p6065_p11 }
  0x41   :  { %6075 = shalt.err (!%p6072_p1)
}
  0x42   :  { %96 = dma.hbm_to_vmem [thread:$0]  %s7258_s12, 256, %s91_s30, [#allocation9], %s6127_s21, %s6127_s21, %s6128_s22  }
  0x43   :  { %s6084_s9 = scalar_lea.vmem %s115_s6, 512  ;;  %p6089_p3 = scmp.lt.s32.totalorder %s115_s6, %s115_s6 }
  0x44   :  { %p6085_p2 = scmp.ne.s32.totalorder %s115_s6, %s6084_s9  ;;  %p6090_p4 = scmp.lt.s32.totalorder %s6084_s9, %s6084_s9 }
  0x46   :  { %p6091_p5 = por %p6090_p4, %p6089_p3 }
  0x48   :  { %p6092_p6 = pnand %p6091_p5, %p6085_p2 }
  0x4a   :  { %6095 = shalt.err (!%p6092_p6)
}
  0x4b   :  { %120 = dma.hbm_to_vmem [thread:$0]  %s7260_s14, 512, %s115_s6, [#allocation12], %s6127_s21, %s6127_s21, %s6128_s22  }
  0x4c   :  { %6116 = dma.done.wait [#allocation3], 128  }
  0x4d   :  { %6117 = vsyncadd [#allocation3], 4294967168 }
  0x4e   :  { %6118 = dma.done.wait [#allocation6], 2304  }
  0x4f   :  { %6119 = vsyncadd [#allocation6], 4294964992 }
  0x50   :  { %6120 = dma.done.wait [#allocation9], 320  }
  0x51   :  { %6121 = vsyncadd [#allocation9], 4294966976 }
  0x52   :  { %6122 = dma.done.wait [#allocation12], 768  }
  0x53   :  { %6123 = vsyncadd [#allocation12], 4294966528  ;;  %v6135_v0 = vmov 0   ;;  %v177_v1 = vld [vmem:[%s7248_s2] sm:$0x3f]  ;;  %vm190_vm0 = vcmask 259072  }
  0x54   :  { %5832 = vset.pattern.permute.xlu0 %v6135_v0  ;;  %v178_v2 = vld [vmem:[%s7246_s0] sm:$0x3f]  ;;  %v218_v14 = vld [vmem:[%s7251_s5 + $0x18] sm:$0xff]  ;;  %v6136_v15 = vmov 0.0   ;;  %v217_v16 = vld [vmem:[%s7251_s5 + $0x10] sm:$0xff]  ;;  %vm6137_vm1 = vmmov 0  }
  0x55   :  { %183 = vperm.xlu0 %5832, %v177_v1   ;;  %v179_v3 = vld [vmem:[%s7247_s1] sm:$0x3f]  ;;  %5306 = vmatprep.subr.mxu0 %v6136_v15  ;;  %v216_v17 = vld [vmem:[%s7251_s5 + $0x8] sm:$0xff]  ;;  %v4846_v23 = vld [vmem:[#allocation10] ss:$0 sm:$0xff]  ;;  %vm224_vm2 = vcmask 261120  }
  0x56   :  { %v180_v4 = vsub.f32 %v179_v3, %v178_v2  ;;  %5314 = vmatprep.mubr.msk.f32.mxu0 %vm6137_vm1, %v6136_v15  ;;  %5307 = vmatpush3.msra.mxu0 %v218_v14  ;;  %v215_v18 = vld [vmem:[%s7251_s5] sm:$0xff]  ;;  %v4847_v25 = vld [vmem:[#allocation11] ss:$0 sm:$0xff]  ;;  %vm308_vm3 = vcmask 1045504   ;;  %vm298_vm4 = vcmask 48128   ;;  %s6138_s30 = smov 96  }
  0x57   :  { %5317 = vmatprep.subr.mxu1 %v6136_v15  ;;  %5308 = vmatprep.subr.mxu0 %v6136_v15  ;;  %v4848_v28 = vld [vmem:[#allocation2] ss:$0 sm:$0xff]  ;;  %v6316_v33 = vld [vmem:[%s7250_s4 + $0x8] sm:$0xff]  ;;  %v6325_v34 = vld [vmem:[%s7250_s4 + $0x10] sm:$0xff]  ;;  %s6139_s2 = smov 64   ;;  %vm608_vm5 = vcmask 195584  }
  0x58   :  { %5319 = vmatprep.mubr.msk.f32.mxu1 %vm6137_vm1, %v6136_v15  ;;  %5309 = vmatpush3.msra.mxu0 %v217_v16  ;;  %v6302_v31 = vld [vmem:[%s7250_s4] sm:$0xff]  ;;  %v6342_v40 = vld [vmem:[%s7250_s4 + $0x28] sm:$0xff]  ;;  %v6351_v44 = vld [vmem:[%s7250_s4 + $0x30] sm:$0xff]  ;;  %vm886_vm6 = vcmask 523264   ;;  %vm1853_vm7 = vcmask 64512   ;;  %vm4681_vm8 = vcmask 257024  }
  0x59   :  { %5310 = vmatprep.subr.mxu0 %v6136_v15  ;;  %v6336_v36 = vld [vmem:[%s7250_s4 + $0x20] sm:$0xff]  ;;  %v6369_v60 = vld [vmem:[%s7250_s4 + $0x48] sm:$0xff]  ;;  %v6376_v0 = vld [vmem:[%s7250_s4 + $0x50] sm:$0xff]  ;;  %vm4689_vm9 = vcmask 261124   ;;  %vm4697_vm10 = vcmask 1040384   ;;  %vm4702_vm11 = vcmask 254976  }
  0x5a   :  { %5311 = vmatpush3.msra.mxu0 %v216_v17  ;;  %v6363_v57 = vld [vmem:[%s7250_s4 + $0x40] sm:$0xff]  ;;  %v685_v17 = vld [vmem:[%s7253_s7 + $0x18] sm:$0xff] }
  0x5b   :  { %5312 = vmatprep.subr.mxu0 %v6136_v15 }
  0x5c   :  { %5313 = vmatpush3.msra.mxu0 %v215_v18  ;;  %v684_v18 = vld [vmem:[%s7253_s7 + $0x10] sm:$0xff] }
  0x5d   :  { %5328 = vmatprep.subr.mxu0 %v6136_v15 }
  0xd0   :  { %v184_v5 = vpop.permute.xlu0 %183 }
  0xd1   :  { %v186_v6 = vmul.f32 %v184_v5, %v180_v4 }
  0xd3   :  { %v6266_v7 = vadd.f32 %v186_v6, %v178_v2 }
  0xd5   :  { %v191_v8 = vsel %vm190_vm0, %v6266_v7, 0.0 }
  0xd6   :  { %192 = vadd.xlane.f32.xlu0 %v191_v8 }
 0x15f   :  { %v193_v9 = vpop.xlane.xlu0 %192 }
 0x160   :  { %v195_v10 = vmul.f32 0.03125, %v193_v9 }
 0x162   :  { %v196_v11 = vsub.f32 %v6266_v7, %v195_v10 }
 0x164   :  { %v197_v12 = vmul.f32 %v196_v11, %v196_v11 }
 0x166   :  { %v198_v13 = vsel %vm190_vm0, %v197_v12, 0.0 }
 0x167   :  { %199 = vadd.xlane.f32.xlu1 %v198_v13 }
 0x1f0   :  { %v200_v19 = vpop.xlane.xlu1 %199 }
 0x1f1   :  { %v201_v20 = vmul.f32 0.03125, %v200_v19  ;;  %v683_v19 = vld [vmem:[%s7253_s7 + $0x8] sm:$0xff] }
 0x1f3   :  { %v202_v21 = vadd.f32 1e-05, %v201_v20 }
 0x1f5   :  { %5833 = vrsqrt.f32 %v202_v21 }
 0x202   :  { %v5834_v22 = vpop.eup %5833 }
 0x203   :  { %v204_v24 = vmul.f32 %v5834_v22, %v196_v11 }
 0x205   :  { %v209_v26 = vmul.f32 %v4846_v23, %v204_v24 }
 0x207   :  { %v214_v27 = vadd.f32 %v4847_v25, %v209_v26 }
 0x209   :  { %5315 = vmatmul.mubr.msk.f32.vlgmr.msra.gmra.mxu0 %vm224_vm2, %v214_v27 }
 0x20a   :  { %5330 = vmatprep.mubr.msk.f32.mxu0 %vm6137_vm1, %v6136_v15 }
 0x2c9   :  { %v294_v29 = vpop.f32.mrf.mxu0 }
 0x2ca   :  { %v6297_v30 = vadd.f32 %v4848_v28, %v294_v29  ;;  %v6413_v29 = vld [vmem:[%s7250_s4 + $0x60] sm:$0xff] }
 0x2cb   :  { %v5316_v32 = vpop.f32.mrf.mxu0 }
 0x2cc   :  { %395 = vrot.lane.b32.xlu1 %v6297_v30, %s6138_s30  ;;  %5318 = vmatpush3.msk.msra.mxu1 %vm308_vm3, %v6297_v30 }
 0x2cd   :  { %5320 = vmatmul.mubr.msk.f32.vlgmr.msra.gmra.mxu1 %vm298_vm4, %v6302_v31  ;;  %5339 = vmatprep.subr.mxu1 %v6136_v15 }
 0x2ce   :  { %5322 = vmatprep.mubr.msk.f32.mxu1 %vm6137_vm1, %v6136_v15 }
 0x2d1   :  { %5323 = vmatmul.mubr.msk.f32.gmra.mxu1 %vm298_vm4, %v6316_v33 }
 0x2d2   :  { %5325 = vmatprep.mubr.msk.f32.mxu1 %vm6137_vm1, %v6136_v15 }
 0x2d5   :  { %5326 = vmatmul.mubr.msk.f32.gmra.mxu1 %vm298_vm4, %v6325_v34 }
 0x2d6   :  { %5341 = vmatprep.mubr.msk.f32.mxu1 %vm6137_vm1, %v6136_v15 }
 0x33e   :  { %v396_v35 = vpop.permute.xlu1 %395 }
 0x33f   :  { %5329 = vmatpush3.xpose.msk.msra.mxu0 %vm224_vm2, %v396_v35 }
 0x340   :  { %5350 = vmatprep.subr.mxu0 %v6136_v15 }
 0x38d   :  { %v378_v37 = vpop.f32.mrf.mxu1 }
 0x38e   :  { %v392_v38 = vmul.f32 %v6336_v36, %v378_v37  ;;  %v4863_v37 = vld [vmem:[#allocation5] ss:$0 sm:$0xff] }
 0x38f   :  { %v5321_v39 = vpop.f32.mrf.mxu1 }
 0x390   :  { %5331 = vmatmul.mubr.msk.f32.vlgmr.msra.gmra.mxu0 %vm224_vm2, %v392_v38 }
 0x391   :  { %v383_v41 = vpop.f32.mrf.mxu1  ;;  %5333 = vmatprep.mubr.msk.f32.mxu0 %vm6137_vm1, %v6136_v15 }
 0x392   :  { %v393_v42 = vmul.f32 %v6342_v40, %v383_v41 }
 0x393   :  { %v5324_v43 = vpop.f32.mrf.mxu1 }
 0x394   :  { %5334 = vmatmul.mubr.msk.f32.gmra.mxu0 %vm224_vm2, %v393_v42 }
 0x395   :  { %v388_v45 = vpop.f32.mrf.mxu1  ;;  %5336 = vmatprep.mubr.msk.f32.mxu0 %vm6137_vm1, %v6136_v15 }
 0x396   :  { %v394_v46 = vmul.f32 %v6351_v44, %v388_v45 }
 0x397   :  { %v5327_v47 = vpop.f32.mrf.mxu1 }
 0x398   :  { %5337 = vmatmul.mubr.msk.f32.gmra.mxu0 %vm224_vm2, %v394_v46 }
 0x399   :  { %5356 = vmatprep.mubr.msk.f32.mxu0 %vm6137_vm1, %v6136_v15 }
 0x450   :  { %v474_v48 = vpop.f32.mrf.mxu0 }
 0x451   :  { %v488_v49 = vmul.f32 1.442695, %v474_v48 }
 0x452   :  { %v5332_v50 = vpop.f32.mrf.mxu0 }
 0x453   :  { %5835 = vpow2.f32 %v488_v49  ;;  %v793_v50 = vld [vmem:[#allocation7 + $0x18] sm:$0xff] }
 0x454   :  { %v479_v51 = vpop.f32.mrf.mxu0 }
 0x455   :  { %v490_v52 = vmul.f32 1.442695, %v479_v51  ;;  %v792_v51 = vld [vmem:[#allocation7 + $0x10] sm:$0xff] }
 0x456   :  { %v5335_v53 = vpop.f32.mrf.mxu0 }
 0x457   :  { %5837 = vpow2.f32 %v490_v52  ;;  %v791_v52 = vld [vmem:[#allocation7 + $0x8] sm:$0xff]  ;;  %v880_v53 = vld [vmem:[%s7257_s11 + $0x38] sm:$0xff] }
 0x458   :  { %v484_v54 = vpop.f32.mrf.mxu0 }
 0x459   :  { %v492_v55 = vmul.f32 1.442695, %v484_v54  ;;  %v879_v54 = vld [vmem:[%s7257_s11 + $0x30] sm:$0xff] }
 0x45a   :  { %v5338_v56 = vpop.f32.mrf.mxu0 }
 0x45b   :  { %5839 = vpow2.f32 %v492_v55  ;;  %v878_v55 = vld [vmem:[%s7257_s11 + $0x28] sm:$0xff]  ;;  %v877_v56 = vld [vmem:[%s7257_s11 + $0x20] sm:$0xff] }
 0x460   :  { %v5836_v58 = vpop.eup %5835 }
 0x461   :  { %v494_v59 = vmul.f32 %v5836_v58, %v6363_v57  ;;  %v876_v58 = vld [vmem:[%s7257_s11 + $0x18] sm:$0xff] }
 0x463   :  { %v497_v61 = vsel %vm298_vm4, %v494_v59, 0.0 }
 0x464   :  { %v5838_v62 = vpop.eup %5837  ;;  %498 = vadd.xlane.f32.xlu1 %v497_v61 }
 0x465   :  { %v495_v63 = vmul.f32 %v5838_v62, %v6369_v60 }
 0x467   :  { %v500_v1 = vsel %vm298_vm4, %v495_v63, 0.0 }
 0x468   :  { %v5840_v2 = vpop.eup %5839  ;;  %501 = vadd.xlane.f32.xlu0 %v500_v1  ;;  %v4865_v1 = vld [vmem:[#allocation10 + $0x1] ss:$0 sm:$0xff] }
 0x469   :  { %v496_v3 = vmul.f32 %v5840_v2, %v6376_v0 }
 0x46b   :  { %v503_v4 = vsel %vm298_vm4, %v496_v3, 0.0 }
 0x46c   :  { %504 = vadd.xlane.f32.xlu0 %v503_v4 }
 0x482   :  { %512 = vrot.lane.b32.xlu0 %v6297_v30, %s6139_s2  ;;  %v682_v30 = vld [vmem:[%s7253_s7] sm:$0xff] }
 0x4ed   :  { %v499_v5 = vpop.xlane.xlu1 %498 }
 0x4ee   :  { %5841 = vrcp.f32 %v499_v5 }
 0x4f1   :  { %v502_v6 = vpop.xlane.xlu0 %501 }
 0x4f2   :  { %5843 = vrcp.f32 %v502_v6  ;;  %v875_v6 = vld [vmem:[%s7257_s11 + $0x10] sm:$0xff] }
 0x4f5   :  { %v505_v8 = vpop.xlane.xlu0 %504 }
 0x4f6   :  { %5845 = vrcp.f32 %v505_v8  ;;  %v874_v8 = vld [vmem:[%s7257_s11 + $0x8] sm:$0xff] }
 0x4f9   :  { %v513_v9 = vpop.permute.xlu0 %512 }
 0x4fa   :  { %5340 = vmatpush3.msk.msra.mxu1 %vm308_vm3, %v513_v9  ;;  %v873_v9 = vld [vmem:[%s7257_s11] sm:$0xff] }
 0x4fb   :  { %v5842_v10 = vpop.eup %5841  ;;  %5359 = vmatprep.subr.mxu1 %v6136_v15 }
 0x4fc   :  { %v509_v11 = vmul.f32 %v5842_v10, %v494_v59  ;;  %v4867_v10 = vld [vmem:[#allocation8] ss:$0 sm:$0xff] }
 0x4fe   :  { %5342 = vmatmul.mubr.msk.f32.vlgmr.msra.gmra.mxu1 %vm298_vm4, %v509_v11 }
 0x4ff   :  { %v5844_v12 = vpop.eup %5843  ;;  %5344 = vmatprep.mubr.msk.f32.mxu1 %vm6137_vm1, %v6136_v15  ;;  %5360 = vmatpush3.msra.mxu1 %v685_v17 }
 0x500   :  { %v510_v13 = vmul.f32 %v5844_v12, %v495_v63  ;;  %5361 = vmatprep.subr.mxu1 %v6136_v15 }
 0x501   :  { %5362 = vmatpush3.msra.mxu1 %v684_v18 }
 0x502   :  { %5345 = vmatmul.mubr.msk.f32.gmra.mxu1 %vm298_vm4, %v510_v13  ;;  %5363 = vmatprep.subr.mxu1 %v6136_v15 }
 0x503   :  { %v5846_v14 = vpop.eup %5845  ;;  %5347 = vmatprep.mubr.msk.f32.mxu1 %vm6137_vm1, %v6136_v15  ;;  %5364 = vmatpush3.msra.mxu1 %v683_v19 }
 0x504   :  { %v511_v16 = vmul.f32 %v5846_v14, %v496_v3  ;;  %5365 = vmatprep.subr.mxu1 %v6136_v15  ;;  %v4866_v3 = vld [vmem:[#allocation11 + $0x1] ss:$0 sm:$0xff] }
 0x505   :  { %5366 = vmatpush3.msra.mxu1 %v682_v30  ;;  %v4874_v30 = vld [vmem:[%s7251_s5 + $0x28] sm:$0xff] }
 0x506   :  { %5348 = vmatmul.mubr.msk.f32.gmra.mxu1 %vm298_vm4, %v511_v16  ;;  %5381 = vmatprep.subr.mxu1 %v6136_v15  ;;  %v4869_v16 = vld [vmem:[#allocation5 + $0x6] ss:$0 sm:$0xff] }
 0x507   :  { %5367 = vmatprep.mubr.msk.f32.mxu1 %vm6137_vm1, %v6136_v15 }
 0x5be   :  { %v591_v20 = vpop.f32.mrf.mxu1 }
 0x5bf   :  { %v605_v28 = vmul.f32 %v6336_v36, %v591_v20 }
 0x5c0   :  { %v5343_v21 = vpop.f32.mrf.mxu1 }
 0x5c2   :  { %v596_v22 = vpop.f32.mrf.mxu1 }
 0x5c3   :  { %v606_v27 = vmul.f32 %v6342_v40, %v596_v22 }
 0x5c4   :  { %v5346_v23 = vpop.f32.mrf.mxu1 }
 0x5c6   :  { %v601_v24 = vpop.f32.mrf.mxu1 }
 0x5c7   :  { %v607_v25 = vmul.f32 %v6351_v44, %v601_v24 }
 0x5c8   :  { %v5349_v26 = vpop.f32.mrf.mxu1 }
 0x5c9   :  { %5351 = vmatpush3.msra.mxu0 %v607_v25 }
 0x5ca   :  { %5352 = vmatprep.subr.mxu0 %v6136_v15 }
 0x5cb   :  { %5353 = vmatpush3.msra.mxu0 %v606_v27  ;;  %v4876_v27 = vld [vmem:[%s7251_s5 + $0x38] sm:$0xff] }
 0x5cc   :  { %5354 = vmatprep.subr.mxu0 %v6136_v15 }
 0x5cd   :  { %5355 = vmatpush3.msra.mxu0 %v605_v28  ;;  %v4875_v28 = vld [vmem:[%s7251_s5 + $0x30] sm:$0xff] }
 0x5ce   :  { %5357 = vmatmul.mubr.msk.f32.vlgmr.msra.gmra.mxu0 %vm608_vm5, %v6413_v29  ;;  %5370 = vmatprep.subr.mxu0 %v6136_v15 }
 0x5cf   :  { %5378 = vmatprep.mubr.msk.f32.mxu0 %vm6137_vm1, %v6136_v15  ;;  %5371 = vmatpush3.msra.mxu0 %v793_v50 }
 0x5d0   :  { %5372 = vmatprep.subr.mxu0 %v6136_v15 }
 0x5d1   :  { %5373 = vmatpush3.msra.mxu0 %v792_v51 }
 0x5d2   :  { %5374 = vmatprep.subr.mxu0 %v6136_v15 }
 0x5d3   :  { %5375 = vmatpush3.msra.mxu0 %v791_v52 }
 0x5d4   :  { %5376 = vmatprep.subr.mxu0 %v6136_v15 }
 0x68e   :  { %v678_v32 = vpop.f32.mrf.mxu0 }
 0x68f   :  { %5368 = vmatmul.mubr.msk.f32.vlgmr.msra.gmra.mxu1 %vm224_vm2, %v678_v32  ;;  %v4873_v32 = vld [vmem:[%s7251_s5 + $0x20] sm:$0xff] }
 0x690   :  { %v5358_v35 = vpop.f32.mrf.mxu0  ;;  %5397 = vmatprep.mubr.msk.f32.mxu1 %vm6137_vm1, %v6136_v15  ;;  %5382 = vmatpush3.msra.mxu1 %v880_v53 }
 0x691   :  { %5383 = vmatprep.subr.mxu1 %v6136_v15 }
 0x692   :  { %5384 = vmatpush3.msra.mxu1 %v879_v54 }
 0x693   :  { %5385 = vmatprep.subr.mxu1 %v6136_v15 }
 0x694   :  { %5386 = vmatpush3.msra.mxu1 %v878_v55 }
 0x695   :  { %5387 = vmatprep.subr.mxu1 %v6136_v15 }
 0x696   :  { %5388 = vmatpush3.msra.mxu1 %v877_v56 }
 0x697   :  { %5389 = vmatprep.subr.mxu1 %v6136_v15 }
 0x698   :  { %5390 = vmatpush3.msra.mxu1 %v876_v58 }
 0x699   :  { %5391 = vmatprep.subr.mxu1 %v6136_v15 }
 0x69a   :  { %5392 = vmatpush3.msra.mxu1 %v875_v6 }
 0x69b   :  { %5393 = vmatprep.subr.mxu1 %v6136_v15 }
 0x69c   :  { %5394 = vmatpush3.msra.mxu1 %v874_v8 }
 0x69d   :  { %5395 = vmatprep.subr.mxu1 %v6136_v15 }
 0x69e   :  { %5396 = vmatpush3.msra.mxu1 %v873_v9 }
 0x69f   :  { %5815 = vmatprep.subr.mxu1 %v6136_v15 }
 0x74f   :  { %v760_v38 = vpop.f32.mrf.mxu1 }
 0x750   :  { %v761_v39 = vadd.f32 %v4863_v37, %v760_v38 }
 0x751   :  { %v5369_v41 = vpop.f32.mrf.mxu1 }
 0x752   :  { %v6429_v42 = vadd.f32 %v761_v39, %v6266_v7  ;;  %v790_v7 = vld [vmem:[#allocation7] sm:$0xff] }
 0x753   :  { %5377 = vmatpush3.msra.mxu0 %v790_v7  ;;  %v4871_v41 = vld [vmem:[#allocation10 + $0x2] ss:$0 sm:$0xff] }
 0x754   :  { %v767_v43 = vsel %vm190_vm0, %v6429_v42, 0.0  ;;  %5400 = vmatprep.subr.mxu0 %v6136_v15 }
 0x755   :  { %768 = vadd.xlane.f32.xlu1 %v767_v43  ;;  %v4872_v43 = vld [vmem:[#allocation11 + $0x2] ss:$0 sm:$0xff] }
 0x7de   :  { %v769_v45 = vpop.xlane.xlu1 %768 }
 0x7df   :  { %v770_v46 = vmul.f32 0.03125, %v769_v45 }
 0x7e1   :  { %v771_v47 = vsub.f32 %v6429_v42, %v770_v46 }
 0x7e3   :  { %v772_v48 = vmul.f32 %v771_v47, %v771_v47 }
 0x7e5   :  { %v773_v49 = vsel %vm190_vm0, %v772_v48, 0.0 }
 0x7e6   :  { %774 = vadd.xlane.f32.xlu1 %v773_v49 }
 0x86f   :  { %v775_v59 = vpop.xlane.xlu1 %774 }
 0x870   :  { %v776_v61 = vmul.f32 0.03125, %v775_v59 }
 0x872   :  { %v777_v62 = vadd.f32 1e-05, %v776_v61 }
 0x874   :  { %5847 = vrsqrt.f32 %v777_v62 }
 0x881   :  { %v5848_v63 = vpop.eup %5847 }
 0x882   :  { %v779_v2 = vmul.f32 %v5848_v63, %v771_v47  ;;  %v4877_v47 = vld [vmem:[#allocation2 + $0x1] ss:$0 sm:$0xff] }
 0x884   :  { %v784_v4 = vmul.f32 %v4865_v1, %v779_v2 }
 0x886   :  { %v789_v5 = vadd.f32 %v4866_v3, %v784_v4 }
 0x888   :  { %5379 = vmatmul.mubr.msk.f32.vlgmr.msra.gmra.mxu0 %vm224_vm2, %v789_v5 }
 0x889   :  { %5408 = vmatprep.mubr.msk.f32.mxu0 %vm6137_vm1, %v6136_v15  ;;  %5401 = vmatpush3.msra.mxu0 %v4876_v27 }
 0x88a   :  { %5402 = vmatprep.subr.mxu0 %v6136_v15 }
 0x88b   :  { %5403 = vmatpush3.msra.mxu0 %v4875_v28 }
 0x88c   :  { %5404 = vmatprep.subr.mxu0 %v6136_v15 }
 0x88d   :  { %5405 = vmatpush3.msra.mxu0 %v4874_v30 }
 0x88e   :  { %5406 = vmatprep.subr.mxu0 %v6136_v15 }
 0x88f   :  { %5407 = vmatpush3.msra.mxu0 %v4873_v32 }
 0x890   :  { %5411 = vmatprep.subr.mxu0 %v6136_v15 }
 0x948   :  { %v868_v11 = vpop.f32.mrf.mxu0 }
 0x949   :  { %v869_v12 = vadd.f32 %v4867_v10, %v868_v11 }
 0x94a   :  { %v5380_v13 = vpop.f32.mrf.mxu0 }
 0x94b   :  { %v872_v14 = vmax.f32 %v869_v12, 0.0 }
 0x94d   :  { %5398 = vmatmul.mubr.msk.f32.vlgmr.msra.gmra.mxu1 %vm886_vm6, %v872_v14 }
 0x94e   :  { %5427 = vmatprep.mubr.msk.f32.mxu1 %vm6137_vm1, %v6136_v15 }
 0xa0d   :  { %v956_v17 = vpop.f32.mrf.mxu1 }
 0xa0e   :  { %v957_v18 = vadd.f32 %v4869_v16, %v956_v17 }
 0xa0f   :  { %v5399_v19 = vpop.f32.mrf.mxu1 }
 0xa10   :  { %v6478_v20 = vadd.f32 %v957_v18, %v6429_v42 }
 0xa12   :  { %v963_v21 = vsel %vm190_vm0, %v6478_v20, 0.0 }
 0xa13   :  { %964 = vadd.xlane.f32.xlu0 %v963_v21 }
 0xa9c   :  { %v965_v22 = vpop.xlane.xlu0 %964 }
 0xa9d   :  { %v966_v23 = vmul.f32 0.03125, %v965_v22 }
 0xa9f   :  { %v967_v24 = vsub.f32 %v6478_v20, %v966_v23 }
 0xaa1   :  { %v968_v25 = vmul.f32 %v967_v24, %v967_v24 }
 0xaa3   :  { %v969_v26 = vsel %vm190_vm0, %v968_v25, 0.0 }
 0xaa4   :  { %970 = vadd.xlane.f32.xlu1 %v969_v26 }
 0xb2d   :  { %v971_v35 = vpop.xlane.xlu1 %970 }
 0xb2e   :  { %v972_v37 = vmul.f32 0.03125, %v971_v35 }
 0xb30   :  { %v973_v38 = vadd.f32 1e-05, %v972_v37 }
 0xb32   :  { %5849 = vrsqrt.f32 %v973_v38  ;;  %v4895_v38 = vld [vmem:[%s7253_s7 + $0x38] sm:$0xff] }
 0xb3f   :  { %v5850_v39 = vpop.eup %5849 }
 0xb40   :  { %v975_v42 = vmul.f32 %v5850_v39, %v967_v24 }
 0xb42   :  { %v980_v45 = vmul.f32 %v4871_v41, %v975_v42  ;;  %v6584_v41 = vld [vmem:[%s7249_s3] sm:$0xff] }
 0xb43   :  { %v1747_v42 = vsel %vm224_vm2, %v6584_v41, 0.0 }
 0xb44   :  { %v985_v46 = vadd.f32 %v4872_v43, %v980_v45  ;;  %v4896_v43 = vld [vmem:[#allocation5 + $0x1] ss:$0 sm:$0xff] }
 0xb46   :  { %5409 = vmatmul.mubr.msk.f32.vlgmr.msra.gmra.mxu0 %vm224_vm2, %v985_v46 }
 0xb47   :  { %5413 = vmatprep.mubr.msk.f32.mxu0 %vm6137_vm1, %v6136_v15 }
 0xc06   :  { %v1065_v48 = vpop.f32.mrf.mxu0 }
 0xc07   :  { %v1066_v49 = vadd.f32 %v4877_v47, %v1065_v48 }
 0xc08   :  { %v5410_v50 = vpop.f32.mrf.mxu0 }
 0xc09   :  { %1155 = vrot.lane.b32.xlu1 %v1066_v49, %s6138_s30  ;;  %5412 = vmatpush3.msk.msra.mxu0 %vm308_vm3, %v1066_v49 }
 0xc0a   :  { %5414 = vmatmul.mubr.msk.f32.vlgmr.msra.gmra.mxu0 %vm298_vm4, %v6302_v31  ;;  %5422 = vmatprep.subr.mxu0 %v6136_v15 }
 0xc0b   :  { %5416 = vmatprep.mubr.msk.f32.mxu0 %vm6137_vm1, %v6136_v15 }
 0xc0e   :  { %5417 = vmatmul.mubr.msk.f32.gmra.mxu0 %vm298_vm4, %v6316_v33 }
 0xc0f   :  { %5419 = vmatprep.mubr.msk.f32.mxu0 %vm6137_vm1, %v6136_v15 }
 0xc12   :  { %5420 = vmatmul.mubr.msk.f32.gmra.mxu0 %vm298_vm4, %v6325_v34 }
 0xc13   :  { %5424 = vmatprep.mubr.msk.f32.mxu0 %vm6137_vm1, %v6136_v15 }
 0xc7b   :  { %v1156_v51 = vpop.permute.xlu1 %1155 }
 0xc7c   :  { %5423 = vmatpush3.xpose.msk.msra.mxu0 %vm224_vm2, %v1156_v51  ;;  %5816 = vmatpush3.xpose.msk.msra.mxu1 %vm224_vm2, %v1156_v51 }
 0xc7d   :  { %5433 = vmatprep.subr.mxu0 %v6136_v15  ;;  %5444 = vmatprep.subr.mxu1 %v6136_v15 }
 0xcca   :  { %v1138_v31 = vpop.f32.mrf.mxu0 }
 0xccb   :  { %v1152_v33 = vmul.f32 %v6336_v36, %v1138_v31 }
 0xccc   :  { %v5415_v52 = vpop.f32.mrf.mxu0 }
 0xccd   :  { %5425 = vmatmul.mubr.msk.f32.vlgmr.msra.gmra.mxu0 %vm224_vm2, %v1152_v33 }
 0xcce   :  { %v1143_v7 = vpop.f32.mrf.mxu0  ;;  %5435 = vmatprep.mubr.msk.f32.mxu0 %vm6137_vm1, %v6136_v15 }
 0xccf   :  { %v1153_v34 = vmul.f32 %v6342_v40, %v1143_v7 }
 0xcd0   :  { %v5418_v53 = vpop.f32.mrf.mxu0 }
 0xcd1   :  { %5428 = vmatmul.mubr.msk.f32.vlgmr.msra.gmra.mxu1 %vm224_vm2, %v1153_v34 }
 0xcd2   :  { %v1148_v54 = vpop.f32.mrf.mxu0  ;;  %5430 = vmatprep.mubr.msk.f32.mxu1 %vm6137_vm1, %v6136_v15 }
 0xcd3   :  { %v1154_v55 = vmul.f32 %v6351_v44, %v1148_v54 }
 0xcd4   :  { %v5421_v56 = vpop.f32.mrf.mxu0 }
 0xcd5   :  { %5431 = vmatmul.mubr.msk.f32.gmra.mxu1 %vm224_vm2, %v1154_v55  ;;  %v1551_v55 = vld [vmem:[#allocation7 + $0x38] sm:$0xff]  ;;  %v1550_v56 = vld [vmem:[#allocation7 + $0x30] sm:$0xff] }
 0xcd6   :  { %5450 = vmatprep.mubr.msk.f32.mxu1 %vm6137_vm1, %v6136_v15 }
 0xd8d   :  { %v1234_v58 = vpop.f32.mrf.mxu0 }
 0xd8e   :  { %v1248_v59 = vmul.f32 1.442695, %v1234_v58  ;;  %v1549_v58 = vld [vmem:[#allocation7 + $0x28] sm:$0xff] }
 0xd8f   :  { %v5426_v61 = vpop.f32.mrf.mxu0 }
 0xd90   :  { %5851 = vpow2.f32 %v1248_v59  ;;  %v1548_v59 = vld [vmem:[#allocation7 + $0x20] sm:$0xff] }
 0xd91   :  { %v1239_v62 = vpop.f32.mrf.mxu1  ;;  %v4909_v61 = vld [vmem:[%s7257_s11 + $0x78] sm:$0xff] }
 0xd92   :  { %v1250_v63 = vmul.f32 1.442695, %v1239_v62  ;;  %v4908_v62 = vld [vmem:[%s7257_s11 + $0x70] sm:$0xff] }
 0xd93   :  { %v5429_v1 = vpop.f32.mrf.mxu1 }
 0xd94   :  { %5853 = vpow2.f32 %v1250_v63  ;;  %v4907_v63 = vld [vmem:[%s7257_s11 + $0x68] sm:$0xff]  ;;  %v4906_v1 = vld [vmem:[%s7257_s11 + $0x60] sm:$0xff] }
 0xd95   :  { %v1244_v2 = vpop.f32.mrf.mxu1 }
 0xd96   :  { %v1252_v3 = vmul.f32 1.442695, %v1244_v2  ;;  %v4905_v2 = vld [vmem:[%s7257_s11 + $0x58] sm:$0xff] }
 0xd97   :  { %v5432_v4 = vpop.f32.mrf.mxu1 }
 0xd98   :  { %5855 = vpow2.f32 %v1252_v3 }
 0xd9d   :  { %v5852_v5 = vpop.eup %5851 }
 0xd9e   :  { %v1254_v6 = vmul.f32 %v5852_v5, %v6363_v57 }
 0xda0   :  { %v1257_v8 = vsel %vm298_vm4, %v1254_v6, 0.0 }
 0xda1   :  { %v5854_v9 = vpop.eup %5853  ;;  %1258 = vadd.xlane.f32.xlu1 %v1257_v8 }
 0xda2   :  { %v1255_v10 = vmul.f32 %v5854_v9, %v6369_v60 }
 0xda4   :  { %v1260_v11 = vsel %vm298_vm4, %v1255_v10, 0.0 }
 0xda5   :  { %v5856_v12 = vpop.eup %5855  ;;  %1261 = vadd.xlane.f32.xlu0 %v1260_v11  ;;  %v4898_v11 = vld [vmem:[#allocation10 + $0x3] ss:$0 sm:$0xff] }
 0xda6   :  { %v1256_v13 = vmul.f32 %v5856_v12, %v6376_v0 }
 0xda8   :  { %v1263_v14 = vsel %vm298_vm4, %v1256_v13, 0.0 }
 0xda9   :  { %1264 = vadd.xlane.f32.xlu0 %v1263_v14 }
 0xdbf   :  { %1272 = vrot.lane.b32.xlu0 %v1066_v49, %s6139_s2 }
 0xdde   :  { %1748 = vadd.xlane.f32.xlu0 %v1747_v42  ;;  %v6672_v42 = vld [vmem:[%s7250_s4 + $0x90] sm:$0xff] }
 0xe2a   :  { %v1259_v16 = vpop.xlane.xlu1 %1258 }
 0xe2b   :  { %5857 = vrcp.f32 %v1259_v16 }
 0xe2e   :  { %v1262_v57 = vpop.xlane.xlu0 %1261 }
 0xe2f   :  { %5859 = vrcp.f32 %v1262_v57 }
 0xe32   :  { %v1265_v17 = vpop.xlane.xlu0 %1264 }
 0xe33   :  { %5861 = vrcp.f32 %v1265_v17 }
 0xe36   :  { %v1273_v18 = vpop.permute.xlu0 %1272 }
 0xe37   :  { %5434 = vmatpush3.msk.msra.mxu0 %vm308_vm3, %v1273_v18  ;;  %v4919_v18 = vld [vmem:[%s7251_s5 + $0x58] sm:$0xff] }
 0xe38   :  { %v5858_v60 = vpop.eup %5857  ;;  %5464 = vmatprep.subr.mxu0 %v6136_v15 }
 0xe39   :  { %v1269_v19 = vmul.f32 %v5858_v60, %v1254_v6  ;;  %v4914_v60 = vld [vmem:[#allocation10 + $0x5] ss:$0 sm:$0xff] }
 0xe3b   :  { %5436 = vmatmul.mubr.msk.f32.vlgmr.msra.gmra.mxu0 %vm298_vm4, %v1269_v19  ;;  %v4918_v19 = vld [vmem:[%s7251_s5 + $0x50] sm:$0xff] }
 0xe3c   :  { %v5860_v0 = vpop.eup %5859  ;;  %5438 = vmatprep.mubr.msk.f32.mxu0 %vm6137_vm1, %v6136_v15  ;;  %5465 = vmatpush3.msra.mxu0 %v1551_v55 }
 0xe3d   :  { %v1270_v21 = vmul.f32 %v5860_v0, %v1255_v10  ;;  %5466 = vmatprep.subr.mxu0 %v6136_v15  ;;  %v4917_v0 = vld [vmem:[%s7251_s5 + $0x48] sm:$0xff] }
 0xe3e   :  { %5467 = vmatpush3.msra.mxu0 %v1550_v56 }
 0xe3f   :  { %5439 = vmatmul.mubr.msk.f32.gmra.mxu0 %vm298_vm4, %v1270_v21  ;;  %5468 = vmatprep.subr.mxu0 %v6136_v15 }
 0xe40   :  { %v5862_v22 = vpop.eup %5861  ;;  %5441 = vmatprep.mubr.msk.f32.mxu0 %vm6137_vm1, %v6136_v15  ;;  %5469 = vmatpush3.msra.mxu0 %v1549_v58 }
 0xe41   :  { %v1271_v23 = vmul.f32 %v5862_v22, %v1256_v13  ;;  %5470 = vmatprep.subr.mxu0 %v6136_v15  ;;  %v4899_v13 = vld [vmem:[#allocation11 + $0x3] ss:$0 sm:$0xff]  ;;  %v4915_v22 = vld [vmem:[#allocation11 + $0x5] ss:$0 sm:$0xff] }
 0xe42   :  { %5471 = vmatpush3.msra.mxu0 %v1548_v59 }
 0xe43   :  { %5442 = vmatmul.mubr.msk.f32.gmra.mxu0 %vm298_vm4, %v1271_v23  ;;  %5494 = vmatprep.subr.mxu0 %v6136_v15  ;;  %v4916_v23 = vld [vmem:[%s7251_s5 + $0x40] sm:$0xff] }
 0xe44   :  { %5472 = vmatprep.mubr.msk.f32.mxu0 %vm6137_vm1, %v6136_v15 }
 0xe67   :  { %v1749_v50 = vpop.xlane.xlu0 %1748 }
 0xe68   :  { %v1750_v51 = vmul.f32 0.03125, %v1749_v50  ;;  %v6694_v50 = vld [vmem:[%s7250_s4 + $0xa0] sm:$0xff] }
 0xe6a   :  { %v1751_v52 = vsub.f32 %v6584_v41, %v1750_v51  ;;  %v6699_v51 = vld [vmem:[%s7250_s4 + $0xa8] sm:$0xff] }
 0xe6c   :  { %v1752_v53 = vmul.f32 %v1751_v52, %v1751_v52 }
 0xefb   :  { %v1351_v24 = vpop.f32.mrf.mxu0 }
 0xefc   :  { %v1365_v37 = vmul.f32 %v6336_v36, %v1351_v24  ;;  %v4893_v36 = vld [vmem:[%s7253_s7 + $0x28] sm:$0xff] }
 0xefd   :  { %v5437_v25 = vpop.f32.mrf.mxu0 }
 0xefe   :  { %v4904_v25 = vld [vmem:[%s7257_s11 + $0x50] sm:$0xff] }
 0xeff   :  { %v1356_v26 = vpop.f32.mrf.mxu0 }
 0xf00   :  { %v1366_v35 = vmul.f32 %v6342_v40, %v1356_v26  ;;  %v4894_v40 = vld [vmem:[%s7253_s7 + $0x30] sm:$0xff]  ;;  %v4903_v26 = vld [vmem:[%s7257_s11 + $0x48] sm:$0xff] }
 0xf01   :  { %v5440_v27 = vpop.f32.mrf.mxu0 }
 0xf02   :  { %v4902_v27 = vld [vmem:[%s7257_s11 + $0x40] sm:$0xff] }
 0xf03   :  { %v1361_v28 = vpop.f32.mrf.mxu0 }
 0xf04   :  { %v1367_v30 = vmul.f32 %v6351_v44, %v1361_v28  ;;  %v4892_v44 = vld [vmem:[%s7253_s7 + $0x20] sm:$0xff] }
 0xf05   :  { %v5443_v32 = vpop.f32.mrf.mxu0  ;;  %v6654_v28 = vld [vmem:[%s7250_s4 + $0x80] sm:$0xff] }
 0xf06   :  { %5445 = vmatpush3.msra.mxu1 %v1367_v30  ;;  %v4900_v30 = vld [vmem:[#allocation8 + $0x1] ss:$0 sm:$0xff] }
 0xf07   :  { %5446 = vmatprep.subr.mxu1 %v6136_v15 }
 0xf08   :  { %5447 = vmatpush3.msra.mxu1 %v1366_v35 }
 0xf09   :  { %5448 = vmatprep.subr.mxu1 %v6136_v15 }
 0xf0a   :  { %5449 = vmatpush3.msra.mxu1 %v1365_v37 }
 0xf0b   :  { %5451 = vmatmul.mubr.msk.f32.vlgmr.msra.gmra.mxu1 %vm608_vm5, %v6413_v29  ;;  %5453 = vmatprep.subr.mxu1 %v6136_v15 }
 0xf0c   :  { %5454 = vmatpush3.msra.mxu1 %v4895_v38  ;;  %5461 = vmatprep.mubr.msk.f32.mxu1 %vm6137_vm1, %v6136_v15 }
 0xf0d   :  { %5455 = vmatprep.subr.mxu1 %v6136_v15 }
 0xf0e   :  { %5456 = vmatpush3.msra.mxu1 %v4894_v40  ;;  %v4920_v40 = vld [vmem:[#allocation2 + $0x2] ss:$0 sm:$0xff] }
 0xf0f   :  { %5457 = vmatprep.subr.mxu1 %v6136_v15 }
 0xf10   :  { %5458 = vmatpush3.msra.mxu1 %v4893_v36 }
 0xf11   :  { %5459 = vmatprep.subr.mxu1 %v6136_v15 }
 0xf12   :  { %5460 = vmatpush3.msra.mxu1 %v4892_v44 }
 0xf13   :  { %5475 = vmatprep.subr.mxu1 %v6136_v15 }
 0xfcb   :  { %v1434_v29 = vpop.f32.mrf.mxu1 }
 0xfcc   :  { %5462 = vmatmul.mubr.msk.f32.vlgmr.msra.gmra.mxu1 %vm224_vm2, %v1434_v29 }
 0xfcd   :  { %v5452_v39 = vpop.f32.mrf.mxu1  ;;  %5491 = vmatprep.mubr.msk.f32.mxu1 %vm6137_vm1, %v6136_v15  ;;  %5476 = vmatpush3.msra.mxu1 %v4909_v61 }
 0xfce   :  { %5477 = vmatprep.subr.mxu1 %v6136_v15  ;;  %v6664_v39 = vld [vmem:[%s7250_s4 + $0x88] sm:$0xff] }
 0xfcf   :  { %5478 = vmatpush3.msra.mxu1 %v4908_v62 }
 0xfd0   :  { %5479 = vmatprep.subr.mxu1 %v6136_v15 }
 0xfd1   :  { %5480 = vmatpush3.msra.mxu1 %v4907_v63 }
 0xfd2   :  { %5481 = vmatprep.subr.mxu1 %v6136_v15 }
 0xfd3   :  { %5482 = vmatpush3.msra.mxu1 %v4906_v1 }
 0xfd4   :  { %5483 = vmatprep.subr.mxu1 %v6136_v15 }
 0xfd5   :  { %5484 = vmatpush3.msra.mxu1 %v4905_v2 }
 0xfd6   :  { %5485 = vmatprep.subr.mxu1 %v6136_v15 }
 0xfd7   :  { %5486 = vmatpush3.msra.mxu1 %v4904_v25 }
 0xfd8   :  { %5487 = vmatprep.subr.mxu1 %v6136_v15 }
 0xfd9   :  { %5488 = vmatpush3.msra.mxu1 %v4903_v26 }
 0xfda   :  { %5489 = vmatprep.subr.mxu1 %v6136_v15 }
 0xfdb   :  { %5490 = vmatpush3.msra.mxu1 %v4902_v27 }
0x108c   :  { %v1517_v45 = vpop.f32.mrf.mxu1 }
0x108d   :  { %v1518_v46 = vadd.f32 %v4896_v43, %v1517_v45  ;;  %v6682_v43 = vld [vmem:[%s7250_s4 + $0x98] sm:$0xff] }
0x108e   :  { %v5463_v47 = vpop.f32.mrf.mxu1 }
0x108f   :  { %v6589_v48 = vadd.f32 %v1518_v46, %v6478_v20  ;;  %v1753_v20 = vsel %vm224_vm2, %v1752_v53, 0.0  ;;  %v6711_v53 = vld [vmem:[%s7250_s4 + $0xb8] sm:$0xff] }
0x1091   :  { %v1524_v49 = vsel %vm190_vm0, %v6589_v48, 0.0 }
0x1092   :  { %1525 = vadd.xlane.f32.xlu1 %v1524_v49 }
0x111b   :  { %v1526_v31 = vpop.xlane.xlu1 %1525 }
0x111c   :  { %v1527_v33 = vmul.f32 0.03125, %v1526_v31 }
0x111e   :  { %v1528_v7 = vsub.f32 %v6589_v48, %v1527_v33 }
0x1120   :  { %v1529_v34 = vmul.f32 %v1528_v7, %v1528_v7 }
0x1122   :  { %v1530_v54 = vsel %vm190_vm0, %v1529_v34, 0.0  ;;  %v6706_v34 = vld [vmem:[%s7250_s4 + $0xb0] sm:$0xff] }
0x1123   :  { %1531 = vadd.xlane.f32.xlu1 %v1530_v54 }
0x1127   :  { %1754 = vadd.xlane.f32.xlu1 %v1753_v20 }
0x11ac   :  { %v1532_v3 = vpop.xlane.xlu1 %1531 }
0x11ad   :  { %v1533_v4 = vmul.f32 0.03125, %v1532_v3  ;;  %v6724_v3 = vld [vmem:[%s7250_s4 + $0xc8] sm:$0xff] }
0x11af   :  { %v1534_v5 = vadd.f32 1e-05, %v1533_v4 }
0x11b0   :  { %v1755_v6 = vpop.xlane.xlu1 %1754 }
0x11b1   :  { %5863 = vrsqrt.f32 %v1534_v5  ;;  %v1756_v8 = vmul.f32 0.03125, %v1755_v6  ;;  %v6729_v5 = vld [vmem:[%s7250_s4 + $0xc0] sm:$0xff] }
0x11b3   :  { %v1757_v9 = vadd.f32 1e-05, %v1756_v8 }
0x11b5   :  { %5865 = vrsqrt.f32 %v1757_v9  ;;  %v6735_v9 = vld [vmem:[%s7250_s4 + $0xd8] sm:$0xff] }
0x11be   :  { %v5864_v10 = vpop.eup %5863 }
0x11bf   :  { %v1536_v12 = vmul.f32 %v5864_v10, %v1528_v7 }
0x11c1   :  { %v1541_v14 = vmul.f32 %v4898_v11, %v1536_v12 }
0x11c2   :  { %v5866_v16 = vpop.eup %5865 }
0x11c3   :  { %v1759_v57 = vmul.f32 %v5866_v16, %v1751_v52  ;;  %v1546_v17 = vadd.f32 %v4899_v13, %v1541_v14  ;;  %v6742_v13 = vld [vmem:[%s7250_s4 + $0xd0] sm:$0xff] }
0x11c5   :  { %5473 = vmatmul.mubr.msk.f32.vlgmr.msra.gmra.mxu0 %vm224_vm2, %v1546_v17  ;;  %v1764_v21 = vmul.f32 %v4914_v60, %v1759_v57 }
0x11c6   :  { %5495 = vmatpush3.msra.mxu0 %v4919_v18  ;;  %5502 = vmatprep.mubr.msk.f32.mxu0 %vm6137_vm1, %v6136_v15 }
0x11c7   :  { %5496 = vmatprep.subr.mxu0 %v6136_v15  ;;  %v1769_v24 = vadd.f32 %v4915_v22, %v1764_v21 }
0x11c8   :  { %5497 = vmatpush3.msra.mxu0 %v4918_v19 }
0x11c9   :  { %5498 = vmatprep.subr.mxu0 %v6136_v15 }
0x11ca   :  { %5499 = vmatpush3.msra.mxu0 %v4917_v0 }
0x11cb   :  { %5500 = vmatprep.subr.mxu0 %v6136_v15 }
0x11cc   :  { %5501 = vmatpush3.msra.mxu0 %v4916_v23 }
0x11cd   :  { %5503 = vmatmul.mubr.msk.f32.vlgmr.msra.gmra.mxu0 %vm224_vm2, %v1769_v24 }
0x11ce   :  { %5507 = vmatprep.mubr.msk.f32.mxu0 %vm1853_vm7, %v6654_v28 }
0x1285   :  { %v1626_v32 = vpop.f32.mrf.mxu0 }
0x1286   :  { %v1627_v35 = vadd.f32 %v4900_v30, %v1626_v32 }
0x1287   :  { %v5474_v37 = vpop.f32.mrf.mxu0 }
0x1288   :  { %v1630_v38 = vmax.f32 %v1627_v35, 0.0 }
0x128a   :  { %5492 = vmatmul.mubr.msk.f32.vlgmr.msra.gmra.mxu1 %vm886_vm6, %v1630_v38  ;;  %v4939_v38 = vld [vmem:[%s7253_s7 + $0x58] sm:$0xff] }
0x128d   :  { %v1849_v36 = vpop.f32.mrf.mxu0 }
0x128e   :  { %v6659_v44 = vadd.f32 %v4920_v40, %v1849_v36  ;;  %v4938_v40 = vld [vmem:[%s7253_s7 + $0x50] sm:$0xff]  ;;  %v4937_v36 = vld [vmem:[%s7253_s7 + $0x48] sm:$0xff] }
0x128f   :  { %v5504_v29 = vpop.f32.mrf.mxu0 }
0x1290   :  { %1956 = vrot.lane.b32.xlu1 %v6659_v44, %s6138_s30  ;;  %5505 = vmatprep.subr.mxu0 %v6659_v44 }
0x1291   :  { %5506 = vmatpush3.msra.mxu0 %v6659_v44 }
0x1292   :  { %5508 = vmatmul.mubr.msk.f32.vlgmr.msra.gmra.mxu0 %vm1853_vm7, %v6664_v39 }
0x1293   :  { %5510 = vmatprep.mubr.msk.f32.mxu0 %vm1853_vm7, %v6672_v42 }
0x1296   :  { %5511 = vmatmul.mubr.msk.f32.gmra.mxu0 %vm1853_vm7, %v6682_v43 }
0x1302   :  { %v1957_v45 = vpop.permute.xlu1 %1956 }
0x1303   :  { %5513 = vmatprep.subr.msk.mxu1 %vm224_vm2, %v1957_v45 }
0x1304   :  { %5514 = vmatpush3.xpose.msk.msra.mxu1 %vm224_vm2, %v1957_v45 }
0x1305   :  { %5529 = vmatprep.subr.mxu1 %v6136_v15 }
0x134a   :  { %v6689_v46 = vpop.f32.mrf.mxu1 }
0x134c   :  { %v5493_v47 = vpop.f32.mrf.mxu1 }
0x1352   :  { %v5509_v49 = vpop.f32.mrf.mxu0 }
0x1353   :  { %v1952_v52 = vmul.f32 %v5509_v49, %v6699_v51 }
0x1354   :  { %v1932_v31 = vpop.f32.mrf.mxu0 }
0x1355   :  { %v1951_v33 = vmul.f32 %v6694_v50, %v1932_v31 }
0x1356   :  { %v5512_v7 = vpop.f32.mrf.mxu0 }
0x1357   :  { %5515 = vmatprep.mubr.msk.f32.mxu1 %vm224_vm2, %v1951_v33  ;;  %v1954_v55 = vmul.f32 %v5512_v7, %v6711_v53  ;;  %v6779_v7 = vld [vmem:[%s7250_s4 + $0xe0] sm:$0xff] }
0x1358   :  { %v1942_v54 = vpop.f32.mrf.mxu0  ;;  %5516 = vmatmul.mubr.msk.f32.vlgmr.msra.gmra.mxu1 %vm224_vm2, %v1952_v52 }
0x1359   :  { %v1953_v20 = vmul.f32 %v6706_v34, %v1942_v54  ;;  %v4936_v54 = vld [vmem:[%s7253_s7 + $0x40] sm:$0xff] }
0x135b   :  { %5518 = vmatprep.mubr.msk.f32.mxu1 %vm224_vm2, %v1953_v20 }
0x135c   :  { %5519 = vmatmul.mubr.msk.f32.gmra.mxu1 %vm224_vm2, %v1954_v55 }
0x135d   :  { %5537 = vmatprep.mubr.msk.f32.mxu1 %vm6137_vm1, %v6136_v15 }
0x1418   :  { %v5517_v56 = vpop.f32.mrf.mxu1 }
0x1419   :  { %v2059_v58 = vmul.f32 1.442695, %v5517_v56  ;;  %v4910_v56 = vld [vmem:[#allocation5 + $0x7] ss:$0 sm:$0xff] }
0x141a   :  { %v2038_v59 = vpop.f32.mrf.mxu1 }
0x141b   :  { %5867 = vpow2.f32 %v2059_v58  ;;  %v2057_v61 = vmul.f32 1.442695, %v2038_v59  ;;  %v4940_v58 = vld [vmem:[#allocation5 + $0x2] ss:$0 sm:$0xff] }
0x141c   :  { %v5520_v62 = vpop.f32.mrf.mxu1 }
0x141d   :  { %5869 = vpow2.f32 %v2057_v61  ;;  %v2063_v63 = vmul.f32 1.442695, %v5520_v62  ;;  %v1715_v61 = vadd.f32 %v4910_v56, %v6689_v46 }
0x141e   :  { %v2048_v1 = vpop.f32.mrf.mxu1 }
0x141f   :  { %5871 = vpow2.f32 %v2063_v63  ;;  %v2061_v2 = vmul.f32 1.442695, %v2048_v1 }
0x1421   :  { %5873 = vpow2.f32 %v2061_v2 }
0x1428   :  { %v5868_v4 = vpop.eup %5867 }
0x1429   :  { %v2066_v6 = vmul.f32 %v5868_v4, %v6724_v3  ;;  %v1718_v4 = vadd.f32 %v1715_v61, %v6589_v48  ;;  %v4947_v48 = vld [vmem:[%s7251_s5 + $0x78] sm:$0xff] }
0x142a   :  { %v5870_v8 = vpop.eup %5869 }
0x142b   :  { %v2072_v10 = vsel %vm1853_vm7, %v2066_v6, 0.0  ;;  %v2065_v11 = vmul.f32 %v5870_v8, %v6729_v5 }
0x142c   :  { %v5872_v12 = vpop.eup %5871  ;;  %2073 = vadd.xlane.f32.xlu0 %v2072_v10 }
0x142d   :  { %v2069_v14 = vsel %vm1853_vm7, %v2065_v11, 0.0  ;;  %v2068_v16 = vmul.f32 %v5872_v12, %v6735_v9 }
0x142e   :  { %v5874_v57 = vpop.eup %5873  ;;  %2070 = vadd.xlane.f32.xlu1 %v2069_v14 }
0x142f   :  { %v2078_v17 = vsel %vm1853_vm7, %v2068_v16, 0.0  ;;  %v2067_v18 = vmul.f32 %v5874_v57, %v6742_v13 }
0x1430   :  { %2079 = vadd.xlane.f32.xlu0 %v2078_v17 }
0x1431   :  { %v2075_v60 = vsel %vm1853_vm7, %v2067_v18, 0.0 }
0x1434   :  { %2076 = vadd.xlane.f32.xlu0 %v2075_v60  ;;  %v4945_v60 = vld [vmem:[%s7251_s5 + $0x68] sm:$0xff] }
0x144a   :  { %2089 = vrot.lane.b32.xlu0 %v6659_v44, %s6139_s2 }
0x14b5   :  { %v2074_v19 = vpop.xlane.xlu0 %2073 }
0x14b6   :  { %5875 = vrcp.f32 %v2074_v19  ;;  %v4944_v19 = vld [vmem:[%s7251_s5 + $0x60] sm:$0xff] }
0x14b7   :  { %v2071_v0 = vpop.xlane.xlu1 %2070 }
0x14b8   :  { %5877 = vrcp.f32 %v2071_v0 }
0x14b9   :  { %v2080_v21 = vpop.xlane.xlu0 %2079 }
0x14ba   :  { %5879 = vrcp.f32 %v2080_v21 }
0x14bd   :  { %v2077_v22 = vpop.xlane.xlu0 %2076 }
0x14be   :  { %5881 = vrcp.f32 %v2077_v22 }
0x14c1   :  { %v2090_v23 = vpop.permute.xlu0 %2089 }
0x14c2   :  { %5521 = vmatprep.subr.mxu0 %v2090_v23 }
0x14c3   :  { %5522 = vmatpush3.msra.mxu0 %v2090_v23  ;;  %v5876_v24 = vpop.eup %5875 }
0x14c4   :  { %5540 = vmatprep.subr.mxu0 %v6136_v15  ;;  %v2086_v27 = vmul.f32 %v5876_v24, %v2066_v6  ;;  %v1721_v6 = vsel %vm190_vm0, %v1718_v4, 0.0 }
0x14c5   :  { %v5878_v25 = vpop.eup %5877 }
0x14c6   :  { %v2085_v26 = vmul.f32 %v5878_v25, %v2065_v11 }
0x14c7   :  { %v5880_v30 = vpop.eup %5879 }
0x14c8   :  { %5523 = vmatprep.mubr.msk.f32.mxu0 %vm1853_vm7, %v2085_v26  ;;  %v2088_v37 = vmul.f32 %v5880_v30, %v2068_v16 }
0x14c9   :  { %5524 = vmatmul.mubr.msk.f32.vlgmr.msra.gmra.mxu0 %vm1853_vm7, %v2086_v27  ;;  %v4942_v27 = vld [vmem:[#allocation10 + $0x6] ss:$0 sm:$0xff] }
0x14ca   :  { %5541 = vmatpush3.msra.mxu0 %v4939_v38  ;;  %v4912_v38 = vld [vmem:[#allocation10 + $0x4] ss:$0 sm:$0xff] }
0x14cb   :  { %v5882_v32 = vpop.eup %5881  ;;  %5542 = vmatprep.subr.mxu0 %v6136_v15 }
0x14cc   :  { %v2087_v35 = vmul.f32 %v5882_v32, %v2067_v18  ;;  %5543 = vmatpush3.msra.mxu0 %v4938_v40  ;;  %v4946_v18 = vld [vmem:[%s7251_s5 + $0x70] sm:$0xff] }
0x14cd   :  { %5544 = vmatprep.subr.mxu0 %v6136_v15  ;;  %v4943_v32 = vld [vmem:[#allocation11 + $0x6] ss:$0 sm:$0xff] }
0x14ce   :  { %5526 = vmatprep.mubr.msk.f32.mxu0 %vm1853_vm7, %v2087_v35  ;;  %5545 = vmatpush3.msra.mxu0 %v4937_v36 }
0x14cf   :  { %5527 = vmatmul.mubr.msk.f32.gmra.mxu0 %vm1853_vm7, %v2088_v37  ;;  %5546 = vmatprep.subr.mxu0 %v6136_v15 }
0x14d0   :  { %5548 = vmatprep.mubr.msk.f32.mxu0 %vm6137_vm1, %v6136_v15  ;;  %5547 = vmatpush3.msra.mxu0 %v4936_v54 }
0x14d1   :  { %5562 = vmatprep.subr.mxu0 %v6136_v15 }
0x1589   :  { %v5525_v44 = vpop.f32.mrf.mxu0 }
0x158a   :  { %v2190_v33 = vmul.f32 %v5525_v44, %v6699_v51  ;;  %v4913_v44 = vld [vmem:[#allocation11 + $0x4] ss:$0 sm:$0xff] }
0x158b   :  { %v2170_v29 = vpop.f32.mrf.mxu0 }
0x158c   :  { %v2189_v52 = vmul.f32 %v6694_v50, %v2170_v29 }
0x158f   :  { %v5528_v45 = vpop.f32.mrf.mxu0 }
0x1590   :  { %v2192_v47 = vmul.f32 %v5528_v45, %v6711_v53 }
0x1591   :  { %v2180_v49 = vpop.f32.mrf.mxu0 }
0x1592   :  { %v2191_v31 = vmul.f32 %v6706_v34, %v2180_v49  ;;  %5530 = vmatpush3.msra.mxu1 %v2192_v47  ;;  %v4948_v47 = vld [vmem:[#allocation2 + $0x3] ss:$0 sm:$0xff] }
0x1593   :  { %5531 = vmatprep.subr.mxu1 %v6136_v15 }
0x1594   :  { %5532 = vmatpush3.msra.mxu1 %v2191_v31 }
0x1595   :  { %5533 = vmatprep.subr.mxu1 %v6136_v15 }
0x1596   :  { %5534 = vmatpush3.msra.mxu1 %v2190_v33 }
0x1597   :  { %5535 = vmatprep.subr.mxu1 %v6136_v15 }
0x1598   :  { %5536 = vmatpush3.msra.mxu1 %v2189_v52 }
0x1599   :  { %5538 = vmatmul.mubr.msk.f32.vlgmr.msra.gmra.mxu1 %vm224_vm2, %v6779_v7  ;;  %5551 = vmatprep.subr.mxu1 %v6136_v15 }
0x159a   :  { %5559 = vmatprep.mubr.msk.f32.mxu1 %vm6137_vm1, %v6136_v15  ;;  %5552 = vmatpush3.msra.mxu1 %v4947_v48 }
0x159b   :  { %5553 = vmatprep.subr.mxu1 %v6136_v15 }
0x159c   :  { %5554 = vmatpush3.msra.mxu1 %v4946_v18 }
0x159d   :  { %5555 = vmatprep.subr.mxu1 %v6136_v15 }
0x159e   :  { %5556 = vmatpush3.msra.mxu1 %v4945_v60 }
0x159f   :  { %5557 = vmatprep.subr.mxu1 %v6136_v15 }
0x15a0   :  { %5558 = vmatpush3.msra.mxu1 %v4944_v19 }
0x1659   :  { %v2262_v20 = vpop.f32.mrf.mxu1 }
0x165a   :  { %5549 = vmatmul.mubr.msk.f32.vlgmr.msra.gmra.mxu0 %vm224_vm2, %v2262_v20 }
0x165b   :  { %v5539_v55 = vpop.f32.mrf.mxu1  ;;  %5570 = vmatprep.mubr.msk.f32.mxu0 %vm6137_vm1, %v6136_v15  ;;  %5563 = vmatpush3.msra.mxu0 %v4947_v48 }
0x165c   :  { %5564 = vmatprep.subr.mxu0 %v6136_v15 }
0x165d   :  { %5565 = vmatpush3.msra.mxu0 %v4946_v18 }
0x165e   :  { %5566 = vmatprep.subr.mxu0 %v6136_v15 }
0x165f   :  { %5567 = vmatpush3.msra.mxu0 %v4945_v60  ;;  %v6864_v60 = vld [vmem:[%s7250_s4 + $0x118] sm:$0xff] }
0x1660   :  { %5568 = vmatprep.subr.mxu0 %v6136_v15 }
0x1661   :  { %5569 = vmatpush3.msra.mxu0 %v4944_v19 }
0x171a   :  { %v2345_v59 = vpop.f32.mrf.mxu0 }
0x171b   :  { %v2346_v62 = vadd.f32 %v4940_v58, %v2345_v59 }
0x171c   :  { %v5550_v63 = vpop.f32.mrf.mxu0 }
0x171d   :  { %v6796_v1 = vadd.f32 %v2346_v62, %v6584_v41 }
0x171f   :  { %v2352_v2 = vsel %vm224_vm2, %v6796_v1, 0.0 }
0x1720   :  { %2353 = vadd.xlane.f32.xlu1 %v2352_v2 }
0x1724   :  { %1722 = vadd.xlane.f32.xlu1 %v1721_v6 }
0x17a9   :  { %v2354_v8 = vpop.xlane.xlu1 %2353 }
0x17aa   :  { %v2355_v10 = vmul.f32 0.03125, %v2354_v8 }
0x17ac   :  { %v2356_v11 = vsub.f32 %v6796_v1, %v2355_v10 }
0x17ad   :  { %v1723_v12 = vpop.xlane.xlu1 %1722 }
0x17ae   :  { %v1724_v46 = vmul.f32 0.03125, %v1723_v12  ;;  %v2357_v14 = vmul.f32 %v2356_v11, %v2356_v11 }
0x17b0   :  { %v1725_v16 = vsub.f32 %v1718_v4, %v1724_v46  ;;  %v2358_v41 = vsel %vm224_vm2, %v2357_v14, 0.0 }
0x17b1   :  { %2359 = vadd.xlane.f32.xlu0 %v2358_v41  ;;  %v6853_v41 = vld [vmem:[%s7250_s4 + $0x108] sm:$0xff] }
0x17b2   :  { %v1726_v57 = vmul.f32 %v1725_v16, %v1725_v16 }
0x17b4   :  { %v1727_v17 = vsel %vm190_vm0, %v1726_v57, 0.0 }
0x17b5   :  { %1728 = vadd.xlane.f32.xlu1 %v1727_v17  ;;  %v6858_v17 = vld [vmem:[%s7250_s4 + $0x100] sm:$0xff] }
0x183a   :  { %v2360_v0 = vpop.xlane.xlu0 %2359 }
0x183b   :  { %v2361_v21 = vmul.f32 0.03125, %v2360_v0 }
0x183d   :  { %v2362_v22 = vadd.f32 1e-05, %v2361_v21 }
0x183e   :  { %v1729_v23 = vpop.xlane.xlu1 %1728 }
0x183f   :  { %5883 = vrsqrt.f32 %v2362_v22  ;;  %v1730_v24 = vmul.f32 0.03125, %v1729_v23  ;;  %v6871_v22 = vld [vmem:[%s7250_s4 + $0x110] sm:$0xff] }
0x1841   :  { %v1731_v25 = vadd.f32 1e-05, %v1730_v24 }
0x1843   :  { %5885 = vrsqrt.f32 %v1731_v25 }
0x184c   :  { %v5884_v26 = vpop.eup %5883 }
0x184d   :  { %v2364_v30 = vmul.f32 %v5884_v26, %v2356_v11 }
0x184f   :  { %v2369_v35 = vmul.f32 %v4942_v27, %v2364_v30 }
0x1850   :  { %v5886_v37 = vpop.eup %5885 }
0x1851   :  { %v1733_v40 = vmul.f32 %v5886_v37, %v1725_v16  ;;  %v2374_v36 = vadd.f32 %v4943_v32, %v2369_v35 }
0x1853   :  { %5560 = vmatmul.mubr.msk.f32.vlgmr.msra.gmra.mxu1 %vm224_vm2, %v2374_v36  ;;  %v1738_v29 = vmul.f32 %v4912_v38, %v1733_v40 }
0x1854   :  { %5575 = vmatprep.mubr.msk.f32.mxu1 %vm1853_vm7, %v6654_v28 }
0x1855   :  { %v6826_v45 = vadd.f32 %v4913_v44, %v1738_v29 }
0x1857   :  { %5571 = vmatmul.mubr.msk.f32.vlgmr.msra.gmra.mxu0 %vm224_vm2, %v6826_v45 }
0x1913   :  { %v2454_v49 = vpop.f32.mrf.mxu1 }
0x1914   :  { %v2455_v31 = vadd.f32 %v4948_v47, %v2454_v49 }
0x1915   :  { %v5561_v33 = vpop.f32.mrf.mxu1 }
0x1916   :  { %5573 = vmatprep.subr.mxu1 %v2455_v31 }
0x1917   :  { %v2527_v52 = vpop.f32.mrf.mxu0  ;;  %5574 = vmatpush3.msra.mxu1 %v2455_v31 }
0x1918   :  { %v2528_v54 = vadd.f32 %v4948_v47, %v2527_v52  ;;  %5576 = vmatmul.mubr.msk.f32.vlgmr.msra.gmra.mxu1 %vm1853_vm7, %v6664_v39 }
0x1919   :  { %v5572_v20 = vpop.f32.mrf.mxu0  ;;  %5578 = vmatprep.mubr.msk.f32.mxu1 %vm1853_vm7, %v6672_v42 }
0x191a   :  { %2621 = vrot.lane.b32.xlu1 %v2528_v54, %s6138_s30  ;;  %v4968_v20 = vld [vmem:[%s7253_s7 + $0x70] sm:$0xff] }
0x191c   :  { %5579 = vmatmul.mubr.msk.f32.gmra.mxu1 %vm1853_vm7, %v6682_v43 }
0x198c   :  { %v2622_v55 = vpop.permute.xlu1 %2621 }
0x198d   :  { %5581 = vmatprep.subr.msk.mxu0 %vm224_vm2, %v2622_v55 }
0x198e   :  { %5582 = vmatpush3.xpose.msk.msra.mxu0 %vm224_vm2, %v2622_v55  ;;  %v4967_v55 = vld [vmem:[%s7253_s7 + $0x68] sm:$0xff] }
0x198f   :  { %5597 = vmatprep.subr.mxu0 %v6136_v15 }
0x19d8   :  { %v5577_v56 = vpop.f32.mrf.mxu1 }
0x19d9   :  { %v2617_v61 = vmul.f32 %v5577_v56, %v6699_v51 }
0x19da   :  { %v2597_v58 = vpop.f32.mrf.mxu1 }
0x19db   :  { %v2616_v59 = vmul.f32 %v6694_v50, %v2597_v58 }
0x19dc   :  { %v5580_v62 = vpop.f32.mrf.mxu1 }
0x19dd   :  { %5583 = vmatprep.mubr.msk.f32.mxu0 %vm224_vm2, %v2616_v59  ;;  %v2619_v4 = vmul.f32 %v5580_v62, %v6711_v53 }
0x19de   :  { %v2607_v63 = vpop.f32.mrf.mxu1  ;;  %5584 = vmatmul.mubr.msk.f32.vlgmr.msra.gmra.mxu0 %vm224_vm2, %v2617_v61 }
0x19df   :  { %v2618_v2 = vmul.f32 %v6706_v34, %v2607_v63 }
0x19e1   :  { %5586 = vmatprep.mubr.msk.f32.mxu0 %vm224_vm2, %v2618_v2 }
0x19e2   :  { %5587 = vmatmul.mubr.msk.f32.gmra.mxu0 %vm224_vm2, %v2619_v4 }
0x19e3   :  { %5605 = vmatprep.mubr.msk.f32.mxu0 %vm6137_vm1, %v6136_v15 }
0x1a9e   :  { %v5585_v6 = vpop.f32.mrf.mxu0 }
0x1a9f   :  { %v2724_v8 = vmul.f32 1.442695, %v5585_v6  ;;  %v4966_v6 = vld [vmem:[%s7253_s7 + $0x60] sm:$0xff] }
0x1aa0   :  { %v2703_v10 = vpop.f32.mrf.mxu0 }
0x1aa1   :  { %5887 = vpow2.f32 %v2724_v8  ;;  %v2722_v11 = vmul.f32 1.442695, %v2703_v10 }
0x1aa2   :  { %v5588_v12 = vpop.f32.mrf.mxu0 }
0x1aa3   :  { %5889 = vpow2.f32 %v2722_v11  ;;  %v2728_v46 = vmul.f32 1.442695, %v5588_v12  ;;  %v4970_v11 = vld [vmem:[#allocation5 + $0x3] ss:$0 sm:$0xff] }
0x1aa4   :  { %v2713_v14 = vpop.f32.mrf.mxu0 }
0x1aa5   :  { %5891 = vpow2.f32 %v2728_v46  ;;  %v2726_v16 = vmul.f32 1.442695, %v2713_v14 }
0x1aa7   :  { %5893 = vpow2.f32 %v2726_v16 }
0x1aae   :  { %v5888_v57 = vpop.eup %5887 }
0x1aaf   :  { %v2731_v48 = vmul.f32 %v5888_v57, %v6853_v41 }
0x1ab0   :  { %v5890_v18 = vpop.eup %5889 }
0x1ab1   :  { %v2737_v19 = vsel %vm298_vm4, %v2731_v48, 0.0  ;;  %v2730_v0 = vmul.f32 %v5890_v18, %v6858_v17 }
0x1ab2   :  { %v5892_v21 = vpop.eup %5891  ;;  %2738 = vadd.xlane.f32.xlu0 %v2737_v19 }
0x1ab3   :  { %v2734_v23 = vsel %vm298_vm4, %v2730_v0, 0.0  ;;  %v2733_v24 = vmul.f32 %v5892_v21, %v6864_v60 }
0x1ab4   :  { %v5894_v25 = vpop.eup %5893  ;;  %2735 = vadd.xlane.f32.xlu1 %v2734_v23  ;;  %v3042_v23 = vld [vmem:[#allocation7 + $0x58] sm:$0xff] }
0x1ab5   :  { %v2743_v26 = vsel %vm298_vm4, %v2733_v24, 0.0  ;;  %v2732_v27 = vmul.f32 %v5894_v25, %v6871_v22  ;;  %v3040_v25 = vld [vmem:[#allocation7 + $0x48] sm:$0xff] }
0x1ab6   :  { %2744 = vadd.xlane.f32.xlu0 %v2743_v26  ;;  %v4983_v26 = vld [vmem:[%s7257_s11 + $0xb8] sm:$0xff] }
0x1ab7   :  { %v2740_v30 = vsel %vm298_vm4, %v2732_v27, 0.0 }
0x1aba   :  { %2741 = vadd.xlane.f32.xlu0 %v2740_v30  ;;  %v4981_v30 = vld [vmem:[%s7257_s11 + $0xa8] sm:$0xff] }
0x1ad0   :  { %2754 = vrot.lane.b32.xlu0 %v2528_v54, %s6139_s2  ;;  %v4969_v54 = vld [vmem:[%s7253_s7 + $0x78] sm:$0xff] }
0x1b3b   :  { %v2739_v32 = vpop.xlane.xlu0 %2738 }
0x1b3c   :  { %5895 = vrcp.f32 %v2739_v32  ;;  %v4980_v32 = vld [vmem:[%s7257_s11 + $0xa0] sm:$0xff] }
0x1b3d   :  { %v2736_v35 = vpop.xlane.xlu1 %2735 }
0x1b3e   :  { %5897 = vrcp.f32 %v2736_v35  ;;  %v4979_v35 = vld [vmem:[%s7257_s11 + $0x98] sm:$0xff] }
0x1b3f   :  { %v2745_v37 = vpop.xlane.xlu0 %2744 }
0x1b40   :  { %5899 = vrcp.f32 %v2745_v37 }
0x1b43   :  { %v2742_v38 = vpop.xlane.xlu0 %2741 }
0x1b44   :  { %5901 = vrcp.f32 %v2742_v38 }
0x1b47   :  { %v2755_v40 = vpop.permute.xlu0 %2754 }
0x1b48   :  { %5589 = vmatprep.subr.msk.mxu1 %vm308_vm3, %v2755_v40 }
0x1b49   :  { %5590 = vmatpush3.msk.msra.mxu1 %vm308_vm3, %v2755_v40  ;;  %v5896_v36 = vpop.eup %5895 }
0x1b4a   :  { %5608 = vmatprep.subr.mxu1 %v6136_v15  ;;  %v2751_v47 = vmul.f32 %v5896_v36, %v2731_v48 }
0x1b4b   :  { %v5898_v44 = vpop.eup %5897 }
0x1b4c   :  { %v2750_v29 = vmul.f32 %v5898_v44, %v2730_v0  ;;  %v4972_v44 = vld [vmem:[#allocation10 + $0x7] ss:$0 sm:$0xff] }
0x1b4d   :  { %v5900_v49 = vpop.eup %5899 }
0x1b4e   :  { %5591 = vmatprep.mubr.msk.f32.mxu1 %vm298_vm4, %v2750_v29  ;;  %v2753_v52 = vmul.f32 %v5900_v49, %v2733_v24  ;;  %v3041_v24 = vld [vmem:[#allocation7 + $0x50] sm:$0xff] }
0x1b4f   :  { %5592 = vmatmul.mubr.msk.f32.vlgmr.msra.gmra.mxu1 %vm298_vm4, %v2751_v47  ;;  %v4973_v47 = vld [vmem:[#allocation11 + $0x7] ss:$0 sm:$0xff] }
0x1b50   :  { %5609 = vmatpush3.msra.mxu1 %v4969_v54  ;;  %v4976_v54 = vld [vmem:[%s7257_s11 + $0x80] sm:$0xff] }
0x1b51   :  { %v5902_v31 = vpop.eup %5901  ;;  %5610 = vmatprep.subr.mxu1 %v6136_v15 }
0x1b52   :  { %v2752_v33 = vmul.f32 %v5902_v31, %v2732_v27  ;;  %5611 = vmatpush3.msra.mxu1 %v4968_v20  ;;  %v4982_v27 = vld [vmem:[%s7257_s11 + $0xb0] sm:$0xff]  ;;  %v4974_v20 = vld [vmem:[#allocation8 + $0x2] ss:$0 sm:$0xff] }
0x1b53   :  { %5612 = vmatprep.subr.mxu1 %v6136_v15 }
0x1b54   :  { %5594 = vmatprep.mubr.msk.f32.mxu1 %vm298_vm4, %v2752_v33  ;;  %5613 = vmatpush3.msra.mxu1 %v4967_v55  ;;  %v4978_v33 = vld [vmem:[%s7257_s11 + $0x90] sm:$0xff] }
0x1b55   :  { %5595 = vmatmul.mubr.msk.f32.gmra.mxu1 %vm298_vm4, %v2753_v52  ;;  %5614 = vmatprep.subr.mxu1 %v6136_v15  ;;  %v4977_v52 = vld [vmem:[%s7257_s11 + $0x88] sm:$0xff] }
0x1b56   :  { %5616 = vmatprep.mubr.msk.f32.mxu1 %vm6137_vm1, %v6136_v15  ;;  %5615 = vmatpush3.msra.mxu1 %v4966_v6 }
0x1b57   :  { %5630 = vmatprep.subr.mxu1 %v6136_v15 }
0x1c0f   :  { %v5593_v56 = vpop.f32.mrf.mxu1 }
0x1c10   :  { %v2856_v2 = vmul.f32 %v5593_v56, %v6699_v51 }
0x1c11   :  { %v2836_v58 = vpop.f32.mrf.mxu1 }
0x1c12   :  { %v2855_v4 = vmul.f32 %v6694_v50, %v2836_v58 }
0x1c15   :  { %v5596_v59 = vpop.f32.mrf.mxu1 }
0x1c16   :  { %v2858_v61 = vmul.f32 %v5596_v59, %v6711_v53 }
0x1c17   :  { %v2846_v62 = vpop.f32.mrf.mxu1 }
0x1c18   :  { %v2857_v63 = vmul.f32 %v6706_v34, %v2846_v62  ;;  %5598 = vmatpush3.msra.mxu0 %v2858_v61  ;;  %v4984_v61 = vld [vmem:[#allocation5 + $0x8] ss:$0 sm:$0xff] }
0x1c19   :  { %5599 = vmatprep.subr.mxu0 %v6136_v15 }
0x1c1a   :  { %5600 = vmatpush3.msra.mxu0 %v2857_v63 }
0x1c1b   :  { %5601 = vmatprep.subr.mxu0 %v6136_v15 }
0x1c1c   :  { %5602 = vmatpush3.msra.mxu0 %v2856_v2 }
0x1c1d   :  { %5603 = vmatprep.subr.mxu0 %v6136_v15 }
0x1c1e   :  { %5604 = vmatpush3.msra.mxu0 %v2855_v4 }
0x1c1f   :  { %5606 = vmatmul.mubr.msk.f32.vlgmr.msra.gmra.mxu0 %vm224_vm2, %v6779_v7  ;;  %5619 = vmatprep.subr.mxu0 %v6136_v15 }
0x1c20   :  { %5627 = vmatprep.mubr.msk.f32.mxu0 %vm6137_vm1, %v6136_v15  ;;  %5620 = vmatpush3.msra.mxu0 %v3042_v23  ;;  %v4986_v23 = vld [vmem:[#allocation10 + $0x8] ss:$0 sm:$0xff] }
0x1c21   :  { %5621 = vmatprep.subr.mxu0 %v6136_v15 }
0x1c22   :  { %5622 = vmatpush3.msra.mxu0 %v3041_v24 }
0x1c23   :  { %5623 = vmatprep.subr.mxu0 %v6136_v15 }
0x1c24   :  { %5624 = vmatpush3.msra.mxu0 %v3040_v25  ;;  %v4987_v25 = vld [vmem:[#allocation11 + $0x8] ss:$0 sm:$0xff] }
0x1c25   :  { %5625 = vmatprep.subr.mxu0 %v6136_v15 }
0x1cdf   :  { %v2925_v8 = vpop.f32.mrf.mxu0 }
0x1ce0   :  { %5617 = vmatmul.mubr.msk.f32.vlgmr.msra.gmra.mxu1 %vm224_vm2, %v2925_v8 }
0x1ce1   :  { %v5607_v10 = vpop.f32.mrf.mxu0  ;;  %5646 = vmatprep.mubr.msk.f32.mxu1 %vm6137_vm1, %v6136_v15  ;;  %5631 = vmatpush3.msra.mxu1 %v4983_v26 }
0x1ce2   :  { %5632 = vmatprep.subr.mxu1 %v6136_v15 }
0x1ce3   :  { %5633 = vmatpush3.msra.mxu1 %v4982_v27  ;;  %v4992_v27 = vld [vmem:[#allocation2 + $0x4] ss:$0 sm:$0xff] }
0x1ce4   :  { %5634 = vmatprep.subr.mxu1 %v6136_v15 }
0x1ce5   :  { %5635 = vmatpush3.msra.mxu1 %v4981_v30 }
0x1ce6   :  { %5636 = vmatprep.subr.mxu1 %v6136_v15 }
0x1ce7   :  { %5637 = vmatpush3.msra.mxu1 %v4980_v32 }
0x1ce8   :  { %5638 = vmatprep.subr.mxu1 %v6136_v15 }
0x1ce9   :  { %5639 = vmatpush3.msra.mxu1 %v4979_v35 }
0x1cea   :  { %5640 = vmatprep.subr.mxu1 %v6136_v15 }
0x1ceb   :  { %5641 = vmatpush3.msra.mxu1 %v4978_v33 }
0x1cec   :  { %5642 = vmatprep.subr.mxu1 %v6136_v15 }
0x1ced   :  { %5643 = vmatpush3.msra.mxu1 %v4977_v52 }
0x1cee   :  { %5644 = vmatprep.subr.mxu1 %v6136_v15 }
0x1cef   :  { %5645 = vmatpush3.msra.mxu1 %v4976_v54 }
0x1da0   :  { %v3008_v12 = vpop.f32.mrf.mxu1 }
0x1da1   :  { %v3009_v46 = vadd.f32 %v4970_v11, %v3008_v12 }
0x1da2   :  { %v5618_v14 = vpop.f32.mrf.mxu1 }
0x1da3   :  { %v6920_v16 = vadd.f32 %v3009_v46, %v6796_v1  ;;  %v3039_v1 = vld [vmem:[#allocation7 + $0x40] sm:$0xff] }
0x1da4   :  { %5626 = vmatpush3.msra.mxu0 %v3039_v1  ;;  %v4991_v14 = vld [vmem:[%s7251_s5 + $0x98] sm:$0xff] }
0x1da5   :  { %v3015_v57 = vsel %vm224_vm2, %v6920_v16, 0.0  ;;  %5649 = vmatprep.subr.mxu0 %v6136_v15 }
0x1da6   :  { %3016 = vadd.xlane.f32.xlu1 %v3015_v57  ;;  %v4989_v57 = vld [vmem:[%s7251_s5 + $0x88] sm:$0xff] }
0x1e2f   :  { %v3017_v48 = vpop.xlane.xlu1 %3016 }
0x1e30   :  { %v3018_v18 = vmul.f32 0.03125, %v3017_v48  ;;  %v4988_v48 = vld [vmem:[%s7251_s5 + $0x80] sm:$0xff] }
0x1e32   :  { %v3019_v19 = vsub.f32 %v6920_v16, %v3018_v18 }
0x1e34   :  { %v3020_v0 = vmul.f32 %v3019_v19, %v3019_v19 }
0x1e36   :  { %v3021_v21 = vsel %vm224_vm2, %v3020_v0, 0.0 }
0x1e37   :  { %3022 = vadd.xlane.f32.xlu0 %v3021_v21 }
0x1ec0   :  { %v3023_v37 = vpop.xlane.xlu0 %3022 }
0x1ec1   :  { %v3024_v38 = vmul.f32 0.03125, %v3023_v37 }
0x1ec3   :  { %v3025_v40 = vadd.f32 1e-05, %v3024_v38 }
0x1ec5   :  { %5903 = vrsqrt.f32 %v3025_v40 }
0x1ed2   :  { %v5904_v36 = vpop.eup %5903 }
0x1ed3   :  { %v3027_v29 = vmul.f32 %v5904_v36, %v3019_v19 }
0x1ed5   :  { %v3032_v49 = vmul.f32 %v4972_v44, %v3027_v29 }
0x1ed7   :  { %v3037_v31 = vadd.f32 %v4973_v47, %v3032_v49 }
0x1ed9   :  { %5628 = vmatmul.mubr.msk.f32.vlgmr.msra.gmra.mxu0 %vm224_vm2, %v3037_v31 }
0x1eda   :  { %5657 = vmatprep.mubr.msk.f32.mxu0 %vm6137_vm1, %v6136_v15  ;;  %5650 = vmatpush3.msra.mxu0 %v4991_v14 }
0x1edb   :  { %5651 = vmatprep.subr.mxu0 %v6136_v15 }
0x1f99   :  { %v3117_v55 = vpop.f32.mrf.mxu0 }
0x1f9a   :  { %v3118_v56 = vadd.f32 %v4974_v20, %v3117_v55 }
0x1f9b   :  { %v5629_v58 = vpop.f32.mrf.mxu0 }
0x1f9c   :  { %v3121_v59 = vmax.f32 %v3118_v56, 0.0 }
0x1f9e   :  { %5647 = vmatmul.mubr.msk.f32.vlgmr.msra.gmra.mxu1 %vm886_vm6, %v3121_v59 }
0x205e   :  { %v3205_v62 = vpop.f32.mrf.mxu1 }
0x205f   :  { %v3206_v63 = vadd.f32 %v4984_v61, %v3205_v62 }
0x2060   :  { %v5648_v2 = vpop.f32.mrf.mxu1 }
0x2061   :  { %v6966_v4 = vadd.f32 %v3206_v63, %v6920_v16  ;;  %v4990_v16 = vld [vmem:[%s7251_s5 + $0x90] sm:$0xff] }
0x2062   :  { %5652 = vmatpush3.msra.mxu0 %v4990_v16 }
0x2063   :  { %v3212_v6 = vsel %vm224_vm2, %v6966_v4, 0.0  ;;  %5653 = vmatprep.subr.mxu0 %v6136_v15 }
0x2064   :  { %3213 = vadd.xlane.f32.xlu1 %v3212_v6  ;;  %5654 = vmatpush3.msra.mxu0 %v4989_v57 }
0x2065   :  { %5655 = vmatprep.subr.mxu0 %v6136_v15 }
0x2066   :  { %5656 = vmatpush3.msra.mxu0 %v4988_v48 }
0x20ed   :  { %v3214_v8 = vpop.xlane.xlu1 %3213 }
0x20ee   :  { %v3215_v10 = vmul.f32 0.03125, %v3214_v8 }
0x20f0   :  { %v3216_v11 = vsub.f32 %v6966_v4, %v3215_v10 }
0x20f2   :  { %v3217_v12 = vmul.f32 %v3216_v11, %v3216_v11 }
0x20f4   :  { %v3218_v46 = vsel %vm224_vm2, %v3217_v12, 0.0 }
0x20f5   :  { %3219 = vadd.xlane.f32.xlu1 %v3218_v46 }
0x217e   :  { %v3220_v18 = vpop.xlane.xlu1 %3219 }
0x217f   :  { %v3221_v19 = vmul.f32 0.03125, %v3220_v18 }
0x2181   :  { %v3222_v0 = vadd.f32 1e-05, %v3221_v19 }
0x2183   :  { %5905 = vrsqrt.f32 %v3222_v0 }
0x2190   :  { %v5906_v21 = vpop.eup %5905 }
0x2191   :  { %v3224_v24 = vmul.f32 %v5906_v21, %v3216_v11  ;;  %v5011_v21 = vld [vmem:[%s7253_s7 + $0x98] sm:$0xff] }
0x2193   :  { %v3229_v1 = vmul.f32 %v4986_v23, %v3224_v24  ;;  %v5010_v23 = vld [vmem:[%s7253_s7 + $0x90] sm:$0xff]  ;;  %v5009_v24 = vld [vmem:[%s7253_s7 + $0x88] sm:$0xff] }
0x2195   :  { %v3234_v26 = vadd.f32 %v4987_v25, %v3229_v1  ;;  %v5008_v25 = vld [vmem:[%s7253_s7 + $0x80] sm:$0xff] }
0x2197   :  { %5658 = vmatmul.mubr.msk.f32.vlgmr.msra.gmra.mxu0 %vm224_vm2, %v3234_v26 }
0x2198   :  { %5662 = vmatprep.mubr.msk.f32.mxu0 %vm1853_vm7, %v6654_v28 }
0x2257   :  { %v3314_v30 = vpop.f32.mrf.mxu0 }
0x2258   :  { %v3315_v32 = vadd.f32 %v4992_v27, %v3314_v30 }
0x2259   :  { %v5659_v35 = vpop.f32.mrf.mxu0 }
0x225a   :  { %3408 = vrot.lane.b32.xlu1 %v3315_v32, %s6138_s30  ;;  %5660 = vmatprep.subr.mxu0 %v3315_v32 }
0x225b   :  { %5661 = vmatpush3.msra.mxu0 %v3315_v32 }
0x225c   :  { %5663 = vmatmul.mubr.msk.f32.vlgmr.msra.gmra.mxu0 %vm1853_vm7, %v6664_v39 }
0x225d   :  { %5665 = vmatprep.mubr.msk.f32.mxu0 %vm1853_vm7, %v6672_v42 }
0x2260   :  { %5666 = vmatmul.mubr.msk.f32.gmra.mxu0 %vm1853_vm7, %v6682_v43 }
0x22cc   :  { %v3409_v37 = vpop.permute.xlu1 %3408 }
0x22cd   :  { %5668 = vmatprep.subr.msk.mxu1 %vm224_vm2, %v3409_v37 }
0x22ce   :  { %5669 = vmatpush3.xpose.msk.msra.mxu1 %vm224_vm2, %v3409_v37 }
0x22cf   :  { %5684 = vmatprep.subr.mxu1 %v6136_v15 }
0x231c   :  { %v5664_v28 = vpop.f32.mrf.mxu0 }
0x231d   :  { %v3404_v36 = vmul.f32 %v5664_v28, %v6699_v51 }
0x231e   :  { %v3384_v38 = vpop.f32.mrf.mxu0 }
0x231f   :  { %v3403_v40 = vmul.f32 %v6694_v50, %v3384_v38 }
0x2320   :  { %v5667_v39 = vpop.f32.mrf.mxu0 }
0x2321   :  { %5670 = vmatprep.mubr.msk.f32.mxu1 %vm224_vm2, %v3403_v40  ;;  %v3406_v44 = vmul.f32 %v5667_v39, %v6711_v53  ;;  %v5012_v40 = vld [vmem:[#allocation5 + $0x4] ss:$0 sm:$0xff] }
0x2322   :  { %v3394_v42 = vpop.f32.mrf.mxu0  ;;  %5671 = vmatmul.mubr.msk.f32.vlgmr.msra.gmra.mxu1 %vm224_vm2, %v3404_v36 }
0x2323   :  { %v3405_v43 = vmul.f32 %v6706_v34, %v3394_v42 }
0x2325   :  { %5673 = vmatprep.mubr.msk.f32.mxu1 %vm224_vm2, %v3405_v43 }
0x2326   :  { %5674 = vmatmul.mubr.msk.f32.gmra.mxu1 %vm224_vm2, %v3406_v44 }
0x2327   :  { %5692 = vmatprep.mubr.msk.f32.mxu1 %vm6137_vm1, %v6136_v15 }
0x23e2   :  { %v5672_v29 = vpop.f32.mrf.mxu1 }
0x23e3   :  { %v3511_v47 = vmul.f32 1.442695, %v5672_v29 }
0x23e4   :  { %v3490_v49 = vpop.f32.mrf.mxu1 }
0x23e5   :  { %5907 = vpow2.f32 %v3511_v47  ;;  %v3509_v31 = vmul.f32 1.442695, %v3490_v49  ;;  %v5020_v49 = vld [vmem:[#allocation2 + $0x5] ss:$0 sm:$0xff] }
0x23e6   :  { %v5675_v33 = vpop.f32.mrf.mxu1 }
0x23e7   :  { %5909 = vpow2.f32 %v3509_v31  ;;  %v3515_v52 = vmul.f32 1.442695, %v5675_v33 }
0x23e8   :  { %v3500_v54 = vpop.f32.mrf.mxu1 }
0x23e9   :  { %5911 = vpow2.f32 %v3515_v52  ;;  %v3513_v20 = vmul.f32 1.442695, %v3500_v54 }
0x23eb   :  { %5913 = vpow2.f32 %v3513_v20 }
0x23f2   :  { %v5908_v55 = vpop.eup %5907 }
0x23f3   :  { %v3518_v56 = vmul.f32 %v5908_v55, %v6724_v3 }
0x23f4   :  { %v5910_v58 = vpop.eup %5909 }
0x23f5   :  { %v3524_v59 = vsel %vm1853_vm7, %v3518_v56, 0.0  ;;  %v3517_v61 = vmul.f32 %v5910_v58, %v6729_v5 }
0x23f6   :  { %v5912_v62 = vpop.eup %5911  ;;  %3525 = vadd.xlane.f32.xlu0 %v3524_v59 }
0x23f7   :  { %v3521_v63 = vsel %vm1853_vm7, %v3517_v61, 0.0  ;;  %v3520_v2 = vmul.f32 %v5912_v62, %v6735_v9 }
0x23f8   :  { %v5914_v6 = vpop.eup %5913  ;;  %3522 = vadd.xlane.f32.xlu1 %v3521_v63  ;;  %v5015_v63 = vld [vmem:[#allocation11 + $0x9] ss:$0 sm:$0xff] }
0x23f9   :  { %v3530_v8 = vsel %vm1853_vm7, %v3520_v2, 0.0  ;;  %v3519_v10 = vmul.f32 %v5914_v6, %v6742_v13 }
0x23fa   :  { %3531 = vadd.xlane.f32.xlu0 %v3530_v8  ;;  %v5947_v8 = vld [vmem:[%s7250_s4 + $0x80] sm:$0xff] }
0x23fb   :  { %v3527_v3 = vsel %vm1853_vm7, %v3519_v10, 0.0 }
0x23fe   :  { %3528 = vadd.xlane.f32.xlu0 %v3527_v3 }
0x2414   :  { %3541 = vrot.lane.b32.xlu0 %v3315_v32, %s6139_s2 }
0x247f   :  { %v3526_v11 = vpop.xlane.xlu0 %3525 }
0x2480   :  { %5915 = vrcp.f32 %v3526_v11 }
0x2481   :  { %v3523_v5 = vpop.xlane.xlu1 %3522 }
0x2482   :  { %5917 = vrcp.f32 %v3523_v5  ;;  %v5948_v5 = vld [vmem:[%s7250_s4 + $0x88] sm:$0xff] }
0x2483   :  { %v3532_v12 = vpop.xlane.xlu0 %3531 }
0x2484   :  { %5919 = vrcp.f32 %v3532_v12  ;;  %v5949_v12 = vld [vmem:[%s7250_s4 + $0x90] sm:$0xff] }
0x2487   :  { %v3529_v46 = vpop.xlane.xlu0 %3528 }
0x2488   :  { %5921 = vrcp.f32 %v3529_v46  ;;  %v5950_v46 = vld [vmem:[%s7250_s4 + $0x98] sm:$0xff] }
0x248b   :  { %v3542_v9 = vpop.permute.xlu0 %3541 }
0x248c   :  { %5676 = vmatprep.subr.mxu0 %v3542_v9 }
0x248d   :  { %5677 = vmatpush3.msra.mxu0 %v3542_v9  ;;  %v5916_v14 = vpop.eup %5915 }
0x248e   :  { %5695 = vmatprep.subr.mxu0 %v6136_v15  ;;  %v3538_v57 = vmul.f32 %v5916_v14, %v3518_v56 }
0x248f   :  { %v5918_v13 = vpop.eup %5917 }
0x2490   :  { %v3537_v16 = vmul.f32 %v5918_v13, %v3517_v61  ;;  %v5014_v61 = vld [vmem:[#allocation10 + $0x9] ss:$0 sm:$0xff] }
0x2491   :  { %v5920_v48 = vpop.eup %5919  ;;  %v7111_v13 = vld [vmem:[%s7250_s4 + $0xa0] sm:$0xff] }
0x2492   :  { %5678 = vmatprep.mubr.msk.f32.mxu0 %vm1853_vm7, %v3537_v16  ;;  %v3540_v0 = vmul.f32 %v5920_v48, %v3520_v2 }
0x2493   :  { %5679 = vmatmul.mubr.msk.f32.vlgmr.msra.gmra.mxu0 %vm1853_vm7, %v3538_v57  ;;  %v7117_v57 = vld [vmem:[%s7250_s4 + $0xa8] sm:$0xff] }
0x2494   :  { %5696 = vmatpush3.msra.mxu0 %v5011_v21 }
0x2495   :  { %v5922_v18 = vpop.eup %5921  ;;  %5697 = vmatprep.subr.mxu0 %v6136_v15 }
0x2496   :  { %v3539_v19 = vmul.f32 %v5922_v18, %v3519_v10  ;;  %5698 = vmatpush3.msra.mxu0 %v5010_v23  ;;  %v7131_v23 = vld [vmem:[%s7250_s4 + $0xb8] sm:$0xff] }
0x2497   :  { %5699 = vmatprep.subr.mxu0 %v6136_v15 }
0x2498   :  { %5681 = vmatprep.mubr.msk.f32.mxu0 %vm1853_vm7, %v3539_v19  ;;  %5700 = vmatpush3.msra.mxu0 %v5009_v24 }
0x2499   :  { %5682 = vmatmul.mubr.msk.f32.gmra.mxu0 %vm1853_vm7, %v3540_v0  ;;  %5701 = vmatprep.subr.mxu0 %v6136_v15  ;;  %v7125_v0 = vld [vmem:[%s7250_s4 + $0xb0] sm:$0xff] }
0x249a   :  { %5703 = vmatprep.mubr.msk.f32.mxu0 %vm6137_vm1, %v6136_v15  ;;  %5702 = vmatpush3.msra.mxu0 %v5008_v25 }
0x249b   :  { %5717 = vmatprep.subr.mxu0 %v6136_v15 }
0x2553   :  { %v5680_v1 = vpop.f32.mrf.mxu0 }
0x2554   :  { %v3642_v37 = vmul.f32 %v5680_v1, %v6699_v51  ;;  %v5019_v51 = vld [vmem:[%s7251_s5 + $0xb8] sm:$0xff] }
0x2555   :  { %v3622_v26 = vpop.f32.mrf.mxu0 }
0x2556   :  { %v3641_v28 = vmul.f32 %v6694_v50, %v3622_v26  ;;  %v5018_v50 = vld [vmem:[%s7251_s5 + $0xb0] sm:$0xff] }
0x2559   :  { %v5683_v27 = vpop.f32.mrf.mxu0 }
0x255a   :  { %v3644_v30 = vmul.f32 %v5683_v27, %v6711_v53  ;;  %v5016_v53 = vld [vmem:[%s7251_s5 + $0xa0] sm:$0xff] }
0x255b   :  { %v3632_v32 = vpop.f32.mrf.mxu0 }
0x255c   :  { %v3643_v35 = vmul.f32 %v6706_v34, %v3632_v32  ;;  %5685 = vmatpush3.msra.mxu1 %v3644_v30  ;;  %v5017_v34 = vld [vmem:[%s7251_s5 + $0xa8] sm:$0xff] }
0x255d   :  { %5686 = vmatprep.subr.mxu1 %v6136_v15 }
0x255e   :  { %5687 = vmatpush3.msra.mxu1 %v3643_v35 }
0x255f   :  { %5688 = vmatprep.subr.mxu1 %v6136_v15 }
0x2560   :  { %5689 = vmatpush3.msra.mxu1 %v3642_v37 }
0x2561   :  { %5690 = vmatprep.subr.mxu1 %v6136_v15 }
0x2562   :  { %5691 = vmatpush3.msra.mxu1 %v3641_v28 }
0x2563   :  { %5693 = vmatmul.mubr.msk.f32.vlgmr.msra.gmra.mxu1 %vm224_vm2, %v6779_v7  ;;  %5706 = vmatprep.subr.mxu1 %v6136_v15 }
0x2564   :  { %5714 = vmatprep.mubr.msk.f32.mxu1 %vm6137_vm1, %v6136_v15  ;;  %5707 = vmatpush3.msra.mxu1 %v5019_v51 }
0x2565   :  { %5708 = vmatprep.subr.mxu1 %v6136_v15 }
0x2566   :  { %5709 = vmatpush3.msra.mxu1 %v5018_v50 }
0x2567   :  { %5710 = vmatprep.subr.mxu1 %v6136_v15 }
0x2568   :  { %5711 = vmatpush3.msra.mxu1 %v5017_v34 }
0x2569   :  { %5712 = vmatprep.subr.mxu1 %v6136_v15 }
0x256a   :  { %5713 = vmatpush3.msra.mxu1 %v5016_v53 }
0x2623   :  { %v3711_v7 = vpop.f32.mrf.mxu1 }
0x2624   :  { %5704 = vmatmul.mubr.msk.f32.vlgmr.msra.gmra.mxu0 %vm224_vm2, %v3711_v7 }
0x2625   :  { %5718 = vmatpush3.msra.mxu0 %v5019_v51  ;;  %v5694_v38 = vpop.f32.mrf.mxu1  ;;  %5725 = vmatprep.mubr.msk.f32.mxu0 %vm6137_vm1, %v6136_v15 }
0x2626   :  { %5719 = vmatprep.subr.mxu0 %v6136_v15 }
0x2627   :  { %5720 = vmatpush3.msra.mxu0 %v5018_v50 }
0x2628   :  { %5721 = vmatprep.subr.mxu0 %v6136_v15 }
0x2629   :  { %5722 = vmatpush3.msra.mxu0 %v5017_v34 }
0x262a   :  { %5723 = vmatprep.subr.mxu0 %v6136_v15 }
0x262b   :  { %5724 = vmatpush3.msra.mxu0 %v5016_v53 }
0x262c   :  { %5726 = vmatmul.mubr.msk.f32.vlgmr.msra.gmra.mxu0 %vm224_vm2, %v6826_v45 }
0x26e4   :  { %v3794_v36 = vpop.f32.mrf.mxu0 }
0x26e5   :  { %v3795_v39 = vadd.f32 %v5012_v40, %v3794_v36 }
0x26e6   :  { %v5705_v42 = vpop.f32.mrf.mxu0 }
0x26e7   :  { %v7078_v43 = vadd.f32 %v3795_v39, %v6966_v4 }
0x26e9   :  { %v3801_v44 = vsel %vm224_vm2, %v7078_v43, 0.0 }
0x26ea   :  { %3802 = vadd.xlane.f32.xlu1 %v3801_v44 }
0x26ec   :  { %v3973_v29 = vpop.f32.mrf.mxu0 }
0x26ed   :  { %v7082_v31 = vadd.f32 %v5020_v49, %v3973_v29 }
0x26ee   :  { %v5727_v47 = vpop.f32.mrf.mxu0 }
0x26fb   :  { %4067 = vrot.lane.b32.xlu1 %v7082_v31, %s6138_s30 }
0x2773   :  { %v3803_v45 = vpop.xlane.xlu1 %3802 }
0x2774   :  { %v3804_v33 = vmul.f32 0.03125, %v3803_v45 }
0x2776   :  { %v3805_v52 = vsub.f32 %v7078_v43, %v3804_v33 }
0x2777   :  { %v4068_v54 = vpop.permute.xlu1 %4067 }
0x2778   :  { %5736 = vmatprep.subr.msk.mxu0 %vm224_vm2, %v4068_v54  ;;  %v3806_v4 = vmul.f32 %v3805_v52, %v3805_v52 }
0x2779   :  { %5737 = vmatpush3.xpose.msk.msra.mxu0 %vm224_vm2, %v4068_v54 }
0x277a   :  { %v3807_v20 = vsel %vm224_vm2, %v3806_v4, 0.0  ;;  %5752 = vmatprep.subr.mxu0 %v6136_v15 }
0x277b   :  { %3808 = vadd.xlane.f32.xlu0 %v3807_v20  ;;  %v5041_v20 = vld [vmem:[%s7253_s7 + $0xb8] sm:$0xff] }
0x2804   :  { %v3809_v55 = vpop.xlane.xlu0 %3808 }
0x2805   :  { %v3810_v56 = vmul.f32 0.03125, %v3809_v55  ;;  %v5040_v55 = vld [vmem:[%s7253_s7 + $0xb0] sm:$0xff] }
0x2807   :  { %v3811_v58 = vadd.f32 1e-05, %v3810_v56  ;;  %v5039_v56 = vld [vmem:[%s7253_s7 + $0xa8] sm:$0xff] }
0x2809   :  { %5923 = vrsqrt.f32 %v3811_v58 }
0x2816   :  { %v5924_v59 = vpop.eup %5923 }
0x2817   :  { %v3813_v62 = vmul.f32 %v5924_v59, %v3805_v52 }
0x2819   :  { %v3818_v2 = vmul.f32 %v5014_v61, %v3813_v62 }
0x281b   :  { %v3823_v6 = vadd.f32 %v5015_v63, %v3818_v2 }
0x281d   :  { %5715 = vmatmul.mubr.msk.f32.vlgmr.msra.gmra.mxu1 %vm224_vm2, %v3823_v6 }
0x281e   :  { %5730 = vmatprep.mubr.msk.f32.mxu1 %vm1853_vm7, %v5947_v8 }
0x28dd   :  { %v3903_v10 = vpop.f32.mrf.mxu1 }
0x28de   :  { %v3904_v3 = vadd.f32 %v5020_v49, %v3903_v10  ;;  %v5955_v10 = vld [vmem:[%s7250_s4 + $0xe0] sm:$0xff] }
0x28df   :  { %v5716_v11 = vpop.f32.mrf.mxu1 }
0x28e0   :  { %5728 = vmatprep.subr.mxu1 %v3904_v3 }
0x28e1   :  { %5729 = vmatpush3.msra.mxu1 %v3904_v3  ;;  %v5038_v3 = vld [vmem:[%s7253_s7 + $0xa0] sm:$0xff] }
0x28e2   :  { %5731 = vmatmul.mubr.msk.f32.vlgmr.msra.gmra.mxu1 %vm1853_vm7, %v5948_v5 }
0x28e3   :  { %5733 = vmatprep.mubr.msk.f32.mxu1 %vm1853_vm7, %v5949_v12  ;;  %v5042_v12 = vld [vmem:[#allocation5 + $0x5] ss:$0 sm:$0xff] }
0x28e6   :  { %5734 = vmatmul.mubr.msk.f32.gmra.mxu1 %vm1853_vm7, %v5950_v46 }
0x29a2   :  { %v5732_v9 = vpop.f32.mrf.mxu1 }
0x29a3   :  { %v4063_v48 = vmul.f32 %v7117_v57, %v5732_v9 }
0x29a4   :  { %v4043_v14 = vpop.f32.mrf.mxu1 }
0x29a5   :  { %v4062_v16 = vmul.f32 %v7111_v13, %v4043_v14 }
0x29a6   :  { %v5735_v18 = vpop.f32.mrf.mxu1 }
0x29a7   :  { %5738 = vmatprep.mubr.msk.f32.mxu0 %vm224_vm2, %v4062_v16  ;;  %v4065_v24 = vmul.f32 %v7131_v23, %v5735_v18 }
0x29a8   :  { %v4053_v19 = vpop.f32.mrf.mxu1  ;;  %5739 = vmatmul.mubr.msk.f32.vlgmr.msra.gmra.mxu0 %vm224_vm2, %v4063_v48 }
0x29a9   :  { %v4064_v21 = vmul.f32 %v7125_v0, %v4053_v19 }
0x29ab   :  { %5741 = vmatprep.mubr.msk.f32.mxu0 %vm224_vm2, %v4064_v21  ;;  %v4488_v21 = vld [vmem:[#allocation7 + $0x78] sm:$0xff] }
0x29ac   :  { %5742 = vmatmul.mubr.msk.f32.gmra.mxu0 %vm224_vm2, %v4065_v24  ;;  %v4486_v24 = vld [vmem:[#allocation7 + $0x68] sm:$0xff] }
0x29ad   :  { %5760 = vmatprep.mubr.msk.f32.mxu0 %vm6137_vm1, %v6136_v15 }
0x2a68   :  { %v5740_v25 = vpop.f32.mrf.mxu0 }
0x2a69   :  { %v4170_v1 = vmul.f32 1.442695, %v5740_v25  ;;  %v5055_v25 = vld [vmem:[%s7257_s11 + $0xf8] sm:$0xff] }
0x2a6a   :  { %v4149_v26 = vpop.f32.mrf.mxu0 }
0x2a6b   :  { %5925 = vpow2.f32 %v4170_v1  ;;  %v4168_v27 = vmul.f32 1.442695, %v4149_v26  ;;  %v5054_v1 = vld [vmem:[%s7257_s11 + $0xf0] sm:$0xff]  ;;  %v5053_v26 = vld [vmem:[%s7257_s11 + $0xe8] sm:$0xff] }
0x2a6c   :  { %v5743_v30 = vpop.f32.mrf.mxu0 }
0x2a6d   :  { %5927 = vpow2.f32 %v4168_v27  ;;  %v4174_v32 = vmul.f32 1.442695, %v5743_v30  ;;  %v5052_v27 = vld [vmem:[%s7257_s11 + $0xe0] sm:$0xff]  ;;  %v5051_v30 = vld [vmem:[%s7257_s11 + $0xd8] sm:$0xff] }
0x2a6e   :  { %v4159_v35 = vpop.f32.mrf.mxu0 }
0x2a6f   :  { %5929 = vpow2.f32 %v4174_v32  ;;  %v4172_v37 = vmul.f32 1.442695, %v4159_v35 }
0x2a71   :  { %5931 = vpow2.f32 %v4172_v37 }
0x2a78   :  { %v5926_v28 = vpop.eup %5925 }
0x2a79   :  { %v4177_v51 = vmul.f32 %v5926_v28, %v6853_v41 }
0x2a7a   :  { %v5928_v50 = vpop.eup %5927 }
0x2a7b   :  { %v4183_v34 = vsel %vm298_vm4, %v4177_v51, 0.0  ;;  %v4176_v53 = vmul.f32 %v5928_v50, %v6858_v17 }
0x2a7c   :  { %v5930_v7 = vpop.eup %5929  ;;  %4184 = vadd.xlane.f32.xlu0 %v4183_v34  ;;  %v5045_v34 = vld [vmem:[#allocation11 + $0xa] ss:$0 sm:$0xff] }
0x2a7d   :  { %v4180_v38 = vsel %vm298_vm4, %v4176_v53, 0.0  ;;  %v4179_v40 = vmul.f32 %v5930_v7, %v6864_v60 }
0x2a7e   :  { %v5932_v36 = vpop.eup %5931  ;;  %4181 = vadd.xlane.f32.xlu1 %v4180_v38  ;;  %v5050_v38 = vld [vmem:[%s7257_s11 + $0xd0] sm:$0xff] }
0x2a7f   :  { %v4189_v39 = vsel %vm298_vm4, %v4179_v40, 0.0  ;;  %v4178_v42 = vmul.f32 %v5932_v36, %v6871_v22  ;;  %v5048_v36 = vld [vmem:[%s7257_s11 + $0xc0] sm:$0xff] }
0x2a80   :  { %4190 = vadd.xlane.f32.xlu0 %v4189_v39  ;;  %v5046_v39 = vld [vmem:[#allocation8 + $0x3] ss:$0 sm:$0xff] }
0x2a81   :  { %v4186_v41 = vsel %vm298_vm4, %v4178_v42, 0.0 }
0x2a84   :  { %4187 = vadd.xlane.f32.xlu0 %v4186_v41 }
0x2a9a   :  { %4200 = vrot.lane.b32.xlu0 %v7082_v31, %s6139_s2 }
0x2b05   :  { %v4185_v17 = vpop.xlane.xlu0 %4184 }
0x2b06   :  { %5933 = vrcp.f32 %v4185_v17 }
0x2b07   :  { %v4182_v44 = vpop.xlane.xlu1 %4181 }
0x2b08   :  { %5935 = vrcp.f32 %v4182_v44 }
0x2b09   :  { %v4191_v29 = vpop.xlane.xlu0 %4190 }
0x2b0a   :  { %5937 = vrcp.f32 %v4191_v29  ;;  %v5056_v29 = vld [vmem:[#allocation5 + $0x9] ss:$0 sm:$0xff] }
0x2b0d   :  { %v4188_v60 = vpop.xlane.xlu0 %4187 }
0x2b0e   :  { %5939 = vrcp.f32 %v4188_v60 }
0x2b11   :  { %v4201_v47 = vpop.permute.xlu0 %4200 }
0x2b12   :  { %5744 = vmatprep.subr.msk.mxu1 %vm308_vm3, %v4201_v47 }
0x2b13   :  { %5745 = vmatpush3.msk.msra.mxu1 %vm308_vm3, %v4201_v47  ;;  %v5934_v22 = vpop.eup %5933 }
0x2b14   :  { %5763 = vmatprep.subr.mxu1 %v6136_v15  ;;  %v4197_v33 = vmul.f32 %v5934_v22, %v4177_v51  ;;  %v5044_v51 = vld [vmem:[#allocation10 + $0xa] ss:$0 sm:$0xff] }
0x2b15   :  { %v5936_v49 = vpop.eup %5935 }
0x2b16   :  { %v4196_v45 = vmul.f32 %v5936_v49, %v4176_v53 }
0x2b17   :  { %v5938_v31 = vpop.eup %5937 }
0x2b18   :  { %5746 = vmatprep.mubr.msk.f32.mxu1 %vm298_vm4, %v4196_v45  ;;  %v4199_v4 = vmul.f32 %v5938_v31, %v4179_v40  ;;  %v5049_v40 = vld [vmem:[%s7257_s11 + $0xc8] sm:$0xff]  ;;  %s6140_s11 = smov [#allocation14]  }
0x2b19   :  { %5747 = vmatmul.mubr.msk.f32.vlgmr.msra.gmra.mxu1 %vm298_vm4, %v4197_v33  ;;  %s4810_s8 = sshll.u32 %s6140_s11, 4  ;;  %s4811_s8 = int_to_ptr.vmem [resolvable:$true] %s4810_s8 }
0x2b1a   :  { %5764 = vmatpush3.msra.mxu1 %v5041_v20  ;;  %s6096_s18 = scalar_lea.vmem %s4811_s8, 32  ;;  %p6101_p8 = scmp.lt.s32.totalorder %s4811_s8, %s4811_s8 }
0x2b1b   :  { %v5940_v52 = vpop.eup %5939  ;;  %5765 = vmatprep.subr.mxu1 %v6136_v15  ;;  %p6097_p7 = scmp.ne.s32.totalorder %s4811_s8, %s6096_s18  ;;  %p6102_p9 = scmp.lt.s32.totalorder %s6096_s18, %s6096_s18 }
0x2b1c   :  { %v4198_v54 = vmul.f32 %v5940_v52, %v4178_v42  ;;  %5766 = vmatpush3.msra.mxu1 %v5040_v55 }
0x2b1d   :  { %5767 = vmatprep.subr.mxu1 %v6136_v15  ;;  %p6103_p10 = por %p6102_p9, %p6101_p8 }
0x2b1e   :  { %5749 = vmatprep.mubr.msk.f32.mxu1 %vm298_vm4, %v4198_v54  ;;  %5768 = vmatpush3.msra.mxu1 %v5039_v56 }
0x2b1f   :  { %5750 = vmatmul.mubr.msk.f32.gmra.mxu1 %vm298_vm4, %v4199_v4  ;;  %5769 = vmatprep.subr.mxu1 %v6136_v15  ;;  %p6104_p11 = pnand %p6103_p10, %p6097_p7 }
0x2b20   :  { %5771 = vmatprep.mubr.msk.f32.mxu1 %vm6137_vm1, %v6136_v15  ;;  %5770 = vmatpush3.msra.mxu1 %v5038_v3 }
0x2b21   :  { %5785 = vmatprep.subr.mxu1 %v6136_v15 }
0x2bd9   :  { %v5748_v58 = vpop.f32.mrf.mxu1 }
0x2bda   :  { %v4302_v6 = vmul.f32 %v7117_v57, %v5748_v58 }
0x2bdb   :  { %v4282_v59 = vpop.f32.mrf.mxu1 }
0x2bdc   :  { %v4301_v8 = vmul.f32 %v7111_v13, %v4282_v59  ;;  %v5058_v59 = vld [vmem:[#allocation10 + $0xb] ss:$0 sm:$0xff] }
0x2bdf   :  { %v5751_v61 = vpop.f32.mrf.mxu1 }
0x2be0   :  { %v4304_v62 = vmul.f32 %v7131_v23, %v5751_v61  ;;  %v4487_v23 = vld [vmem:[#allocation7 + $0x70] sm:$0xff] }
0x2be1   :  { %v4292_v63 = vpop.f32.mrf.mxu1 }
0x2be2   :  { %v4303_v2 = vmul.f32 %v7125_v0, %v4292_v63  ;;  %5753 = vmatpush3.msra.mxu0 %v4304_v62  ;;  %v5059_v62 = vld [vmem:[#allocation11 + $0xb] ss:$0 sm:$0xff] }
0x2be3   :  { %5754 = vmatprep.subr.mxu0 %v6136_v15 }
0x2be4   :  { %5755 = vmatpush3.msra.mxu0 %v4303_v2 }
0x2be5   :  { %5756 = vmatprep.subr.mxu0 %v6136_v15 }
0x2be6   :  { %5757 = vmatpush3.msra.mxu0 %v4302_v6 }
0x2be7   :  { %5758 = vmatprep.subr.mxu0 %v6136_v15 }
0x2be8   :  { %5759 = vmatpush3.msra.mxu0 %v4301_v8 }
0x2be9   :  { %5761 = vmatmul.mubr.msk.f32.vlgmr.msra.gmra.mxu0 %vm224_vm2, %v5955_v10  ;;  %5774 = vmatprep.subr.mxu0 %v6136_v15 }
0x2bea   :  { %5782 = vmatprep.mubr.msk.f32.mxu0 %vm6137_vm1, %v6136_v15  ;;  %5775 = vmatpush3.msra.mxu0 %v4488_v21 }
0x2beb   :  { %5776 = vmatprep.subr.mxu0 %v6136_v15 }
0x2bec   :  { %5777 = vmatpush3.msra.mxu0 %v4487_v23 }
0x2bed   :  { %5778 = vmatprep.subr.mxu0 %v6136_v15 }
0x2bee   :  { %5779 = vmatpush3.msra.mxu0 %v4486_v24 }
0x2bef   :  { %5780 = vmatprep.subr.mxu0 %v6136_v15 }
0x2ca9   :  { %v4371_v11 = vpop.f32.mrf.mxu0 }
0x2caa   :  { %5772 = vmatmul.mubr.msk.f32.vlgmr.msra.gmra.mxu1 %vm224_vm2, %v4371_v11 }
0x2cab   :  { %v5762_v5 = vpop.f32.mrf.mxu0  ;;  %5801 = vmatprep.mubr.msk.f32.mxu1 %vm6137_vm1, %v6136_v15  ;;  %5786 = vmatpush3.msra.mxu1 %v5055_v25 }
0x2cac   :  { %5787 = vmatprep.subr.mxu1 %v6136_v15 }
0x2cad   :  { %5788 = vmatpush3.msra.mxu1 %v5054_v1  ;;  %v4729_v1 = vld [vmem:[#allocation13 + $0x18] sm:$0xff] }
0x2cae   :  { %5789 = vmatprep.subr.mxu1 %v6136_v15 }
0x2caf   :  { %5790 = vmatpush3.msra.mxu1 %v5053_v26  ;;  %v4728_v26 = vld [vmem:[#allocation13 + $0x10] sm:$0xff] }
0x2cb0   :  { %5791 = vmatprep.subr.mxu1 %v6136_v15 }
0x2cb1   :  { %5792 = vmatpush3.msra.mxu1 %v5052_v27  ;;  %v4727_v27 = vld [vmem:[#allocation13 + $0x8] sm:$0xff] }
0x2cb2   :  { %5793 = vmatprep.subr.mxu1 %v6136_v15 }
0x2cb3   :  { %5794 = vmatpush3.msra.mxu1 %v5051_v30  ;;  %v4726_v30 = vld [vmem:[#allocation13] sm:$0xff] }
0x2cb4   :  { %5795 = vmatprep.subr.mxu1 %v6136_v15 }
0x2cb5   :  { %5796 = vmatpush3.msra.mxu1 %v5050_v38 }
0x2cb6   :  { %5797 = vmatprep.subr.mxu1 %v6136_v15 }
0x2cb7   :  { %5798 = vmatpush3.msra.mxu1 %v5049_v40 }
0x2cb8   :  { %5799 = vmatprep.subr.mxu1 %v6136_v15 }
0x2cb9   :  { %5800 = vmatpush3.msra.mxu1 %v5048_v36 }
0x2d6a   :  { %v4454_v46 = vpop.f32.mrf.mxu1 }
0x2d6b   :  { %v4455_v9 = vadd.f32 %v5042_v12, %v4454_v46 }
0x2d6c   :  { %v5773_v14 = vpop.f32.mrf.mxu1 }
0x2d6d   :  { %v7191_v13 = vadd.f32 %v4455_v9, %v7078_v43  ;;  %v4485_v43 = vld [vmem:[#allocation7 + $0x60] sm:$0xff] }
0x2d6e   :  { %5781 = vmatpush3.msra.mxu0 %v4485_v43 }
0x2d6f   :  { %v4461_v16 = vsel %vm224_vm2, %v7191_v13, 0.0  ;;  %5804 = vmatprep.subr.mxu0 %v6136_v15 }
0x2d70   :  { %4462 = vadd.xlane.f32.xlu1 %v4461_v16 }
0x2df9   :  { %v4463_v57 = vpop.xlane.xlu1 %4462 }
0x2dfa   :  { %v4464_v48 = vmul.f32 0.03125, %v4463_v57 }
0x2dfc   :  { %v4465_v18 = vsub.f32 %v7191_v13, %v4464_v48 }
0x2dfe   :  { %v4466_v19 = vmul.f32 %v4465_v18, %v4465_v18 }
0x2e00   :  { %v4467_v0 = vsel %vm224_vm2, %v4466_v19, 0.0 }
0x2e01   :  { %4468 = vadd.xlane.f32.xlu1 %v4467_v0 }
0x2e8a   :  { %v4469_v32 = vpop.xlane.xlu1 %4468 }
0x2e8b   :  { %v4470_v35 = vmul.f32 0.03125, %v4469_v32 }
0x2e8d   :  { %v4471_v37 = vadd.f32 1e-05, %v4470_v35 }
0x2e8f   :  { %5941 = vrsqrt.f32 %v4471_v37 }
0x2e9c   :  { %v5942_v28 = vpop.eup %5941 }
0x2e9d   :  { %v4473_v50 = vmul.f32 %v5942_v28, %v4465_v18 }
0x2e9f   :  { %v4478_v53 = vmul.f32 %v5044_v51, %v4473_v50  ;;  %v5060_v51 = vld [vmem:[#allocation10 + $0xc] ss:$0 sm:$0xff] }
0x2ea1   :  { %v4483_v7 = vadd.f32 %v5045_v34, %v4478_v53  ;;  %v5061_v34 = vld [vmem:[#allocation11 + $0xc] ss:$0 sm:$0xff] }
0x2ea3   :  { %5783 = vmatmul.mubr.msk.f32.vlgmr.msra.gmra.mxu0 %vm224_vm2, %v4483_v7 }
0x2ea4   :  { %5812 = vmatprep.mubr.msk.f32.mxu0 %vm6137_vm1, %v6136_v15  ;;  %5805 = vmatpush3.msra.mxu0 %v4729_v1 }
0x2ea5   :  { %5806 = vmatprep.subr.mxu0 %v6136_v15 }
0x2ea6   :  { %5807 = vmatpush3.msra.mxu0 %v4728_v26 }
0x2ea7   :  { %5808 = vmatprep.subr.mxu0 %v6136_v15 }
0x2ea8   :  { %5809 = vmatpush3.msra.mxu0 %v4727_v27 }
0x2ea9   :  { %5810 = vmatprep.subr.mxu0 %v6136_v15 }
0x2eaa   :  { %5811 = vmatpush3.msra.mxu0 %v4726_v30 }
0x2f63   :  { %v4563_v42 = vpop.f32.mrf.mxu0 }
0x2f64   :  { %v4564_v41 = vadd.f32 %v5046_v39, %v4563_v42 }
0x2f65   :  { %v5784_v17 = vpop.f32.mrf.mxu0 }
0x2f66   :  { %v4567_v44 = vmax.f32 %v4564_v41, 0.0 }
0x2f68   :  { %5802 = vmatmul.mubr.msk.f32.vlgmr.msra.gmra.mxu1 %vm886_vm6, %v4567_v44 }
0x3028   :  { %v4651_v60 = vpop.f32.mrf.mxu1 }
0x3029   :  { %v4652_v47 = vadd.f32 %v5056_v29, %v4651_v60 }
0x302a   :  { %v5803_v22 = vpop.f32.mrf.mxu1 }
0x302b   :  { %v4655_v49 = vadd.f32 %v4652_v47, %v7191_v13 }
0x302d   :  { %v4658_v45 = vsel %vm224_vm2, %v4655_v49, 0.0 }
0x302e   :  { %4659 = vadd.xlane.f32.xlu1 %v4658_v45 }
0x30b7   :  { %v4660_v33 = vpop.xlane.xlu1 %4659 }
0x30b8   :  { %v4661_v31 = vmul.f32 0.03125, %v4660_v33 }
0x30ba   :  { %v4662_v52 = vsub.f32 %v4655_v49, %v4661_v31 }
0x30bc   :  { %v4663_v54 = vmul.f32 %v4662_v52, %v4662_v52 }
0x30be   :  { %v4664_v4 = vsel %vm224_vm2, %v4663_v54, 0.0 }
0x30bf   :  { %4665 = vadd.xlane.f32.xlu0 %v4664_v4 }
0x3148   :  { %v4666_v20 = vpop.xlane.xlu0 %4665 }
0x3149   :  { %v4667_v55 = vmul.f32 0.03125, %v4666_v20 }
0x314b   :  { %v4668_v56 = vadd.f32 1e-05, %v4667_v55 }
0x314d   :  { %5943 = vrsqrt.f32 %v4668_v56 }
0x315a   :  { %v5944_v58 = vpop.eup %5943 }
0x315b   :  { %v4670_v61 = vmul.f32 %v5944_v58, %v4662_v52 }
0x315d   :  { %v4675_v63 = vmul.f32 %v5058_v59, %v4670_v61 }
0x315f   :  { %v4680_v2 = vadd.f32 %v5059_v62, %v4675_v63 }
0x3161   :  { %v4682_v6 = vsel %vm4681_vm8, %v4680_v2, -inf  ;;  %v4690_v8 = vsel %vm4689_vm9, %v4680_v2, -inf }
0x3162   :  { %v4683_v10 = vrot.slane %v4682_v6, 4  ;;  %v4691_v3 = vrot.slane %v4690_v8, 4 }
0x3164   :  { %v4684_v11 = vmax.f32 %v4682_v6, %v4683_v10  ;;  %v4692_v5 = vmax.f32 %v4690_v8, %v4691_v3 }
0x3166   :  { %v4685_v12 = vrot.slane %v4684_v11, 2  ;;  %v4693_v46 = vrot.slane %v4692_v5, 2 }
0x3168   :  { %v4686_v9 = vmax.f32 %v4684_v11, %v4685_v12  ;;  %v4694_v14 = vmax.f32 %v4692_v5, %v4693_v46 }
0x316a   :  { %v4687_v13 = vrot.slane %v4686_v9, 1  ;;  %v4695_v16 = vrot.slane %v4694_v14, 1 }
0x316c   :  { %v4688_v57 = vmax.f32 %v4686_v9, %v4687_v13  ;;  %v4696_v48 = vmax.f32 %v4694_v14, %v4695_v16 }
0x316e   :  { %v4698_v18 = vsel %vm4697_vm10, %v4688_v57, %v4696_v48 }
0x316f   :  { %v4699_v19 = vmax.f32 %v4698_v18, 0.0 }
0x3171   :  { %v4703_v0 = vsel %vm4702_vm11, %v4699_v19, 0.0 }
0x3172   :  { %4704 = vadd.xlane.f32.xlu1 %v4703_v0 }
0x31fb   :  { %v4705_v21 = vpop.xlane.xlu1 %4704 }
0x31fc   :  { %v4706_v23 = vmul.f32 0.03125, %v4705_v21 }
0x31fe   :  { %v4707_v24 = vsub.f32 %v4699_v19, %v4706_v23 }
0x3200   :  { %v4708_v43 = vmul.f32 %v4707_v24, %v4707_v24 }
0x3202   :  { %v4709_v25 = vsel %vm4702_vm11, %v4708_v43, 0.0 }
0x3203   :  { %4710 = vadd.xlane.f32.xlu1 %v4709_v25 }
0x328c   :  { %v4711_v32 = vpop.xlane.xlu1 %4710 }
0x328d   :  { %v4712_v35 = vmul.f32 0.03125, %v4711_v32 }
0x328f   :  { %v4713_v37 = vadd.f32 1e-05, %v4712_v35 }
0x3291   :  { %5945 = vrsqrt.f32 %v4713_v37 }
0x329e   :  { %v5946_v28 = vpop.eup %5945 }
0x329f   :  { %v4715_v50 = vmul.f32 %v5946_v28, %v4707_v24 }
0x32a1   :  { %v4720_v53 = vmul.f32 %v5060_v51, %v4715_v50 }
0x32a3   :  { %v4725_v7 = vadd.f32 %v5061_v34, %v4720_v53 }
0x32a5   :  { %5813 = vmatmul.mubr.msk.f32.vlgmr.msra.gmra.mxu0 %vm224_vm2, %v4725_v7 }
0x3365   :  { %v4799_v38 = vpop.f32.mrf.mxu0 }
0x3366   :  { %4803 = vst [vmem:[#allocation14] sm:$0x3] %v4799_v38 }
0x3367   :  { %v5814_v40 = vpop.f32.mrf.mxu0 }
0x3368   :  { %6107 = shalt.err (!%p6104_p11)
}
0x3369   :  { %4813 = dma.vmem_to_hbm [thread:$0]  %s4811_s8, 32, %s7261_s15, [#allocation4]  }
0x336a   :  { %6124 = dma.done.wait [#allocation4], 32  }
0x336b   :  { %6125 = vsyncadd [#allocation4], 4294967264 }
0x336c   :  { %4817 = vsyncpa [#allocation3], 1 }
0x336d   :  { %4818 = vsyncpa [#allocation6], 1 }
0x336e   :  { %4819 = vsyncpa [#allocation9], 1 }
0x336f   :  { %4820 = vsyncpa [#allocation12], 1 }
0x3370   :  { %4821 = vsyncpa [#allocation4], 1 }

</bundles_post_ra>
